<compile_context>
chip_gen: v6e
topology: v6e:2x2x1
jax: 0.10.0
libtpu: 0.0.40
codegen_flags: <defaults>
</compile_context>

<pallas_src>
import jax
import jax.numpy as jnp
import numpy as np
from jax.experimental import pallas as pl
from jax.experimental.pallas import tpu as pltpu

K = 5        # kernel_size
PAD = 2      # padding
MARGIN = 8   # zero margin rows (>= PAD, multiple of sublane tile -> aligned concat)


def resnet_kernel(x_ref, mask_ref, sel_ref, ssum_ref,
                  w0_ref, b0_ref, w1_ref, b1_ref, w2_ref, b2_ref,
                  wfc_ref, bfc_ref, out_ref):
    BL = x_ref.shape[0]            # B * L rows (batch stacked on sublanes)
    B = out_ref.shape[0]
    L = BL // B

    x = x_ref[...]                 # (BL, d_in)  channels-last, batch-flattened
    masks = mask_ref[...]          # (BL, K)     1.0 where tap stays inside its own sequence
    w0 = w0_ref[...]               # (K*d_in, F) pre-stacked im2col weight
    b0 = b0_ref[...]               # (1, F)
    w1 = w1_ref[...]               # (K*F, F)
    b1 = b1_ref[...]
    w2 = w2_ref[...]
    b2 = b2_ref[...]

    def conv_same(h, w_big, b):
        # h: (BL, Cin), w_big: (K*Cin, Cout), b: (1, Cout) -> (BL, Cout)
        cin = h.shape[1]
        z = jnp.zeros((MARGIN, cin), jnp.float32)
        hp = jnp.concatenate([z, h, z], axis=0)              # (BL + 2*MARGIN, Cin), aligned
        taps = []
        for k in range(K):
            d = k - PAD
            t = hp[MARGIN + d: MARGIN + d + BL, :]           # h shifted by d rows
            if d != 0:
                t = t * masks[:, k:k + 1]                    # zero cross-sequence rows
            taps.append(t)
        hp_big = jnp.concatenate(taps, axis=1)               # (BL, K*Cin) im2col block
        return jnp.dot(hp_big, w_big,
                       preferred_element_type=jnp.float32) + b

    # first conv
    h = conv_same(x, w0, b0)
    # 4 residual applications (conv1/conv2 shared), inplace-ReLU semantics preserved
    for _ in range(4):
        r = jnp.maximum(h, 0.0)
        t = jnp.maximum(conv_same(r, w1, b1), 0.0)
        o = conv_same(t, w2, b2)
        h = jnp.maximum(r + o, 0.0)                          # (BL, F)

    # FC head.  Flatten (BL, F) -> (B, L*F) with matmul-safe ops:
    #   h_exp[r, l*F+f] = h[r, f] * [l == r mod L]   (lane replicate * select mask)
    #   h_flat = ssum @ h_exp                        (sum rows of each batch -> (B, L*F))
    h_exp = jnp.concatenate([h] * L, axis=1) * sel_ref[...]                  # (BL, L*F)
    h_flat = jnp.dot(ssum_ref[...], h_exp, preferred_element_type=jnp.float32)  # (B, L*F)
    out_ref[...] = (jnp.dot(h_flat, wfc_ref[...],
                            preferred_element_type=jnp.float32) + bfc_ref[...])


def resnet_forward(x_ncl, params):
    """x_ncl: (B, d_in, L) PyTorch layout. params in PyTorch layouts."""
    w0, b0, w1, b1, w2, b2, fcw, fcb = params
    B, d_in, L = x_ncl.shape
    F = w0.shape[0]
    d_out = fcw.shape[0]
    BL = B * L

    # layout: NCL -> channels-last, batch collapsed onto the sublane axis: (B*L, C)
    x_k = jnp.transpose(x_ncl, (0, 2, 1)).reshape(BL, d_in).astype(jnp.float32)

    def stack_w(w):
        # (Cout, Cin, K) -> (K*Cin, Cout); row index k*Cin + c matches the kernel's
        # im2col lane-concat order (taps k outer, channels c inner).
        cout, cin, _ = w.shape
        return jnp.transpose(w, (2, 1, 0)).reshape(K * cin, cout).astype(jnp.float32)

    w0_k, w1_k, w2_k = stack_w(w0), stack_w(w1), stack_w(w2)

    # FC weight: PyTorch flatten is channel-major (col = f*L + l); kernel flatten is l*F + f.
    wfc_k = jnp.transpose(fcw.reshape(d_out, F, L), (2, 1, 0)) \
               .reshape(L * F, d_out).astype(jnp.float32)

    # Precomputed static helpers (built on host, tiny).
    pos = np.arange(BL) % L                                   # position within each sequence
    offs = np.arange(K) - PAD
    mask = ((pos[:, None] + offs[None, :] >= 0) &
            (pos[:, None] + offs[None, :] < L)).astype(np.float32)          # (BL, K)
    sel = (pos[:, None] == (np.arange(L * F) // F)[None, :]).astype(np.float32)  # (BL, L*F)
    ssum = (np.arange(B)[:, None] == (np.arange(BL) // L)[None, :]).astype(np.float32)  # (B, BL)

    args = (x_k, jnp.asarray(mask), jnp.asarray(sel), jnp.asarray(ssum),
            w0_k, b0[None, :].astype(jnp.float32),
            w1_k, b1[None, :].astype(jnp.float32),
            w2_k, b2[None, :].astype(jnp.float32),
            wfc_k, fcb[None, :].astype(jnp.float32))

    vmem = pl.BlockSpec(memory_space=pltpu.MemorySpace.VMEM)
    return pl.pallas_call(
        resnet_kernel,
        out_shape=jax.ShapeDtypeStruct((B, d_out), jnp.float32),
        in_specs=[vmem] * len(args),
        out_specs=vmem,
    )(*args)


def ref_forward(x, params):
    """Pure-JAX reference (PyTorch NCL layout / semantics) for validation."""
    w0, b0, w1, b1, w2, b2, fcw, fcb = params
    B, _, L = x.shape

    def conv(h, w, b):
        hp = jnp.pad(h, ((0, 0), (0, 0), (PAD, PAD)))
        cout = w.shape[0]
        out = jnp.zeros((B, cout, L), jnp.float32)
        for k in range(K):
            out = out + jnp.einsum('bcl,oc->bol', hp[:, :, k:k + L], w[:, :, k])
        return out + b[None, :, None]

    h = conv(x, w0, b0)
    for _ in range(4):
        r = jax.nn.relu(h)
        t = jax.nn.relu(conv(r, w1, b1))
        o = conv(t, w2, b2)
        h = jax.nn.relu(r + o)
    flat = h.reshape(B, -1)                 # channel-major flatten, like torch
    return flat @ fcw.T + fcb[None, :]


if __name__ == "__main__":
    key = jax.random.PRNGKey(0)
    B, d_in, filters, d_out = 2, 4, 8, 14
    L = d_out + 2   # fc1 expects filters * (d_out + 2) inputs => seq length must be d_out + 2

    ks = jax.random.split(key, 9)

    def init(k, shape, scale=0.1):
        return scale * jax.random.normal(k, shape, jnp.float32)

    params = (
        init(ks[0], (filters, d_in, K)),        # conv.weight
        init(ks[1], (filters,)),                # conv.bias
        init(ks[2], (filters, filters, K)),     # conv1.weight
        init(ks[3], (filters,)),                # conv1.bias
        init(ks[4], (filters, filters, K)),     # conv2.weight
        init(ks[5], (filters,)),                # conv2.bias
        init(ks[6], (d_out, filters * L)),      # fc1.weight
        init(ks[7], (d_out,)),                  # fc1.bias
    )
    x = jax.random.normal(ks[8], (B, d_in, L), jnp.float32)

    out = jax.block_until_ready(resnet_forward(x, params))
    assert out.shape == (B, d_out)

    ref = ref_forward(x, params)
    np.testing.assert_allclose(np.asarray(out), np.asarray(ref), atol=1e-4, rtol=1e-4)

    print("KERNEL_OK")
</pallas_src>

<mosaic_0001>
module attributes {stable_mosaic.version = 11 : i64} {
  func.func @resnet_kernel(%arg0: memref<32x4xf32, #tpu.memory_space<vmem>>, %arg1: memref<32x5xf32, #tpu.memory_space<vmem>>, %arg2: memref<32x128xf32, #tpu.memory_space<vmem>>, %arg3: memref<2x32xf32, #tpu.memory_space<vmem>>, %arg4: memref<20x8xf32, #tpu.memory_space<vmem>>, %arg5: memref<1x8xf32, #tpu.memory_space<vmem>>, %arg6: memref<40x8xf32, #tpu.memory_space<vmem>>, %arg7: memref<1x8xf32, #tpu.memory_space<vmem>>, %arg8: memref<40x8xf32, #tpu.memory_space<vmem>>, %arg9: memref<1x8xf32, #tpu.memory_space<vmem>>, %arg10: memref<128x14xf32, #tpu.memory_space<vmem>>, %arg11: memref<1x14xf32, #tpu.memory_space<vmem>>, %arg12: memref<2x14xf32, #tpu.memory_space<vmem>>) attributes {dimension_semantics = [], scalar_prefetch = 0 : i64, scratch_operands = 0 : i64, tpu.core_type = #tpu.core_type<tc>} {
    %c0 = arith.constant 0 : index
    %c0_0 = arith.constant 0 : index
    %0 = vector.load %arg0[%c0, %c0_0] : memref<32x4xf32, #tpu.memory_space<vmem>>, vector<32x4xf32>
    %c0_1 = arith.constant 0 : index
    %c0_2 = arith.constant 0 : index
    %1 = vector.load %arg1[%c0_1, %c0_2] : memref<32x5xf32, #tpu.memory_space<vmem>>, vector<32x5xf32>
    %c0_3 = arith.constant 0 : index
    %c0_4 = arith.constant 0 : index
    %2 = vector.load %arg4[%c0_3, %c0_4] : memref<20x8xf32, #tpu.memory_space<vmem>>, vector<20x8xf32>
    %c0_5 = arith.constant 0 : index
    %c0_6 = arith.constant 0 : index
    %3 = vector.load %arg5[%c0_5, %c0_6] : memref<1x8xf32, #tpu.memory_space<vmem>>, vector<1x8xf32>
    %c0_7 = arith.constant 0 : index
    %c0_8 = arith.constant 0 : index
    %4 = vector.load %arg6[%c0_7, %c0_8] : memref<40x8xf32, #tpu.memory_space<vmem>>, vector<40x8xf32>
    %c0_9 = arith.constant 0 : index
    %c0_10 = arith.constant 0 : index
    %5 = vector.load %arg7[%c0_9, %c0_10] : memref<1x8xf32, #tpu.memory_space<vmem>>, vector<1x8xf32>
    %c0_11 = arith.constant 0 : index
    %c0_12 = arith.constant 0 : index
    %6 = vector.load %arg8[%c0_11, %c0_12] : memref<40x8xf32, #tpu.memory_space<vmem>>, vector<40x8xf32>
    %c0_13 = arith.constant 0 : index
    %c0_14 = arith.constant 0 : index
    %7 = vector.load %arg9[%c0_13, %c0_14] : memref<1x8xf32, #tpu.memory_space<vmem>>, vector<1x8xf32>
    %cst = arith.constant 0.000000e+00 : f32
    %8 = vector.broadcast %cst : f32 to vector<8x4xf32>
    %9 = tpu.concatenate %8, %0, %8 in 0 : vector<8x4xf32>, vector<32x4xf32>, vector<8x4xf32> -> vector<48x4xf32>
    %10 = vector.extract_strided_slice %9 {offsets = [6, 0], sizes = [32, 4], strides = [1, 1]} : vector<48x4xf32> to vector<32x4xf32>
    %11 = vector.extract_strided_slice %1 {offsets = [0, 0], sizes = [32, 1], strides = [1, 1]} : vector<32x5xf32> to vector<32x1xf32>
    %12 = vector.broadcast %11 : vector<32x1xf32> to vector<32x4xf32>
    %13 = arith.mulf %10, %12 : vector<32x4xf32>
    %14 = vector.extract_strided_slice %9 {offsets = [7, 0], sizes = [32, 4], strides = [1, 1]} : vector<48x4xf32> to vector<32x4xf32>
    %15 = vector.extract_strided_slice %1 {offsets = [0, 1], sizes = [32, 1], strides = [1, 1]} : vector<32x5xf32> to vector<32x1xf32>
    %16 = vector.broadcast %15 : vector<32x1xf32> to vector<32x4xf32>
    %17 = arith.mulf %14, %16 : vector<32x4xf32>
    %18 = vector.extract_strided_slice %9 {offsets = [8, 0], sizes = [32, 4], strides = [1, 1]} : vector<48x4xf32> to vector<32x4xf32>
    %19 = vector.extract_strided_slice %9 {offsets = [9, 0], sizes = [32, 4], strides = [1, 1]} : vector<48x4xf32> to vector<32x4xf32>
    %20 = vector.extract_strided_slice %1 {offsets = [0, 3], sizes = [32, 1], strides = [1, 1]} : vector<32x5xf32> to vector<32x1xf32>
    %21 = vector.broadcast %20 : vector<32x1xf32> to vector<32x4xf32>
    %22 = arith.mulf %19, %21 : vector<32x4xf32>
    %23 = vector.extract_strided_slice %9 {offsets = [10, 0], sizes = [32, 4], strides = [1, 1]} : vector<48x4xf32> to vector<32x4xf32>
    %24 = vector.extract_strided_slice %1 {offsets = [0, 4], sizes = [32, 1], strides = [1, 1]} : vector<32x5xf32> to vector<32x1xf32>
    %25 = vector.broadcast %24 : vector<32x1xf32> to vector<32x4xf32>
    %26 = arith.mulf %23, %25 : vector<32x4xf32>
    %27 = tpu.concatenate %13, %17, %18, %22, %26 in 1 : vector<32x4xf32>, vector<32x4xf32>, vector<32x4xf32>, vector<32x4xf32>, vector<32x4xf32> -> vector<32x20xf32>
    %cst_15 = arith.constant dense<0.000000e+00> : vector<32x8xf32>
    %28 = tpu.matmul %27, %2, %cst_15 {dimension_numbers = #tpu.dot_dimension_numbers<[1], [0], [0], [1], [0, 0, 1, 1], [], []>} : vector<32x20xf32>, vector<20x8xf32>, vector<32x8xf32> -> vector<32x8xf32>
    %29 = vector.broadcast %3 : vector<1x8xf32> to vector<32x8xf32>
    %30 = arith.addf %28, %29 : vector<32x8xf32>
    %cst_16 = arith.constant 0.000000e+00 : f32
    %31 = vector.broadcast %cst_16 : f32 to vector<32x8xf32>
    %32 = arith.maximumf %30, %31 : vector<32x8xf32>
    %cst_17 = arith.constant 0.000000e+00 : f32
    %33 = vector.broadcast %cst_17 : f32 to vector<8x8xf32>
    %34 = tpu.concatenate %33, %32, %33 in 0 : vector<8x8xf32>, vector<32x8xf32>, vector<8x8xf32> -> vector<48x8xf32>
    %35 = vector.extract_strided_slice %34 {offsets = [6, 0], sizes = [32, 8], strides = [1, 1]} : vector<48x8xf32> to vector<32x8xf32>
    %36 = vector.extract_strided_slice %1 {offsets = [0, 0], sizes = [32, 1], strides = [1, 1]} : vector<32x5xf32> to vector<32x1xf32>
    %37 = vector.broadcast %36 : vector<32x1xf32> to vector<32x8xf32>
    %38 = arith.mulf %35, %37 : vector<32x8xf32>
    %39 = vector.extract_strided_slice %34 {offsets = [7, 0], sizes = [32, 8], strides = [1, 1]} : vector<48x8xf32> to vector<32x8xf32>
    %40 = vector.extract_strided_slice %1 {offsets = [0, 1], sizes = [32, 1], strides = [1, 1]} : vector<32x5xf32> to vector<32x1xf32>
    %41 = vector.broadcast %40 : vector<32x1xf32> to vector<32x8xf32>
    %42 = arith.mulf %39, %41 : vector<32x8xf32>
    %43 = vector.extract_strided_slice %34 {offsets = [8, 0], sizes = [32, 8], strides = [1, 1]} : vector<48x8xf32> to vector<32x8xf32>
    %44 = vector.extract_strided_slice %34 {offsets = [9, 0], sizes = [32, 8], strides = [1, 1]} : vector<48x8xf32> to vector<32x8xf32>
    %45 = vector.extract_strided_slice %1 {offsets = [0, 3], sizes = [32, 1], strides = [1, 1]} : vector<32x5xf32> to vector<32x1xf32>
    %46 = vector.broadcast %45 : vector<32x1xf32> to vector<32x8xf32>
    %47 = arith.mulf %44, %46 : vector<32x8xf32>
    %48 = vector.extract_strided_slice %34 {offsets = [10, 0], sizes = [32, 8], strides = [1, 1]} : vector<48x8xf32> to vector<32x8xf32>
    %49 = vector.extract_strided_slice %1 {offsets = [0, 4], sizes = [32, 1], strides = [1, 1]} : vector<32x5xf32> to vector<32x1xf32>
    %50 = vector.broadcast %49 : vector<32x1xf32> to vector<32x8xf32>
    %51 = arith.mulf %48, %50 : vector<32x8xf32>
    %52 = tpu.concatenate %38, %42, %43, %47, %51 in 1 : vector<32x8xf32>, vector<32x8xf32>, vector<32x8xf32>, vector<32x8xf32>, vector<32x8xf32> -> vector<32x40xf32>
    %cst_18 = arith.constant dense<0.000000e+00> : vector<32x8xf32>
    %53 = tpu.matmul %52, %4, %cst_18 {dimension_numbers = #tpu.dot_dimension_numbers<[1], [0], [0], [1], [0, 0, 1, 1], [], []>} : vector<32x40xf32>, vector<40x8xf32>, vector<32x8xf32> -> vector<32x8xf32>
    %54 = vector.broadcast %5 : vector<1x8xf32> to vector<32x8xf32>
    %55 = arith.addf %53, %54 : vector<32x8xf32>
    %cst_19 = arith.constant 0.000000e+00 : f32
    %56 = vector.broadcast %cst_19 : f32 to vector<32x8xf32>
    %57 = arith.maximumf %55, %56 : vector<32x8xf32>
    %cst_20 = arith.constant 0.000000e+00 : f32
    %58 = vector.broadcast %cst_20 : f32 to vector<8x8xf32>
    %59 = tpu.concatenate %58, %57, %58 in 0 : vector<8x8xf32>, vector<32x8xf32>, vector<8x8xf32> -> vector<48x8xf32>
    %60 = vector.extract_strided_slice %59 {offsets = [6, 0], sizes = [32, 8], strides = [1, 1]} : vector<48x8xf32> to vector<32x8xf32>
    %61 = vector.extract_strided_slice %1 {offsets = [0, 0], sizes = [32, 1], strides = [1, 1]} : vector<32x5xf32> to vector<32x1xf32>
    %62 = vector.broadcast %61 : vector<32x1xf32> to vector<32x8xf32>
    %63 = arith.mulf %60, %62 : vector<32x8xf32>
    %64 = vector.extract_strided_slice %59 {offsets = [7, 0], sizes = [32, 8], strides = [1, 1]} : vector<48x8xf32> to vector<32x8xf32>
    %65 = vector.extract_strided_slice %1 {offsets = [0, 1], sizes = [32, 1], strides = [1, 1]} : vector<32x5xf32> to vector<32x1xf32>
    %66 = vector.broadcast %65 : vector<32x1xf32> to vector<32x8xf32>
    %67 = arith.mulf %64, %66 : vector<32x8xf32>
    %68 = vector.extract_strided_slice %59 {offsets = [8, 0], sizes = [32, 8], strides = [1, 1]} : vector<48x8xf32> to vector<32x8xf32>
    %69 = vector.extract_strided_slice %59 {offsets = [9, 0], sizes = [32, 8], strides = [1, 1]} : vector<48x8xf32> to vector<32x8xf32>
    %70 = vector.extract_strided_slice %1 {offsets = [0, 3], sizes = [32, 1], strides = [1, 1]} : vector<32x5xf32> to vector<32x1xf32>
    %71 = vector.broadcast %70 : vector<32x1xf32> to vector<32x8xf32>
    %72 = arith.mulf %69, %71 : vector<32x8xf32>
    %73 = vector.extract_strided_slice %59 {offsets = [10, 0], sizes = [32, 8], strides = [1, 1]} : vector<48x8xf32> to vector<32x8xf32>
    %74 = vector.extract_strided_slice %1 {offsets = [0, 4], sizes = [32, 1], strides = [1, 1]} : vector<32x5xf32> to vector<32x1xf32>
    %75 = vector.broadcast %74 : vector<32x1xf32> to vector<32x8xf32>
    %76 = arith.mulf %73, %75 : vector<32x8xf32>
    %77 = tpu.concatenate %63, %67, %68, %72, %76 in 1 : vector<32x8xf32>, vector<32x8xf32>, vector<32x8xf32>, vector<32x8xf32>, vector<32x8xf32> -> vector<32x40xf32>
    %cst_21 = arith.constant dense<0.000000e+00> : vector<32x8xf32>
    %78 = tpu.matmul %77, %6, %cst_21 {dimension_numbers = #tpu.dot_dimension_numbers<[1], [0], [0], [1], [0, 0, 1, 1], [], []>} : vector<32x40xf32>, vector<40x8xf32>, vector<32x8xf32> -> vector<32x8xf32>
    %79 = vector.broadcast %7 : vector<1x8xf32> to vector<32x8xf32>
    %80 = arith.addf %78, %79 : vector<32x8xf32>
    %81 = arith.addf %32, %80 : vector<32x8xf32>
    %cst_22 = arith.constant 0.000000e+00 : f32
    %82 = vector.broadcast %cst_22 : f32 to vector<32x8xf32>
    %83 = arith.maximumf %81, %82 : vector<32x8xf32>
    %cst_23 = arith.constant 0.000000e+00 : f32
    %84 = vector.broadcast %cst_23 : f32 to vector<32x8xf32>
    %85 = arith.maximumf %83, %84 : vector<32x8xf32>
    %cst_24 = arith.constant 0.000000e+00 : f32
    %86 = vector.broadcast %cst_24 : f32 to vector<8x8xf32>
    %87 = tpu.concatenate %86, %85, %86 in 0 : vector<8x8xf32>, vector<32x8xf32>, vector<8x8xf32> -> vector<48x8xf32>
    %88 = vector.extract_strided_slice %87 {offsets = [6, 0], sizes = [32, 8], strides = [1, 1]} : vector<48x8xf32> to vector<32x8xf32>
    %89 = vector.extract_strided_slice %1 {offsets = [0, 0], sizes = [32, 1], strides = [1, 1]} : vector<32x5xf32> to vector<32x1xf32>
    %90 = vector.broadcast %89 : vector<32x1xf32> to vector<32x8xf32>
    %91 = arith.mulf %88, %90 : vector<32x8xf32>
    %92 = vector.extract_strided_slice %87 {offsets = [7, 0], sizes = [32, 8], strides = [1, 1]} : vector<48x8xf32> to vector<32x8xf32>
    %93 = vector.extract_strided_slice %1 {offsets = [0, 1], sizes = [32, 1], strides = [1, 1]} : vector<32x5xf32> to vector<32x1xf32>
    %94 = vector.broadcast %93 : vector<32x1xf32> to vector<32x8xf32>
    %95 = arith.mulf %92, %94 : vector<32x8xf32>
    %96 = vector.extract_strided_slice %87 {offsets = [8, 0], sizes = [32, 8], strides = [1, 1]} : vector<48x8xf32> to vector<32x8xf32>
    %97 = vector.extract_strided_slice %87 {offsets = [9, 0], sizes = [32, 8], strides = [1, 1]} : vector<48x8xf32> to vector<32x8xf32>
    %98 = vector.extract_strided_slice %1 {offsets = [0, 3], sizes = [32, 1], strides = [1, 1]} : vector<32x5xf32> to vector<32x1xf32>
    %99 = vector.broadcast %98 : vector<32x1xf32> to vector<32x8xf32>
    %100 = arith.mulf %97, %99 : vector<32x8xf32>
    %101 = vector.extract_strided_slice %87 {offsets = [10, 0], sizes = [32, 8], strides = [1, 1]} : vector<48x8xf32> to vector<32x8xf32>
    %102 = vector.extract_strided_slice %1 {offsets = [0, 4], sizes = [32, 1], strides = [1, 1]} : vector<32x5xf32> to vector<32x1xf32>
    %103 = vector.broadcast %102 : vector<32x1xf32> to vector<32x8xf32>
    %104 = arith.mulf %101, %103 : vector<32x8xf32>
    %105 = tpu.concatenate %91, %95, %96, %100, %104 in 1 : vector<32x8xf32>, vector<32x8xf32>, vector<32x8xf32>, vector<32x8xf32>, vector<32x8xf32> -> vector<32x40xf32>
    %cst_25 = arith.constant dense<0.000000e+00> : vector<32x8xf32>
    %106 = tpu.matmul %105, %4, %cst_25 {dimension_numbers = #tpu.dot_dimension_numbers<[1], [0], [0], [1], [0, 0, 1, 1], [], []>} : vector<32x40xf32>, vector<40x8xf32>, vector<32x8xf32> -> vector<32x8xf32>
    %107 = vector.broadcast %5 : vector<1x8xf32> to vector<32x8xf32>
    %108 = arith.addf %106, %107 : vector<32x8xf32>
    %cst_26 = arith.constant 0.000000e+00 : f32
    %109 = vector.broadcast %cst_26 : f32 to vector<32x8xf32>
    %110 = arith.maximumf %108, %109 : vector<32x8xf32>
    %cst_27 = arith.constant 0.000000e+00 : f32
    %111 = vector.broadcast %cst_27 : f32 to vector<8x8xf32>
    %112 = tpu.concatenate %111, %110, %111 in 0 : vector<8x8xf32>, vector<32x8xf32>, vector<8x8xf32> -> vector<48x8xf32>
    %113 = vector.extract_strided_slice %112 {offsets = [6, 0], sizes = [32, 8], strides = [1, 1]} : vector<48x8xf32> to vector<32x8xf32>
    %114 = vector.extract_strided_slice %1 {offsets = [0, 0], sizes = [32, 1], strides = [1, 1]} : vector<32x5xf32> to vector<32x1xf32>
    %115 = vector.broadcast %114 : vector<32x1xf32> to vector<32x8xf32>
    %116 = arith.mulf %113, %115 : vector<32x8xf32>
    %117 = vector.extract_strided_slice %112 {offsets = [7, 0], sizes = [32, 8], strides = [1, 1]} : vector<48x8xf32> to vector<32x8xf32>
    %118 = vector.extract_strided_slice %1 {offsets = [0, 1], sizes = [32, 1], strides = [1, 1]} : vector<32x5xf32> to vector<32x1xf32>
    %119 = vector.broadcast %118 : vector<32x1xf32> to vector<32x8xf32>
    %120 = arith.mulf %117, %119 : vector<32x8xf32>
    %121 = vector.extract_strided_slice %112 {offsets = [8, 0], sizes = [32, 8], strides = [1, 1]} : vector<48x8xf32> to vector<32x8xf32>
    %122 = vector.extract_strided_slice %112 {offsets = [9, 0], sizes = [32, 8], strides = [1, 1]} : vector<48x8xf32> to vector<32x8xf32>
    %123 = vector.extract_strided_slice %1 {offsets = [0, 3], sizes = [32, 1], strides = [1, 1]} : vector<32x5xf32> to vector<32x1xf32>
    %124 = vector.broadcast %123 : vector<32x1xf32> to vector<32x8xf32>
    %125 = arith.mulf %122, %124 : vector<32x8xf32>
    %126 = vector.extract_strided_slice %112 {offsets = [10, 0], sizes = [32, 8], strides = [1, 1]} : vector<48x8xf32> to vector<32x8xf32>
    %127 = vector.extract_strided_slice %1 {offsets = [0, 4], sizes = [32, 1], strides = [1, 1]} : vector<32x5xf32> to vector<32x1xf32>
    %128 = vector.broadcast %127 : vector<32x1xf32> to vector<32x8xf32>
    %129 = arith.mulf %126, %128 : vector<32x8xf32>
    %130 = tpu.concatenate %116, %120, %121, %125, %129 in 1 : vector<32x8xf32>, vector<32x8xf32>, vector<32x8xf32>, vector<32x8xf32>, vector<32x8xf32> -> vector<32x40xf32>
    %cst_28 = arith.constant dense<0.000000e+00> : vector<32x8xf32>
    %131 = tpu.matmul %130, %6, %cst_28 {dimension_numbers = #tpu.dot_dimension_numbers<[1], [0], [0], [1], [0, 0, 1, 1], [], []>} : vector<32x40xf32>, vector<40x8xf32>, vector<32x8xf32> -> vector<32x8xf32>
    %132 = vector.broadcast %7 : vector<1x8xf32> to vector<32x8xf32>
    %133 = arith.addf %131, %132 : vector<32x8xf32>
    %134 = arith.addf %85, %133 : vector<32x8xf32>
    %cst_29 = arith.constant 0.000000e+00 : f32
    %135 = vector.broadcast %cst_29 : f32 to vector<32x8xf32>
    %136 = arith.maximumf %134, %135 : vector<32x8xf32>
    %cst_30 = arith.constant 0.000000e+00 : f32
    %137 = vector.broadcast %cst_30 : f32 to vector<32x8xf32>
    %138 = arith.maximumf %136, %137 : vector<32x8xf32>
    %cst_31 = arith.constant 0.000000e+00 : f32
    %139 = vector.broadcast %cst_31 : f32 to vector<8x8xf32>
    %140 = tpu.concatenate %139, %138, %139 in 0 : vector<8x8xf32>, vector<32x8xf32>, vector<8x8xf32> -> vector<48x8xf32>
    %141 = vector.extract_strided_slice %140 {offsets = [6, 0], sizes = [32, 8], strides = [1, 1]} : vector<48x8xf32> to vector<32x8xf32>
    %142 = vector.extract_strided_slice %1 {offsets = [0, 0], sizes = [32, 1], strides = [1, 1]} : vector<32x5xf32> to vector<32x1xf32>
    %143 = vector.broadcast %142 : vector<32x1xf32> to vector<32x8xf32>
    %144 = arith.mulf %141, %143 : vector<32x8xf32>
    %145 = vector.extract_strided_slice %140 {offsets = [7, 0], sizes = [32, 8], strides = [1, 1]} : vector<48x8xf32> to vector<32x8xf32>
    %146 = vector.extract_strided_slice %1 {offsets = [0, 1], sizes = [32, 1], strides = [1, 1]} : vector<32x5xf32> to vector<32x1xf32>
    %147 = vector.broadcast %146 : vector<32x1xf32> to vector<32x8xf32>
    %148 = arith.mulf %145, %147 : vector<32x8xf32>
    %149 = vector.extract_strided_slice %140 {offsets = [8, 0], sizes = [32, 8], strides = [1, 1]} : vector<48x8xf32> to vector<32x8xf32>
    %150 = vector.extract_strided_slice %140 {offsets = [9, 0], sizes = [32, 8], strides = [1, 1]} : vector<48x8xf32> to vector<32x8xf32>
    %151 = vector.extract_strided_slice %1 {offsets = [0, 3], sizes = [32, 1], strides = [1, 1]} : vector<32x5xf32> to vector<32x1xf32>
    %152 = vector.broadcast %151 : vector<32x1xf32> to vector<32x8xf32>
    %153 = arith.mulf %150, %152 : vector<32x8xf32>
    %154 = vector.extract_strided_slice %140 {offsets = [10, 0], sizes = [32, 8], strides = [1, 1]} : vector<48x8xf32> to vector<32x8xf32>
    %155 = vector.extract_strided_slice %1 {offsets = [0, 4], sizes = [32, 1], strides = [1, 1]} : vector<32x5xf32> to vector<32x1xf32>
    %156 = vector.broadcast %155 : vector<32x1xf32> to vector<32x8xf32>
    %157 = arith.mulf %154, %156 : vector<32x8xf32>
    %158 = tpu.concatenate %144, %148, %149, %153, %157 in 1 : vector<32x8xf32>, vector<32x8xf32>, vector<32x8xf32>, vector<32x8xf32>, vector<32x8xf32> -> vector<32x40xf32>
    %cst_32 = arith.constant dense<0.000000e+00> : vector<32x8xf32>
    %159 = tpu.matmul %158, %4, %cst_32 {dimension_numbers = #tpu.dot_dimension_numbers<[1], [0], [0], [1], [0, 0, 1, 1], [], []>} : vector<32x40xf32>, vector<40x8xf32>, vector<32x8xf32> -> vector<32x8xf32>
    %160 = vector.broadcast %5 : vector<1x8xf32> to vector<32x8xf32>
    %161 = arith.addf %159, %160 : vector<32x8xf32>
    %cst_33 = arith.constant 0.000000e+00 : f32
    %162 = vector.broadcast %cst_33 : f32 to vector<32x8xf32>
    %163 = arith.maximumf %161, %162 : vector<32x8xf32>
    %cst_34 = arith.constant 0.000000e+00 : f32
    %164 = vector.broadcast %cst_34 : f32 to vector<8x8xf32>
    %165 = tpu.concatenate %164, %163, %164 in 0 : vector<8x8xf32>, vector<32x8xf32>, vector<8x8xf32> -> vector<48x8xf32>
    %166 = vector.extract_strided_slice %165 {offsets = [6, 0], sizes = [32, 8], strides = [1, 1]} : vector<48x8xf32> to vector<32x8xf32>
    %167 = vector.extract_strided_slice %1 {offsets = [0, 0], sizes = [32, 1], strides = [1, 1]} : vector<32x5xf32> to vector<32x1xf32>
    %168 = vector.broadcast %167 : vector<32x1xf32> to vector<32x8xf32>
    %169 = arith.mulf %166, %168 : vector<32x8xf32>
    %170 = vector.extract_strided_slice %165 {offsets = [7, 0], sizes = [32, 8], strides = [1, 1]} : vector<48x8xf32> to vector<32x8xf32>
    %171 = vector.extract_strided_slice %1 {offsets = [0, 1], sizes = [32, 1], strides = [1, 1]} : vector<32x5xf32> to vector<32x1xf32>
    %172 = vector.broadcast %171 : vector<32x1xf32> to vector<32x8xf32>
    %173 = arith.mulf %170, %172 : vector<32x8xf32>
    %174 = vector.extract_strided_slice %165 {offsets = [8, 0], sizes = [32, 8], strides = [1, 1]} : vector<48x8xf32> to vector<32x8xf32>
    %175 = vector.extract_strided_slice %165 {offsets = [9, 0], sizes = [32, 8], strides = [1, 1]} : vector<48x8xf32> to vector<32x8xf32>
    %176 = vector.extract_strided_slice %1 {offsets = [0, 3], sizes = [32, 1], strides = [1, 1]} : vector<32x5xf32> to vector<32x1xf32>
    %177 = vector.broadcast %176 : vector<32x1xf32> to vector<32x8xf32>
    %178 = arith.mulf %175, %177 : vector<32x8xf32>
    %179 = vector.extract_strided_slice %165 {offsets = [10, 0], sizes = [32, 8], strides = [1, 1]} : vector<48x8xf32> to vector<32x8xf32>
    %180 = vector.extract_strided_slice %1 {offsets = [0, 4], sizes = [32, 1], strides = [1, 1]} : vector<32x5xf32> to vector<32x1xf32>
    %181 = vector.broadcast %180 : vector<32x1xf32> to vector<32x8xf32>
    %182 = arith.mulf %179, %181 : vector<32x8xf32>
    %183 = tpu.concatenate %169, %173, %174, %178, %182 in 1 : vector<32x8xf32>, vector<32x8xf32>, vector<32x8xf32>, vector<32x8xf32>, vector<32x8xf32> -> vector<32x40xf32>
    %cst_35 = arith.constant dense<0.000000e+00> : vector<32x8xf32>
    %184 = tpu.matmul %183, %6, %cst_35 {dimension_numbers = #tpu.dot_dimension_numbers<[1], [0], [0], [1], [0, 0, 1, 1], [], []>} : vector<32x40xf32>, vector<40x8xf32>, vector<32x8xf32> -> vector<32x8xf32>
    %185 = vector.broadcast %7 : vector<1x8xf32> to vector<32x8xf32>
    %186 = arith.addf %184, %185 : vector<32x8xf32>
    %187 = arith.addf %138, %186 : vector<32x8xf32>
    %cst_36 = arith.constant 0.000000e+00 : f32
    %188 = vector.broadcast %cst_36 : f32 to vector<32x8xf32>
    %189 = arith.maximumf %187, %188 : vector<32x8xf32>
    %cst_37 = arith.constant 0.000000e+00 : f32
    %190 = vector.broadcast %cst_37 : f32 to vector<32x8xf32>
    %191 = arith.maximumf %189, %190 : vector<32x8xf32>
    %cst_38 = arith.constant 0.000000e+00 : f32
    %192 = vector.broadcast %cst_38 : f32 to vector<8x8xf32>
    %193 = tpu.concatenate %192, %191, %192 in 0 : vector<8x8xf32>, vector<32x8xf32>, vector<8x8xf32> -> vector<48x8xf32>
    %194 = vector.extract_strided_slice %193 {offsets = [6, 0], sizes = [32, 8], strides = [1, 1]} : vector<48x8xf32> to vector<32x8xf32>
    %195 = vector.extract_strided_slice %1 {offsets = [0, 0], sizes = [32, 1], strides = [1, 1]} : vector<32x5xf32> to vector<32x1xf32>
    %196 = vector.broadcast %195 : vector<32x1xf32> to vector<32x8xf32>
    %197 = arith.mulf %194, %196 : vector<32x8xf32>
    %198 = vector.extract_strided_slice %193 {offsets = [7, 0], sizes = [32, 8], strides = [1, 1]} : vector<48x8xf32> to vector<32x8xf32>
    %199 = vector.extract_strided_slice %1 {offsets = [0, 1], sizes = [32, 1], strides = [1, 1]} : vector<32x5xf32> to vector<32x1xf32>
    %200 = vector.broadcast %199 : vector<32x1xf32> to vector<32x8xf32>
    %201 = arith.mulf %198, %200 : vector<32x8xf32>
    %202 = vector.extract_strided_slice %193 {offsets = [8, 0], sizes = [32, 8], strides = [1, 1]} : vector<48x8xf32> to vector<32x8xf32>
    %203 = vector.extract_strided_slice %193 {offsets = [9, 0], sizes = [32, 8], strides = [1, 1]} : vector<48x8xf32> to vector<32x8xf32>
    %204 = vector.extract_strided_slice %1 {offsets = [0, 3], sizes = [32, 1], strides = [1, 1]} : vector<32x5xf32> to vector<32x1xf32>
    %205 = vector.broadcast %204 : vector<32x1xf32> to vector<32x8xf32>
    %206 = arith.mulf %203, %205 : vector<32x8xf32>
    %207 = vector.extract_strided_slice %193 {offsets = [10, 0], sizes = [32, 8], strides = [1, 1]} : vector<48x8xf32> to vector<32x8xf32>
    %208 = vector.extract_strided_slice %1 {offsets = [0, 4], sizes = [32, 1], strides = [1, 1]} : vector<32x5xf32> to vector<32x1xf32>
    %209 = vector.broadcast %208 : vector<32x1xf32> to vector<32x8xf32>
    %210 = arith.mulf %207, %209 : vector<32x8xf32>
    %211 = tpu.concatenate %197, %201, %202, %206, %210 in 1 : vector<32x8xf32>, vector<32x8xf32>, vector<32x8xf32>, vector<32x8xf32>, vector<32x8xf32> -> vector<32x40xf32>
    %cst_39 = arith.constant dense<0.000000e+00> : vector<32x8xf32>
    %212 = tpu.matmul %211, %4, %cst_39 {dimension_numbers = #tpu.dot_dimension_numbers<[1], [0], [0], [1], [0, 0, 1, 1], [], []>} : vector<32x40xf32>, vector<40x8xf32>, vector<32x8xf32> -> vector<32x8xf32>
    %213 = vector.broadcast %5 : vector<1x8xf32> to vector<32x8xf32>
    %214 = arith.addf %212, %213 : vector<32x8xf32>
    %cst_40 = arith.constant 0.000000e+00 : f32
    %215 = vector.broadcast %cst_40 : f32 to vector<32x8xf32>
    %216 = arith.maximumf %214, %215 : vector<32x8xf32>
    %cst_41 = arith.constant 0.000000e+00 : f32
    %217 = vector.broadcast %cst_41 : f32 to vector<8x8xf32>
    %218 = tpu.concatenate %217, %216, %217 in 0 : vector<8x8xf32>, vector<32x8xf32>, vector<8x8xf32> -> vector<48x8xf32>
    %219 = vector.extract_strided_slice %218 {offsets = [6, 0], sizes = [32, 8], strides = [1, 1]} : vector<48x8xf32> to vector<32x8xf32>
    %220 = vector.extract_strided_slice %1 {offsets = [0, 0], sizes = [32, 1], strides = [1, 1]} : vector<32x5xf32> to vector<32x1xf32>
    %221 = vector.broadcast %220 : vector<32x1xf32> to vector<32x8xf32>
    %222 = arith.mulf %219, %221 : vector<32x8xf32>
    %223 = vector.extract_strided_slice %218 {offsets = [7, 0], sizes = [32, 8], strides = [1, 1]} : vector<48x8xf32> to vector<32x8xf32>
    %224 = vector.extract_strided_slice %1 {offsets = [0, 1], sizes = [32, 1], strides = [1, 1]} : vector<32x5xf32> to vector<32x1xf32>
    %225 = vector.broadcast %224 : vector<32x1xf32> to vector<32x8xf32>
    %226 = arith.mulf %223, %225 : vector<32x8xf32>
    %227 = vector.extract_strided_slice %218 {offsets = [8, 0], sizes = [32, 8], strides = [1, 1]} : vector<48x8xf32> to vector<32x8xf32>
    %228 = vector.extract_strided_slice %218 {offsets = [9, 0], sizes = [32, 8], strides = [1, 1]} : vector<48x8xf32> to vector<32x8xf32>
    %229 = vector.extract_strided_slice %1 {offsets = [0, 3], sizes = [32, 1], strides = [1, 1]} : vector<32x5xf32> to vector<32x1xf32>
    %230 = vector.broadcast %229 : vector<32x1xf32> to vector<32x8xf32>
    %231 = arith.mulf %228, %230 : vector<32x8xf32>
    %232 = vector.extract_strided_slice %218 {offsets = [10, 0], sizes = [32, 8], strides = [1, 1]} : vector<48x8xf32> to vector<32x8xf32>
    %233 = vector.extract_strided_slice %1 {offsets = [0, 4], sizes = [32, 1], strides = [1, 1]} : vector<32x5xf32> to vector<32x1xf32>
    %234 = vector.broadcast %233 : vector<32x1xf32> to vector<32x8xf32>
    %235 = arith.mulf %232, %234 : vector<32x8xf32>
    %236 = tpu.concatenate %222, %226, %227, %231, %235 in 1 : vector<32x8xf32>, vector<32x8xf32>, vector<32x8xf32>, vector<32x8xf32>, vector<32x8xf32> -> vector<32x40xf32>
    %cst_42 = arith.constant dense<0.000000e+00> : vector<32x8xf32>
    %237 = tpu.matmul %236, %6, %cst_42 {dimension_numbers = #tpu.dot_dimension_numbers<[1], [0], [0], [1], [0, 0, 1, 1], [], []>} : vector<32x40xf32>, vector<40x8xf32>, vector<32x8xf32> -> vector<32x8xf32>
    %238 = vector.broadcast %7 : vector<1x8xf32> to vector<32x8xf32>
    %239 = arith.addf %237, %238 : vector<32x8xf32>
    %240 = arith.addf %191, %239 : vector<32x8xf32>
    %cst_43 = arith.constant 0.000000e+00 : f32
    %241 = vector.broadcast %cst_43 : f32 to vector<32x8xf32>
    %242 = arith.maximumf %240, %241 : vector<32x8xf32>
    %243 = tpu.concatenate %242, %242, %242, %242, %242, %242, %242, %242, %242, %242, %242, %242, %242, %242, %242, %242 in 1 : vector<32x8xf32>, vector<32x8xf32>, vector<32x8xf32>, vector<32x8xf32>, vector<32x8xf32>, vector<32x8xf32>, vector<32x8xf32>, vector<32x8xf32>, vector<32x8xf32>, vector<32x8xf32>, vector<32x8xf32>, vector<32x8xf32>, vector<32x8xf32>, vector<32x8xf32>, vector<32x8xf32>, vector<32x8xf32> -> vector<32x128xf32>
    %c0_44 = arith.constant 0 : index
    %c0_45 = arith.constant 0 : index
    %244 = vector.load %arg2[%c0_44, %c0_45] : memref<32x128xf32, #tpu.memory_space<vmem>>, vector<32x128xf32>
    %245 = arith.mulf %243, %244 : vector<32x128xf32>
    %c0_46 = arith.constant 0 : index
    %c0_47 = arith.constant 0 : index
    %246 = vector.load %arg3[%c0_46, %c0_47] : memref<2x32xf32, #tpu.memory_space<vmem>>, vector<2x32xf32>
    %cst_48 = arith.constant dense<0.000000e+00> : vector<2x128xf32>
    %247 = tpu.matmul %246, %245, %cst_48 {dimension_numbers = #tpu.dot_dimension_numbers<[1], [0], [0], [1], [0, 0, 1, 1], [], []>} : vector<2x32xf32>, vector<32x128xf32>, vector<2x128xf32> -> vector<2x128xf32>
    %c0_49 = arith.constant 0 : index
    %c0_50 = arith.constant 0 : index
    %248 = vector.load %arg10[%c0_49, %c0_50] : memref<128x14xf32, #tpu.memory_space<vmem>>, vector<128x14xf32>
    %cst_51 = arith.constant dense<0.000000e+00> : vector<2x14xf32>
    %249 = tpu.matmul %247, %248, %cst_51 {dimension_numbers = #tpu.dot_dimension_numbers<[1], [0], [0], [1], [0, 0, 1, 1], [], []>} : vector<2x128xf32>, vector<128x14xf32>, vector<2x14xf32> -> vector<2x14xf32>
    %c0_52 = arith.constant 0 : index
    %c0_53 = arith.constant 0 : index
    %250 = vector.load %arg11[%c0_52, %c0_53] : memref<1x14xf32, #tpu.memory_space<vmem>>, vector<1x14xf32>
    %251 = vector.broadcast %250 : vector<1x14xf32> to vector<2x14xf32>
    %252 = arith.addf %249, %251 : vector<2x14xf32>
    %c0_54 = arith.constant 0 : index
    %c0_55 = arith.constant 0 : index
    %253 = vector.load %arg12[%c0_54, %c0_55] : memref<2x14xf32, #tpu.memory_space<vmem>>, vector<2x14xf32>
    tpu.vector_store %arg12[%c0_54, %c0_55], %252 {strides = array<i32>} : memref<2x14xf32, #tpu.memory_space<vmem>>, vector<2x14xf32>,
    return
  }
}

</mosaic_0001>

<bundles_post_ra>
// kernel: tpu_custom_call.1
= control target key start
LH: loop header
LB: loop body
LE: loop exit
PB: predicated region body
PF: predicated region fallthrough
CT: control target
= control target key end

     0   :  { %v3366_v2 = vmov 1   ;;  %s5068_s0 = inlined_call_operand.vmem [shape: f32[32,4], index: 0, kind: input, shape index: {}]   ;;  %s5069_s1 = inlined_call_operand.vmem [shape: f32[32,5], index: 1, kind: input, shape index: {}]   ;;  %s5070_s2 = inlined_call_operand.vmem [shape: f32[32,128], index: 2, kind: input, shape index: {}]   ;;  %s5071_s3 = inlined_call_operand.vmem [shape: f32[2,32], index: 3, kind: input, shape index: {}]   ;;  %s5072_s4 = inlined_call_operand.vmem [shape: f32[20,8], index: 4, kind: input, shape index: {}]   ;;  %s5073_s5 = inlined_call_operand.vmem [shape: f32[1,8], index: 5, kind: input, shape index: {}]   ;;  %s5074_s6 = inlined_call_operand.vmem [shape: f32[40,8], index: 6, kind: input, shape index: {}]   ;;  %s5075_s7 = inlined_call_operand.vmem [shape: f32[1,8], index: 7, kind: input, shape index: {}]   ;;  %s5076_s8 = inlined_call_operand.vmem [shape: f32[40,8], index: 8, kind: input, shape index: {}]   ;;  %s5077_s9 = inlined_call_operand.vmem [shape: f32[1,8], index: 9, kind: input, shape index: {}]   ;;  %s5078_s10 = inlined_call_operand.vmem [shape: f32[128,14], index: 10, kind: input, shape index: {}]   ;;  %s5079_s11 = inlined_call_operand.vmem [shape: f32[1,14], index: 11, kind: input, shape index: {}]   ;;  %s5080_s12 = inlined_call_operand.hbm [shape: f32[2,14], index: 12, kind: output, shape index: {}]  }
   0x1   :  { %v48_v0 = vld [vmem:[%s5069_s1 + $0x10] sm:$0xff]  ;;  %v46_v1 = vld [vmem:[%s5069_s1] sm:$0xff]  ;;  %3324 = vset.pattern.permute.xlu1 %v3366_v2  ;;  %3323 = vset.pattern.permute.xlu0 %v3366_v2 }
   0x2   :  { %107 = vperm.xlu1 %3324, %v48_v0   ;;  %101 = vperm.xlu0 %3323, %v46_v1  }
   0x3   :  { %17 = vsyncpa [#allocation3], 0  ;;  %v49_v3 = vld [vmem:[%s5069_s1 + $0x18] sm:$0xff]  ;;  %v47_v4 = vld [vmem:[%s5069_s1 + $0x8] sm:$0xff]  ;;  %v3367_v5 = vmov 3   ;;  %v3368_v6 = vmov 4  }
   0x4   :  { %v3470_v7 = vld [vmem:[%s5068_s0] sm:$0xff]  ;;  %v3475_v8 = vld [vmem:[%s5068_s0 + $0x8] sm:$0xff]  ;;  %v3369_v9 = vmov 0   ;;  %v3482_v12 = vld [vmem:[%s5068_s0 + $0x10] sm:$0xff]  ;;  %vm82_vm0 = vcmask 1045504   ;;  %s3370_s18 = smov 8  }
   0x5   :  { %v223_v10 = vrot.slane %v3470_v7, 2  ;;  %v224_v11 = vrot.slane %v3475_v8, 2  ;;  %v3487_v13 = vld [vmem:[%s5068_s0 + $0x18] sm:$0xff]  ;;  %v226_v15 = vrot.slane %v3482_v12, 2  ;;  %vm112_vm1 = vcmask 1046528   ;;  %s3371_s0 = smov 16  }
   0x6   :  { %110 = vperm.xlu1 %3324, %v49_v3   ;;  %104 = vperm.xlu0 %3323, %v47_v4   ;;  %v228_v16 = vrot.slane %v3487_v13, 2  ;;  %vm142_vm2 = vcmask 1040384   ;;  %s3372_s19 = smov 4   ;;  %s3373_s20 = smov 12   ;;  %vm172_vm3 = vcmask 1041408   ;;  %vm250_vm4 = vcmask 1044480  }
   0x7   :  { %v225_v14 = vsel %vm82_vm0, %v223_v10, %v224_v11  ;;  %v227_v18 = vsel %vm82_vm0, %v224_v11, %v226_v15  ;;  %vm280_vm5 = vcmask 1043456   ;;  %vm305_vm6 = vcmask 31744   ;;  %s3375_s28 = smov 24   ;;  %s3378_s21 = smov 48  }
   0x8   :  { %v229_v17 = vsel %vm82_vm0, %v226_v15, %v228_v16  ;;  %vm311_vm7 = vcmask 64512   ;;  %vm317_vm8 = vcmask 97280   ;;  %vm323_vm9 = vcmask 130048   ;;  %s3379_s22 = smov 56   ;;  %s3380_s23 = smov 64  }
   0x9   :  { %vm349_vm10 = vcmask 162816   ;;  %vm583_vm11 = vcmask 195584   ;;  %vm589_vm12 = vcmask 261120   ;;  %vm615_vm13 = vcmask 326656   ;;  %s3381_s24 = smov 72   ;;  %s3382_s25 = smov 80  }
   0xa   :  { %3325 = vset.pattern.permute.xlu1 %v3367_v5  ;;  %3326 = vset.pattern.permute.xlu0 %v3368_v6  ;;  %s3383_s26 = smov 88   ;;  %vm3388_vm14 = vmmov 0   ;;  %vm2729_vm15 = vcmask 392192  }
   0xb   :  { %134 = vperm.xlu1 %3325, %v47_v4   ;;  %161 = vperm.xlu0 %3326, %v46_v1  }
   0xf   :  { %137 = vperm.xlu1 %3325, %v48_v0   ;;  %3327 = vset.pattern.permute.xlu0 %v3367_v5 }
  0x10   :  { %131 = vperm.xlu0 %3327, %v46_v1  }
  0x13   :  { %3328 = vset.pattern.permute.xlu1 %v3368_v6 }
  0x14   :  { %164 = vperm.xlu1 %3328, %v47_v4   ;;  %140 = vperm.xlu0 %3327, %v49_v3  }
  0x18   :  { %167 = vperm.xlu1 %3328, %v48_v0   ;;  %3330 = vset.pattern.permute.xlu0 %v3369_v9 }
  0x19   :  { %72 = vperm.xlu0 %3330, %v47_v4  }
  0x1c   :  { %170 = vperm.xlu1 %3328, %v49_v3  }
  0x1d   :  { %232 = vrot.lane.b32.xlu0 %v225_v14, %s3370_s18 }
  0x1e   :  { %3331 = vset.pattern.permute.xlu0 %v3368_v6 }
  0x20   :  { %3329 = vset.pattern.permute.xlu1 %v3369_v9 }
  0x21   :  { %68 = vperm.xlu1 %3329, %v46_v1   ;;  %236 = vrot.lane.b32.xlu0 %v229_v17, %s3370_s18 }
  0x25   :  { %76 = vperm.xlu1 %3329, %v48_v0  }
  0x29   :  { %80 = vperm.xlu1 %3329, %v49_v3   ;;  %v52_v3 = vld [vmem:[%s5072_s4 + $0x10] sm:$0xf] }
  0x2a   :  { %3113 = vmatprep.subr.msk.mxu1 %vm280_vm5, %v52_v3 }
  0x2b   :  { %3114 = vmatpush3.msk.msra.mxu1 %vm280_vm5, %v52_v3 }
  0x2d   :  { %230 = vrot.lane.b32.xlu1 %v223_v10, %s3370_s18 }
  0x31   :  { %234 = vrot.lane.b32.xlu1 %v227_v18, %s3370_s18 }
  0x35   :  { %238 = vrot.lane.b32.xlu1 %v228_v16, %s3370_s18  ;;  %v51_v16 = vld [vmem:[%s5072_s4 + $0x8] sm:$0xff] }
  0x36   :  { %3115 = vmatprep.subr.mxu1 %v51_v16 }
  0x37   :  { %3116 = vmatpush3.msra.mxu1 %v51_v16 }
  0x7d   :  { %v108_v19 = vpop.permute.xlu1 %107  ;;  %v102_v20 = vpop.permute.xlu0 %101 }
  0x7e   :  { %v116_v23 = vrot.slane %v108_v19, 1  ;;  %v113_v27 = vrot.slane %v102_v20, 1  ;;  %v50_v19 = vld [vmem:[%s5072_s4] sm:$0xff]  ;;  %s3384_s4 = smov 96  }
  0x7f   :  { %3117 = vmatprep.subr.mxu1 %v50_v19 }
  0x80   :  { %v125_v45 = vmul.f32 0.0, %v113_v27  ;;  %3118 = vmatpush3.msra.mxu1 %v50_v19 }
  0x81   :  { %v105_v21 = vpop.permute.xlu0 %104  ;;  %v111_v22 = vpop.permute.xlu1 %110 }
  0x82   :  { %v114_v24 = vrot.slane %v105_v21, 1  ;;  %v3501_v29 = vrot.slane %v111_v22, 1  ;;  %v3544_v57 = vrot.slane %v125_v45, 1 }
  0x84   :  { %v3504_v30 = vsel %vm112_vm1, %v113_v27, %v114_v24  ;;  %v3507_v31 = vsel %vm112_vm1, %v114_v24, %v116_v23  ;;  %v129_v37 = vmul.f32 %v3501_v29, %v3487_v13  ;;  %v3533_v44 = vsel %vm112_vm1, %v116_v23, %v3501_v29 }
  0x85   :  { %v126_v39 = vmul.f32 %v3504_v30, %v3470_v7  ;;  %v127_v40 = vmul.f32 %v3507_v31, %v3475_v8  ;;  %v128_v54 = vmul.f32 %v3533_v44, %v3482_v12 }
  0x86   :  { %v162_v25 = vpop.permute.xlu0 %161  ;;  %v135_v26 = vpop.permute.xlu1 %134  ;;  %v202_v48 = vrot.slane %v129_v37, 1 }
  0x87   :  { %v3499_v28 = vrot.slane %v162_v25, 6  ;;  %v144_v33 = vrot.slane %v135_v26, 7  ;;  %v196_v50 = vrot.slane %v126_v39, 1  ;;  %v198_v51 = vrot.slane %v127_v40, 1 }
  0x88   :  { %v200_v63 = vrot.slane %v128_v54, 1 }
  0x89   :  { %v3511_v32 = vmul.f32 %v3499_v28, %v3470_v7  ;;  %v199_v59 = vsel %vm112_vm1, %v196_v50, %v198_v51  ;;  %v197_v62 = vsel %vm112_vm1, %v3544_v57, %v196_v50 }
  0x8a   :  { %v138_v34 = vpop.permute.xlu1 %137  ;;  %v201_v11 = vsel %vm112_vm1, %v198_v51, %v200_v63  ;;  %v203_v20 = vsel %vm112_vm1, %v200_v63, %v202_v48 }
  0x8b   :  { %v132_v35 = vpop.permute.xlu0 %131  ;;  %v281_v36 = vrot.slane %v3511_v32, 4  ;;  %v146_v41 = vrot.slane %v138_v34, 7 }
  0x8c   :  { %v3516_v38 = vrot.slane %v132_v35, 7 }
  0x8d   :  { %290 = vrot.lane.b32.xlu1 %v281_v36, %s3371_s0  ;;  %v3541_v55 = vsel %vm142_vm2, %v144_v33, %v146_v41 }
  0x8e   :  { %v155_v42 = vmul.f32 %v3516_v38, %v3470_v7  ;;  %v3529_v43 = vsel %vm142_vm2, %v3516_v38, %v144_v33  ;;  %v157_v0 = vmul.f32 %v3541_v55, %v3482_v12 }
  0x8f   :  { %v165_v46 = vpop.permute.xlu1 %164  ;;  %v141_v47 = vpop.permute.xlu0 %140  ;;  %v156_v52 = vmul.f32 %v3529_v43, %v3475_v8 }
  0x90   :  { %v251_v49 = vrot.slane %v155_v42, 3  ;;  %v148_v53 = vrot.slane %v141_v47, 7  ;;  %v174_v56 = vrot.slane %v165_v46, 6  ;;  %v254_v14 = vrot.slane %v157_v0, 3 }
  0x91   :  { %212 = vrot.lane.b32.xlu1 %v202_v48, %s3372_s19  ;;  %v252_v60 = vrot.slane %v156_v52, 3 }
  0x92   :  { %260 = vrot.lane.b32.xlu0 %v251_v49, %s3373_s20  ;;  %v3548_v61 = vsel %vm142_vm2, %v146_v41, %v148_v53  ;;  %v3557_v1 = vsel %vm172_vm3, %v3499_v28, %v174_v56  ;;  %v159_v5 = vmul.f32 0.0, %v148_v53  ;;  %vm2744_vm2 = vcmask 588800  }
  0x93   :  { %v168_v58 = vpop.permute.xlu1 %167  ;;  %v253_v9 = vsel %vm250_vm4, %v251_v49, %v252_v60  ;;  %v158_v10 = vmul.f32 %v3548_v61, %v3487_v13  ;;  %v186_v15 = vmul.f32 %v3557_v1, %v3475_v8  ;;  %v255_v25 = vsel %vm250_vm4, %v252_v60, %v254_v14 }
  0x94   :  { %v176_v2 = vrot.slane %v168_v58, 6  ;;  %v3586_v21 = vrot.slane %v159_v5, 3  ;;  %v73_v49 = vpop.permute.xlu0 %72 }
  0x95   :  { %206 = vrot.lane.b32.xlu1 %v199_v59, %s3372_s19  ;;  %v256_v23 = vrot.slane %v158_v10, 3  ;;  %v282_v26 = vrot.slane %v186_v15, 4  ;;  %v84_v59 = vrot.slane %v73_v49, 2 }
  0x96   :  { %204 = vrot.lane.b32.xlu0 %v197_v62, %s3372_s19  ;;  %v3576_v17 = vsel %vm172_vm3, %v174_v56, %v176_v2 }
  0x97   :  { %v171_v4 = vpop.permute.xlu1 %170  ;;  %v187_v27 = vmul.f32 %v3576_v17, %v3482_v12  ;;  %v259_v34 = vsel %vm250_vm4, %v256_v23, %v3586_v21  ;;  %v283_v37 = vsel %vm280_vm5, %v281_v36, %v282_v26  ;;  %v257_v42 = vsel %vm250_vm4, %v254_v14, %v256_v23 }
  0x98   :  { %v178_v6 = vrot.slane %v171_v4, 6  ;;  %v233_v50 = vpop.permute.xlu0 %232 }
  0x99   :  { %262 = vrot.lane.b32.xlu1 %v253_v9, %s3373_s20  ;;  %v284_v39 = vrot.slane %v187_v27, 4 }
  0x9a   :  { %v3579_v18 = vsel %vm172_vm3, %v176_v2, %v178_v6  ;;  %208 = vrot.lane.b32.xlu0 %v201_v11, %s3372_s19  ;;  %v189_v22 = vmul.f32 0.0, %v178_v6 }
  0x9b   :  { %v188_v24 = vmul.f32 %v3579_v18, %v3487_v13  ;;  %v285_v41 = vsel %vm280_vm5, %v282_v26, %v284_v39 }
  0x9c   :  { %v3595_v33 = vrot.slane %v189_v22, 4  ;;  %v69_v36 = vpop.permute.xlu1 %68  ;;  %v237_v52 = vpop.permute.xlu0 %236 }
  0x9d   :  { %210 = vrot.lane.b32.xlu1 %v203_v20, %s3372_s19  ;;  %v286_v35 = vrot.slane %v188_v24, 4  ;;  %v83_v56 = vrot.slane %v69_v36, 2 }
  0x9e   :  { %264 = vrot.lane.b32.xlu0 %v255_v25, %s3373_s20 }
  0x9f   :  { %v289_v40 = vsel %vm280_vm5, %v286_v35, %v3595_v33  ;;  %v287_v32 = vsel %vm280_vm5, %v284_v39, %v286_v35  ;;  %v3613_v62 = vmul.f32 0.0, %v83_v56  ;;  %v3618_v3 = vsel %vm82_vm0, %v83_v56, %v84_v59 }
  0xa0   :  { %v77_v45 = vpop.permute.xlu1 %76  ;;  %v96_v9 = vmul.f32 %v3618_v3, %v3470_v7 }
  0xa1   :  { %268 = vrot.lane.b32.xlu1 %v259_v34, %s3373_s20  ;;  %v86_v2 = vrot.slane %v77_v45, 2 }
  0xa2   :  { %292 = vrot.lane.b32.xlu0 %v283_v37, %s3371_s0 }
  0xa3   :  { %v3624_v10 = vsel %vm82_vm0, %v84_v59, %v86_v2 }
  0xa4   :  { %v81_v46 = vpop.permute.xlu1 %80  ;;  %v97_v19 = vmul.f32 %v3624_v10, %v3475_v8 }
  0xa5   :  { %298 = vrot.lane.b32.xlu1 %v289_v40, %s3371_s0  ;;  %v3630_v20 = vrot.slane %v81_v46, 2 }
  0xa6   :  { %294 = vrot.lane.b32.xlu0 %v285_v41, %s3371_s0 }
  0xa7   :  { %v3639_v8 = vsel %vm82_vm0, %v86_v2, %v3630_v20  ;;  %v99_v39 = vmul.f32 %v3630_v20, %v3487_v13 }
  0xa8   :  { %v231_v47 = vpop.permute.xlu1 %230  ;;  %v98_v45 = vmul.f32 %v3639_v8, %v3482_v12 }
  0xaa   :  { %266 = vrot.lane.b32.xlu0 %v257_v42, %s3373_s20 }
  0xac   :  { %v235_v48 = vpop.permute.xlu1 %234 }
  0xae   :  { %296 = vrot.lane.b32.xlu0 %v287_v32, %s3371_s0 }
  0xb0   :  { %v239_v51 = vpop.permute.xlu1 %238 }
  0xff   :  { %v291_v53 = vpop.permute.xlu1 %290 }
 0x103   :  { %v213_v54 = vpop.permute.xlu1 %212 }
 0x104   :  { %v261_v58 = vpop.permute.xlu0 %260  ;;  %v310_v36 = vsel %vm305_vm6, %v99_v39, %v213_v54 }
 0x107   :  { %v207_v60 = vpop.permute.xlu1 %206 }
 0x108   :  { %v205_v63 = vpop.permute.xlu0 %204  ;;  %v307_v11 = vsel %vm305_vm6, %v96_v9, %v207_v60 }
 0x109   :  { %v306_v0 = vsel %vm305_vm6, %v3613_v62, %v205_v63  ;;  %v313_v22 = vsel %vm311_vm7, %v307_v11, %v233_v50  ;;  %v316_v50 = vsel %vm311_vm7, %v310_v36, %v239_v51  ;;  %v2970_v51 = vld [vmem:[%s5073_s5] ss:$0 sm:$0xff]  ;;  %s3374_s5 = smov 32  }
 0x10a   :  { %v312_v6 = vsel %vm311_vm7, %v306_v0, %v231_v47  ;;  %v3701_v36 = vld [vmem:[%s5074_s6 + $0x20] sm:$0xff] }
 0x10b   :  { %v263_v4 = vpop.permute.xlu1 %262  ;;  %v318_v14 = vsel %vm317_vm8, %v312_v6, %v261_v58  ;;  %3125 = vmatprep.subr.mxu1 %v3701_v36 }
 0x10c   :  { %v209_v5 = vpop.permute.xlu0 %208  ;;  %v324_v23 = vsel %vm323_vm9, %v318_v14, %v291_v53  ;;  %v319_v7 = vsel %vm317_vm8, %v313_v22, %v263_v4 }
 0x10d   :  { %v308_v24 = vsel %vm305_vm6, %v97_v19, %v209_v5  ;;  %v340_v35 = vrot.slane %v324_v23, 6 }
 0x10e   :  { %v314_v37 = vsel %vm311_vm7, %v308_v24, %v235_v48 }
 0x10f   :  { %v211_v15 = vpop.permute.xlu1 %210 }
 0x110   :  { %v265_v16 = vpop.permute.xlu0 %264  ;;  %v309_v47 = vsel %vm305_vm6, %v98_v45, %v211_v15  ;;  %vm2764_vm6 = vcmask 850944  }
 0x111   :  { %v320_v40 = vsel %vm317_vm8, %v314_v37, %v265_v16  ;;  %v315_v54 = vsel %vm311_vm7, %v309_v47, %v237_v52 }
 0x113   :  { %v269_v27 = vpop.permute.xlu1 %268 }
 0x114   :  { %v293_v25 = vpop.permute.xlu0 %292  ;;  %v322_v53 = vsel %vm317_vm8, %v316_v50, %v269_v27 }
 0x115   :  { %v325_v26 = vsel %vm323_vm9, %v319_v7, %v293_v25 }
 0x116   :  { %v341_v34 = vrot.slane %v325_v26, 6 }
 0x117   :  { %v299_v48 = vpop.permute.xlu1 %298 }
 0x118   :  { %v295_v41 = vpop.permute.xlu0 %294  ;;  %v342_v42 = vsel %vm172_vm3, %v340_v35, %v341_v34  ;;  %v328_v56 = vsel %vm323_vm9, %v322_v53, %v299_v48  ;;  %v3717_v53 = vld [vmem:[%s5074_s6 + $0x18] sm:$0xff] }
 0x119   :  { %v326_v32 = vsel %vm323_vm9, %v320_v40, %v295_v41  ;;  %3119 = vmatprep.mubr.msk.f32.mxu1 %vm349_vm10, %v342_v42  ;;  %v347_v60 = vrot.slane %v328_v56, 6  ;;  %v3722_v56 = vld [vmem:[%s5074_s6 + $0x10] sm:$0xff] }
 0x11a   :  { %v343_v46 = vrot.slane %v326_v32, 6 }
 0x11c   :  { %v267_v49 = vpop.permute.xlu0 %266  ;;  %v344_v13 = vsel %vm172_vm3, %v341_v34, %v343_v46 }
 0x11d   :  { %3120 = vmatmul.mubr.msk.f32.vlgmr.msra.gmra.mxu1 %vm349_vm10, %v344_v13  ;;  %v321_v58 = vsel %vm317_vm8, %v315_v54, %v267_v49  ;;  %vm2769_vm8 = vcmask 916480  }
 0x11e   :  { %3126 = vmatpush3.msra.mxu1 %v3701_v36 }
 0x11f   :  { %3127 = vmatprep.subr.mxu1 %v3717_v53 }
 0x120   :  { %v297_v12 = vpop.permute.xlu0 %296  ;;  %3128 = vmatpush3.msra.mxu1 %v3717_v53 }
 0x121   :  { %v327_v59 = vsel %vm323_vm9, %v321_v58, %v297_v12  ;;  %3129 = vmatprep.subr.mxu1 %v3722_v56 }
 0x122   :  { %v345_v63 = vrot.slane %v327_v59, 6  ;;  %3130 = vmatpush3.msra.mxu1 %v3722_v56 }
 0x124   :  { %v346_v0 = vsel %vm172_vm3, %v343_v46, %v345_v63  ;;  %v348_v2 = vsel %vm172_vm3, %v345_v63, %v347_v60 }
 0x125   :  { %3122 = vmatprep.mubr.msk.f32.mxu1 %vm349_vm10, %v346_v0  ;;  %v3739_v0 = vld [vmem:[%s5074_s6 + $0x8] sm:$0xff] }
 0x126   :  { %3123 = vmatmul.mubr.msk.f32.gmra.mxu1 %vm349_vm10, %v348_v2  ;;  %3131 = vmatprep.subr.mxu1 %v3739_v0  ;;  %vm2774_vm10 = vcmask 982016  }
 0x127   :  { %3132 = vmatpush3.msra.mxu1 %v3739_v0 }
 0x1dd   :  { %v3121_v52 = vpop.f32.mrf.mxu1 }
 0x1de   :  { %v433_v4 = vadd.f32 %v3121_v52, %v2970_v51 }
 0x1df   :  { %v427_v5 = vpop.f32.mrf.mxu1 }
 0x1e0   :  { %v3667_v6 = vmax.f32 %v433_v4, 0.0  ;;  %v428_v9 = vadd.f32 %v2970_v51, %v427_v5 }
 0x1e2   :  { %v3669_v11 = vmax.f32 %v428_v9, 0.0  ;;  %v498_v15 = vrot.slane %v3667_v6, 2  ;;  %v455_v40 = vmul.f32 %v3667_v6, %v3507_v31  ;;  %v463_v41 = vmul.f32 %v3667_v6, %v3557_v1 }
 0x1e3   :  { %v459_v46 = vmul.f32 %v3667_v6, %v3529_v43 }
 0x1e4   :  { %v497_v14 = vrot.slane %v3669_v11, 2  ;;  %v462_v16 = vmul.f32 %v3669_v11, %v3499_v28  ;;  %v458_v19 = vmul.f32 %v3669_v11, %v3516_v38  ;;  %v454_v7 = vmul.f32 %v3669_v11, %v3504_v30 }
 0x1e5   :  { %v472_v45 = vrot.slane %v455_v40, 1  ;;  %v551_v47 = vrot.slane %v463_v41, 4  ;;  %v524_v54 = vrot.slane %v459_v46, 3 }
 0x1e6   :  { %v3124_v22 = vpop.f32.mrf.mxu1  ;;  %504 = vrot.lane.b32.xlu1 %v497_v14, %s3371_s0  ;;  %v499_v23 = vsel %vm82_vm0, %v497_v14, %v498_v15  ;;  %v550_v26 = vrot.slane %v462_v16, 4  ;;  %v523_v34 = vrot.slane %v458_v19, 3  ;;  %v470_v37 = vrot.slane %v454_v7, 1 }
 0x1e7   :  { %v443_v24 = vadd.f32 %v3124_v22, %v2970_v51  ;;  %506 = vrot.lane.b32.xlu0 %v499_v23, %s3371_s0 }
 0x1e8   :  { %v437_v25 = vpop.f32.mrf.mxu1  ;;  %v471_v32 = vsel %vm112_vm1, %v3544_v57, %v470_v37  ;;  %v473_v48 = vsel %vm112_vm1, %v470_v37, %v472_v45  ;;  %v552_v49 = vsel %vm280_vm5, %v550_v26, %v551_v47  ;;  %v525_v12 = vsel %vm250_vm4, %v523_v34, %v524_v54 }
 0x1e9   :  { %v3684_v27 = vmax.f32 %v443_v24, 0.0  ;;  %v438_v35 = vadd.f32 %v2970_v51, %v437_v25  ;;  %v3747_v51 = vld [vmem:[%s5074_s6] sm:$0xff] }
 0x1ea   :  { %558 = vrot.lane.b32.xlu1 %v550_v26, %s3374_s5  ;;  %3133 = vmatprep.subr.mxu1 %v3747_v51 }
 0x1eb   :  { %531 = vrot.lane.b32.xlu0 %v523_v34, %s3375_s28  ;;  %v502_v39 = vrot.slane %v3684_v27, 2  ;;  %v3693_v42 = vmax.f32 %v438_v35, 0.0  ;;  %v457_v58 = vmul.f32 %v3684_v27, %v3501_v29  ;;  %v461_v52 = vmul.f32 %v3684_v27, %v3548_v61  ;;  %3134 = vmatpush3.msra.mxu1 %v3747_v51 }
 0x1ec   :  { %v465_v7 = vmul.f32 %v3684_v27, %v3579_v18 }
 0x1ed   :  { %v500_v13 = vrot.slane %v3693_v42, 2  ;;  %v456_v50 = vmul.f32 %v3693_v42, %v3533_v44  ;;  %v460_v63 = vmul.f32 %v3693_v42, %v3541_v55  ;;  %v476_v2 = vrot.slane %v457_v58, 1 }
 0x1ee   :  { %512 = vrot.lane.b32.xlu1 %v502_v39, %s3371_s0  ;;  %v464_v9 = vmul.f32 %v3693_v42, %v3576_v17  ;;  %v528_v16 = vrot.slane %v461_v52, 3  ;;  %v555_v25 = vrot.slane %v465_v7, 4 }
 0x1ef   :  { %478 = vrot.lane.b32.xlu0 %v471_v32, %s3370_s18  ;;  %v503_v59 = vsel %vm82_vm0, %v500_v13, %v502_v39  ;;  %v474_v60 = vrot.slane %v456_v50, 1  ;;  %v526_v5 = vrot.slane %v460_v63, 3  ;;  %v501_v14 = vsel %vm82_vm0, %v498_v15, %v500_v13 }
 0x1f0   :  { %v553_v22 = vrot.slane %v464_v9, 4  ;;  %v530_v23 = vsel %vm250_vm4, %v528_v16, %v3586_v21  ;;  %v557_v34 = vsel %vm280_vm5, %v555_v25, %v3595_v33 }
 0x1f1   :  { %v475_v4 = vsel %vm112_vm1, %v472_v45, %v474_v60  ;;  %v527_v19 = vsel %vm250_vm4, %v524_v54, %v526_v5  ;;  %v477_v15 = vsel %vm112_vm1, %v474_v60, %v476_v2  ;;  %v529_v26 = vsel %vm250_vm4, %v526_v5, %v528_v16 }
 0x1f2   :  { %480 = vrot.lane.b32.xlu1 %v473_v48, %s3370_s18  ;;  %v554_v24 = vsel %vm280_vm5, %v551_v47, %v553_v22  ;;  %v556_v35 = vsel %vm280_vm5, %v553_v22, %v555_v25  ;;  %v450_v48 = vmul.f32 %v3669_v11, %v3618_v3  ;;  %v451_v16 = vmul.f32 %v3667_v6, %v3624_v10 }
 0x1f3   :  { %560 = vrot.lane.b32.xlu0 %v552_v49, %s3374_s5 }
 0x1f6   :  { %533 = vrot.lane.b32.xlu1 %v525_v12, %s3375_s28 }
 0x1f7   :  { %510 = vrot.lane.b32.xlu0 %v503_v59, %s3371_s0 }
 0x1fa   :  { %486 = vrot.lane.b32.xlu1 %v476_v2, %s3370_s18 }
 0x1fb   :  { %482 = vrot.lane.b32.xlu0 %v475_v4, %s3370_s18 }
 0x1fe   :  { %508 = vrot.lane.b32.xlu1 %v501_v14, %s3371_s0 }
 0x1ff   :  { %535 = vrot.lane.b32.xlu0 %v527_v19, %s3375_s28 }
 0x202   :  { %539 = vrot.lane.b32.xlu1 %v530_v23, %s3375_s28 }
 0x203   :  { %562 = vrot.lane.b32.xlu0 %v554_v24, %s3374_s5 }
 0x206   :  { %484 = vrot.lane.b32.xlu1 %v477_v15, %s3370_s18 }
 0x207   :  { %537 = vrot.lane.b32.xlu0 %v529_v26, %s3375_s28  ;;  %v453_v26 = vmul.f32 %v3684_v27, %v3630_v20 }
 0x20a   :  { %566 = vrot.lane.b32.xlu1 %v557_v34, %s3374_s5 }
 0x20b   :  { %564 = vrot.lane.b32.xlu0 %v556_v35, %s3374_s5 }
 0x258   :  { %v505_v37 = vpop.permute.xlu1 %504 }
 0x259   :  { %v507_v39 = vpop.permute.xlu0 %506 }
 0x25c   :  { %v559_v40 = vpop.permute.xlu1 %558 }
 0x25d   :  { %v532_v41 = vpop.permute.xlu0 %531 }
 0x260   :  { %v513_v32 = vpop.permute.xlu1 %512 }
 0x261   :  { %v479_v45 = vpop.permute.xlu0 %478 }
 0x262   :  { %v573_v46 = vsel %vm311_vm7, %v3613_v62, %v479_v45 }
 0x263   :  { %v578_v47 = vsel %vm323_vm9, %v573_v46, %v505_v37  ;;  %v452_v37 = vmul.f32 %v3693_v42, %v3639_v8 }
 0x264   :  { %v481_v49 = vpop.permute.xlu1 %480  ;;  %v584_v13 = vsel %vm583_vm11, %v578_v47, %v532_v41 }
 0x265   :  { %v574_v50 = vsel %vm311_vm7, %v450_v48, %v481_v49  ;;  %v561_v54 = vpop.permute.xlu0 %560  ;;  %v590_v59 = vsel %vm589_vm12, %v584_v13, %v559_v40 }
 0x266   :  { %v579_v12 = vsel %vm323_vm9, %v574_v50, %v507_v39  ;;  %v606_v4 = vrot.slane %v590_v59, 6 }
 0x268   :  { %v534_v58 = vpop.permute.xlu1 %533 }
 0x269   :  { %v585_v60 = vsel %vm583_vm11, %v579_v12, %v534_v58  ;;  %v511_v63 = vpop.permute.xlu0 %510 }
 0x26a   :  { %v591_v2 = vsel %vm589_vm12, %v585_v60, %v561_v54 }
 0x26b   :  { %v607_v52 = vrot.slane %v591_v2, 6 }
 0x26c   :  { %v487_v5 = vpop.permute.xlu1 %486 }
 0x26d   :  { %v483_v9 = vpop.permute.xlu0 %482  ;;  %v608_v14 = vsel %vm172_vm3, %v606_v4, %v607_v52  ;;  %v577_v39 = vsel %vm311_vm7, %v453_v26, %v487_v5 }
 0x26e   :  { %3135 = vmatprep.mubr.msk.f32.mxu1 %vm615_vm13, %v608_v14  ;;  %v575_v22 = vsel %vm311_vm7, %v451_v16, %v483_v9  ;;  %v582_v48 = vsel %vm323_vm9, %v577_v39, %v513_v32  ;;  %v3820_v32 = vld [vmem:[%s5075_s7] ss:$0 sm:$0xff] }
 0x270   :  { %v509_v19 = vpop.permute.xlu1 %508 }
 0x271   :  { %v536_v23 = vpop.permute.xlu0 %535  ;;  %v580_v7 = vsel %vm323_vm9, %v575_v22, %v509_v19 }
 0x272   :  { %v586_v15 = vsel %vm583_vm11, %v580_v7, %v536_v23 }
 0x274   :  { %v540_v24 = vpop.permute.xlu1 %539 }
 0x275   :  { %v563_v25 = vpop.permute.xlu0 %562  ;;  %v588_v49 = vsel %vm583_vm11, %v582_v48, %v540_v24 }
 0x276   :  { %v592_v34 = vsel %vm589_vm12, %v586_v15, %v563_v25 }
 0x277   :  { %v609_v35 = vrot.slane %v592_v34, 6 }
 0x278   :  { %v485_v40 = vpop.permute.xlu1 %484 }
 0x279   :  { %v610_v41 = vsel %vm172_vm3, %v607_v52, %v609_v35  ;;  %v576_v45 = vsel %vm311_vm7, %v452_v37, %v485_v40  ;;  %v538_v46 = vpop.permute.xlu0 %537 }
 0x27a   :  { %v581_v47 = vsel %vm323_vm9, %v576_v45, %v511_v63  ;;  %3136 = vmatmul.mubr.msk.f32.vlgmr.msra.gmra.mxu1 %vm615_vm13, %v610_v41 }
 0x27b   :  { %v587_v50 = vsel %vm583_vm11, %v581_v47, %v538_v46 }
 0x27c   :  { %v567_v13 = vpop.permute.xlu1 %566 }
 0x27d   :  { %v594_v54 = vsel %vm589_vm12, %v588_v49, %v567_v13  ;;  %v565_v58 = vpop.permute.xlu0 %564  ;;  %v3862_v13 = vld [vmem:[%s5076_s8 + $0x20] sm:$0xff] }
 0x27e   :  { %v613_v12 = vrot.slane %v594_v54, 6  ;;  %v593_v59 = vsel %vm589_vm12, %v587_v50, %v565_v58  ;;  %3141 = vmatprep.subr.mxu1 %v3862_v13  ;;  %3173 = vmatprep.subr.mxu0 %v3862_v13 }
 0x27f   :  { %v611_v60 = vrot.slane %v593_v59, 6  ;;  %3142 = vmatpush3.msra.mxu1 %v3862_v13  ;;  %3174 = vmatpush3.msra.mxu0 %v3862_v13 }
 0x281   :  { %v612_v2 = vsel %vm172_vm3, %v609_v35, %v611_v60  ;;  %v614_v63 = vsel %vm172_vm3, %v611_v60, %v613_v12 }
 0x282   :  { %3138 = vmatprep.mubr.msk.f32.mxu1 %vm615_vm13, %v612_v2 }
 0x283   :  { %3139 = vmatmul.mubr.msk.f32.gmra.mxu1 %vm615_vm13, %v614_v63  ;;  %v3881_v63 = vld [vmem:[%s5076_s8 + $0x18] sm:$0xff] }
 0x284   :  { %3143 = vmatprep.subr.mxu1 %v3881_v63  ;;  %3175 = vmatprep.subr.mxu0 %v3881_v63 }
 0x285   :  { %3144 = vmatpush3.msra.mxu1 %v3881_v63  ;;  %3176 = vmatpush3.msra.mxu0 %v3881_v63 }
 0x33a   :  { %v3137_v52 = vpop.f32.mrf.mxu1 }
 0x33b   :  { %v696_v4 = vadd.f32 %v3137_v52, %v3820_v32  ;;  %v3886_v52 = vld [vmem:[%s5076_s8 + $0x10] sm:$0xff] }
 0x33c   :  { %v690_v5 = vpop.f32.mrf.mxu1  ;;  %3145 = vmatprep.subr.mxu1 %v3886_v52  ;;  %3177 = vmatprep.subr.mxu0 %v3886_v52 }
 0x33d   :  { %v3823_v9 = vmax.f32 %v696_v4, 0.0  ;;  %v691_v14 = vadd.f32 %v3820_v32, %v690_v5  ;;  %3146 = vmatpush3.msra.mxu1 %v3886_v52  ;;  %3178 = vmatpush3.msra.mxu0 %v3886_v52 }
 0x33f   :  { %v3826_v16 = vmax.f32 %v691_v14, 0.0  ;;  %v761_v22 = vrot.slane %v3823_v9, 2  ;;  %v718_v46 = vmul.f32 %v3823_v9, %v3507_v31  ;;  %v3852_v47 = vmul.f32 %v3823_v9, %v3557_v1 }
 0x340   :  { %v722_v54 = vmul.f32 %v3823_v9, %v3529_v43 }
 0x341   :  { %v760_v19 = vrot.slane %v3826_v16, 2  ;;  %v725_v23 = vmul.f32 %v3826_v16, %v3499_v28  ;;  %v721_v7 = vmul.f32 %v3826_v16, %v3516_v38  ;;  %v717_v25 = vmul.f32 %v3826_v16, %v3504_v30 }
 0x342   :  { %v735_v50 = vrot.slane %v718_v46, 1  ;;  %v814_v58 = vrot.slane %v3852_v47, 4  ;;  %v787_v4 = vrot.slane %v722_v54, 3 }
 0x343   :  { %v3140_v24 = vpop.f32.mrf.mxu1  ;;  %767 = vrot.lane.b32.xlu1 %v760_v19, %s3371_s0  ;;  %v762_v15 = vsel %vm82_vm0, %v760_v19, %v761_v22  ;;  %v813_v35 = vrot.slane %v725_v23, 4  ;;  %v786_v39 = vrot.slane %v721_v7, 3  ;;  %v733_v41 = vrot.slane %v717_v25, 1 }
 0x344   :  { %v706_v26 = vadd.f32 %v3140_v24, %v3820_v32  ;;  %769 = vrot.lane.b32.xlu0 %v762_v15, %s3371_s0  ;;  %v3907_v15 = vld [vmem:[%s5076_s8 + $0x8] sm:$0xff] }
 0x345   :  { %v700_v34 = vpop.f32.mrf.mxu1  ;;  %v734_v49 = vsel %vm112_vm1, %v3544_v57, %v733_v41  ;;  %v736_v12 = vsel %vm112_vm1, %v733_v41, %v735_v50  ;;  %v815_v59 = vsel %vm280_vm5, %v813_v35, %v814_v58  ;;  %v788_v14 = vsel %vm250_vm4, %v786_v39, %v787_v4  ;;  %3147 = vmatprep.subr.mxu1 %v3907_v15 }
 0x346   :  { %v3842_v37 = vmax.f32 %v706_v26, 0.0  ;;  %v701_v40 = vadd.f32 %v3820_v32, %v700_v34  ;;  %v3916_v26 = vld [vmem:[%s5076_s8] sm:$0xff]  ;;  %3179 = vmatprep.subr.mxu0 %v3907_v15  ;;  %3148 = vmatpush3.msra.mxu1 %v3907_v15 }
 0x347   :  { %821 = vrot.lane.b32.xlu1 %v813_v35, %s3374_s5  ;;  %3149 = vmatprep.subr.mxu1 %v3916_v26 }
 0x348   :  { %794 = vrot.lane.b32.xlu0 %v786_v39, %s3375_s28  ;;  %v765_v45 = vrot.slane %v3842_v37, 2  ;;  %v3854_v48 = vmax.f32 %v701_v40, 0.0  ;;  %v720_v5 = vmul.f32 %v3842_v37, %v3501_v29  ;;  %v724_v25 = vmul.f32 %v3842_v37, %v3548_v61  ;;  %3150 = vmatpush3.msra.mxu1 %v3916_v26 }
 0x349   :  { %3180 = vmatpush3.msra.mxu0 %v3907_v15  ;;  %3157 = vmatprep.subr.mxu1 %v3701_v36 }
 0x34a   :  { %v763_v60 = vrot.slane %v3854_v48, 2  ;;  %v719_v2 = vmul.f32 %v3854_v48, %v3533_v44  ;;  %v723_v7 = vmul.f32 %v3854_v48, %v3541_v55  ;;  %v739_v24 = vrot.slane %v720_v5, 1  ;;  %3181 = vmatprep.subr.mxu0 %v3916_v26 }
 0x34b   :  { %775 = vrot.lane.b32.xlu1 %v765_v45, %s3371_s0  ;;  %v727_v39 = vmul.f32 %v3854_v48, %v3576_v17  ;;  %v791_v41 = vrot.slane %v724_v25, 3  ;;  %3182 = vmatpush3.msra.mxu0 %v3916_v26 }
 0x34c   :  { %741 = vrot.lane.b32.xlu0 %v734_v49, %s3370_s18  ;;  %v766_v19 = vsel %vm82_vm0, %v763_v60, %v765_v45  ;;  %v737_v23 = vrot.slane %v719_v2, 1  ;;  %v789_v35 = vrot.slane %v723_v7, 3  ;;  %v764_v40 = vsel %vm82_vm0, %v761_v22, %v763_v60  ;;  %3205 = vmatprep.subr.mxu0 %v3862_v13 }
 0x34d   :  { %v816_v46 = vrot.slane %v727_v39, 4  ;;  %v793_v47 = vsel %vm250_vm4, %v791_v41, %v3586_v21  ;;  %v728_v22 = vmul.f32 %v3842_v37, %v3579_v18 }
 0x34e   :  { %v738_v34 = vsel %vm112_vm1, %v735_v50, %v737_v23  ;;  %v790_v45 = vsel %vm250_vm4, %v787_v4, %v789_v35  ;;  %v740_v50 = vsel %vm112_vm1, %v737_v23, %v739_v24 }
 0x34f   :  { %743 = vrot.lane.b32.xlu1 %v736_v12, %s3370_s18  ;;  %v817_v49 = vsel %vm280_vm5, %v814_v58, %v816_v46  ;;  %v818_v54 = vrot.slane %v728_v22, 4  ;;  %v792_v12 = vsel %vm250_vm4, %v789_v35, %v791_v41 }
 0x350   :  { %823 = vrot.lane.b32.xlu0 %v815_v59, %s3374_s5 }
 0x351   :  { %v820_v59 = vsel %vm280_vm5, %v818_v54, %v3595_v33  ;;  %v819_v60 = vsel %vm280_vm5, %v816_v46, %v818_v54 }
 0x353   :  { %796 = vrot.lane.b32.xlu1 %v788_v14, %s3375_s28 }
 0x354   :  { %773 = vrot.lane.b32.xlu0 %v766_v19, %s3371_s0 }
 0x357   :  { %749 = vrot.lane.b32.xlu1 %v739_v24, %s3370_s18  ;;  %v713_v24 = vmul.f32 %v3826_v16, %v3618_v3 }
 0x358   :  { %745 = vrot.lane.b32.xlu0 %v738_v34, %s3370_s18 }
 0x35b   :  { %771 = vrot.lane.b32.xlu1 %v764_v40, %s3371_s0 }
 0x35c   :  { %798 = vrot.lane.b32.xlu0 %v790_v45, %s3375_s28 }
 0x35f   :  { %802 = vrot.lane.b32.xlu1 %v793_v47, %s3375_s28 }
 0x360   :  { %825 = vrot.lane.b32.xlu0 %v817_v49, %s3374_s5 }
 0x363   :  { %747 = vrot.lane.b32.xlu1 %v740_v50, %s3370_s18 }
 0x364   :  { %800 = vrot.lane.b32.xlu0 %v792_v12, %s3375_s28 }
 0x367   :  { %829 = vrot.lane.b32.xlu1 %v820_v59, %s3374_s5  ;;  %v714_v59 = vmul.f32 %v3823_v9, %v3624_v10 }
 0x368   :  { %827 = vrot.lane.b32.xlu0 %v819_v60, %s3374_s5 }
 0x3b5   :  { %v768_v58 = vpop.permute.xlu1 %767 }
 0x3b6   :  { %v770_v2 = vpop.permute.xlu0 %769 }
 0x3b9   :  { %v822_v4 = vpop.permute.xlu1 %821 }
 0x3ba   :  { %v795_v5 = vpop.permute.xlu0 %794 }
 0x3bd   :  { %v776_v14 = vpop.permute.xlu1 %775 }
 0x3be   :  { %v742_v19 = vpop.permute.xlu0 %741 }
 0x3bf   :  { %v836_v23 = vsel %vm311_vm7, %v3613_v62, %v742_v19 }
 0x3c0   :  { %v841_v7 = vsel %vm323_vm9, %v836_v23, %v768_v58 }
 0x3c1   :  { %v744_v25 = vpop.permute.xlu1 %743  ;;  %v846_v34 = vsel %vm583_vm11, %v841_v7, %v795_v5  ;;  %v716_v7 = vmul.f32 %v3842_v37, %v3630_v20 }
 0x3c2   :  { %v837_v35 = vsel %vm311_vm7, %v713_v24, %v744_v25  ;;  %v824_v39 = vpop.permute.xlu0 %823  ;;  %v851_v45 = vsel %vm589_vm12, %v846_v34, %v822_v4  ;;  %v715_v34 = vmul.f32 %v3854_v48, %v3639_v8 }
 0x3c3   :  { %v842_v41 = vsel %vm323_vm9, %v837_v35, %v770_v2  ;;  %v867_v50 = vrot.slane %v851_v45, 6 }
 0x3c5   :  { %v797_v40 = vpop.permute.xlu1 %796 }
 0x3c6   :  { %v847_v46 = vsel %vm583_vm11, %v842_v41, %v797_v40  ;;  %v774_v47 = vpop.permute.xlu0 %773 }
 0x3c7   :  { %v852_v22 = vsel %vm589_vm12, %v847_v46, %v824_v39 }
 0x3c8   :  { %v868_v49 = vrot.slane %v852_v22, 6 }
 0x3c9   :  { %v750_v54 = vpop.permute.xlu1 %749 }
 0x3ca   :  { %v746_v16 = vpop.permute.xlu0 %745  ;;  %v869_v12 = vsel %vm172_vm3, %v867_v50, %v868_v49  ;;  %v840_v9 = vsel %vm311_vm7, %v716_v7, %v750_v54 }
 0x3cb   :  { %3151 = vmatprep.mubr.msk.f32.mxu1 %vm615_vm13, %v869_v12  ;;  %v838_v58 = vsel %vm311_vm7, %v714_v59, %v746_v16  ;;  %v845_v37 = vsel %vm323_vm9, %v840_v9, %v776_v14  ;;  %v4004_v59 = vld [vmem:[%s5077_s9] ss:$0 sm:$0xff] }
 0x3cd   :  { %v772_v60 = vpop.permute.xlu1 %771 }
 0x3ce   :  { %v799_v2 = vpop.permute.xlu0 %798  ;;  %v843_v4 = vsel %vm323_vm9, %v838_v58, %v772_v60 }
 0x3cf   :  { %v848_v19 = vsel %vm583_vm11, %v843_v4, %v799_v2 }
 0x3d1   :  { %v803_v5 = vpop.permute.xlu1 %802 }
 0x3d2   :  { %v826_v23 = vpop.permute.xlu0 %825  ;;  %v850_v46 = vsel %vm583_vm11, %v845_v37, %v803_v5 }
 0x3d3   :  { %v853_v24 = vsel %vm589_vm12, %v848_v19, %v826_v23 }
 0x3d4   :  { %v870_v25 = vrot.slane %v853_v24, 6 }
 0x3d5   :  { %v748_v35 = vpop.permute.xlu1 %747 }
 0x3d6   :  { %v871_v39 = vsel %vm172_vm3, %v868_v49, %v870_v25  ;;  %v839_v40 = vsel %vm311_vm7, %v715_v34, %v748_v35  ;;  %v801_v41 = vpop.permute.xlu0 %800 }
 0x3d7   :  { %v844_v45 = vsel %vm323_vm9, %v839_v40, %v774_v47  ;;  %3152 = vmatmul.mubr.msk.f32.vlgmr.msra.gmra.mxu1 %vm615_vm13, %v871_v39 }
 0x3d8   :  { %3158 = vmatpush3.msra.mxu1 %v3701_v36  ;;  %v849_v48 = vsel %vm583_vm11, %v844_v45, %v801_v41 }
 0x3d9   :  { %v830_v22 = vpop.permute.xlu1 %829  ;;  %3159 = vmatprep.subr.mxu1 %v3717_v53 }
 0x3da   :  { %v855_v49 = vsel %vm589_vm12, %v850_v46, %v830_v22  ;;  %v828_v50 = vpop.permute.xlu0 %827  ;;  %3160 = vmatpush3.msra.mxu1 %v3717_v53 }
 0x3db   :  { %v874_v54 = vrot.slane %v855_v49, 6  ;;  %v854_v47 = vsel %vm589_vm12, %v849_v48, %v828_v50  ;;  %3161 = vmatprep.subr.mxu1 %v3722_v56 }
 0x3dc   :  { %v872_v14 = vrot.slane %v854_v47, 6  ;;  %3162 = vmatpush3.msra.mxu1 %v3722_v56 }
 0x3dd   :  { %3163 = vmatprep.subr.mxu1 %v3739_v0 }
 0x3de   :  { %v873_v16 = vsel %vm172_vm3, %v870_v25, %v872_v14  ;;  %v875_v12 = vsel %vm172_vm3, %v872_v14, %v874_v54  ;;  %3164 = vmatpush3.msra.mxu1 %v3739_v0 }
 0x3df   :  { %3154 = vmatprep.mubr.msk.f32.mxu1 %vm615_vm13, %v873_v16  ;;  %3165 = vmatprep.subr.mxu1 %v3747_v51 }
 0x3e0   :  { %3155 = vmatmul.mubr.msk.f32.gmra.mxu1 %vm615_vm13, %v875_v12 }
 0x3e1   :  { %3166 = vmatpush3.msra.mxu1 %v3747_v51 }
 0x3e2   :  { %3189 = vmatprep.subr.mxu1 %v3701_v36 }
 0x497   :  { %v3153_v60 = vpop.f32.mrf.mxu1 }
 0x498   :  { %v956_v58 = vadd.f32 %v3153_v60, %v4004_v59 }
 0x499   :  { %v950_v2 = vpop.f32.mrf.mxu1 }
 0x49a   :  { %v970_v4 = vadd.f32 %v956_v58, %v3667_v6  ;;  %v951_v5 = vadd.f32 %v4004_v59, %v950_v2 }
 0x49c   :  { %v974_v19 = vmax.f32 %v970_v4, 0.0  ;;  %v969_v23 = vadd.f32 %v951_v5, %v3669_v11 }
 0x49e   :  { %v4010_v7 = vmax.f32 %v974_v19, 0.0  ;;  %v973_v24 = vmax.f32 %v969_v23, 0.0 }
 0x4a0   :  { %v4012_v25 = vmax.f32 %v973_v24, 0.0  ;;  %v3156_v34 = vpop.f32.mrf.mxu1  ;;  %v1029_v40 = vrot.slane %v4010_v7, 2  ;;  %v986_v16 = vmul.f32 %v4010_v7, %v3507_v31  ;;  %v990_v2 = vmul.f32 %v4010_v7, %v3529_v43 }
 0x4a1   :  { %v966_v9 = vadd.f32 %v3156_v34, %v4004_v59 }
 0x4a2   :  { %v960_v35 = vpop.f32.mrf.mxu1  ;;  %v1028_v39 = vrot.slane %v4012_v25, 2  ;;  %v993_v6 = vmul.f32 %v4012_v25, %v3499_v28  ;;  %v989_v45 = vmul.f32 %v4012_v25, %v3516_v38  ;;  %v985_v46 = vmul.f32 %v4012_v25, %v3504_v30 }
 0x4a3   :  { %v972_v41 = vadd.f32 %v966_v9, %v3684_v27  ;;  %v961_v11 = vadd.f32 %v4004_v59, %v960_v35  ;;  %v1003_v58 = vrot.slane %v986_v16, 1  ;;  %v1055_v34 = vrot.slane %v990_v2, 3 }
 0x4a4   :  { %1035 = vrot.lane.b32.xlu1 %v1028_v39, %s3371_s0  ;;  %v1030_v37 = vsel %vm82_vm0, %v1028_v39, %v1029_v40  ;;  %v1081_v49 = vrot.slane %v993_v6, 4  ;;  %v1054_v27 = vrot.slane %v989_v45, 3  ;;  %v1001_v47 = vrot.slane %v985_v46, 1 }
 0x4a5   :  { %v976_v22 = vmax.f32 %v972_v41, 0.0  ;;  %v971_v48 = vadd.f32 %v961_v11, %v3693_v42  ;;  %1037 = vrot.lane.b32.xlu0 %v1030_v37, %s3371_s0  ;;  %v994_v42 = vmul.f32 %v4010_v7, %v3557_v1 }
 0x4a6   :  { %v1002_v60 = vsel %vm112_vm1, %v3544_v57, %v1001_v47  ;;  %v1004_v5 = vsel %vm112_vm1, %v1001_v47, %v1003_v58  ;;  %v1056_v35 = vsel %vm250_vm4, %v1054_v27, %v1055_v34 }
 0x4a7   :  { %v4029_v50 = vmax.f32 %v976_v22, 0.0  ;;  %v975_v54 = vmax.f32 %v971_v48, 0.0  ;;  %v1082_v4 = vrot.slane %v994_v42, 4 }
 0x4a8   :  { %1089 = vrot.lane.b32.xlu1 %v1081_v49, %s3374_s5 }
 0x4a9   :  { %1062 = vrot.lane.b32.xlu0 %v1054_v27, %s3375_s28  ;;  %v1033_v14 = vrot.slane %v4029_v50, 2  ;;  %v4038_v12 = vmax.f32 %v975_v54, 0.0  ;;  %v1083_v19 = vsel %vm280_vm5, %v1081_v49, %v1082_v4  ;;  %v988_v9 = vmul.f32 %v4029_v50, %v3501_v29 }
 0x4aa   :  { %v992_v45 = vmul.f32 %v4029_v50, %v3548_v61 }
 0x4ab   :  { %v1031_v23 = vrot.slane %v4038_v12, 2  ;;  %v987_v24 = vmul.f32 %v4038_v12, %v3533_v44  ;;  %v991_v41 = vmul.f32 %v4038_v12, %v3541_v55  ;;  %v1007_v11 = vrot.slane %v988_v9, 1 }
 0x4ac   :  { %1043 = vrot.lane.b32.xlu1 %v1033_v14, %s3371_s0  ;;  %v995_v22 = vmul.f32 %v4038_v12, %v3576_v17  ;;  %v1059_v49 = vrot.slane %v992_v45, 3 }
 0x4ad   :  { %1009 = vrot.lane.b32.xlu0 %v1002_v60, %s3370_s18  ;;  %v1034_v39 = vsel %vm82_vm0, %v1031_v23, %v1033_v14  ;;  %v1005_v6 = vrot.slane %v987_v24, 1  ;;  %v1057_v46 = vrot.slane %v991_v41, 3  ;;  %v1032_v48 = vsel %vm82_vm0, %v1029_v40, %v1031_v23 }
 0x4ae   :  { %v1084_v54 = vrot.slane %v995_v22, 4  ;;  %v1061_v47 = vsel %vm250_vm4, %v1059_v49, %v3586_v21  ;;  %v996_v14 = vmul.f32 %v4029_v50, %v3579_v18 }
 0x4af   :  { %v1006_v37 = vsel %vm112_vm1, %v1003_v58, %v1005_v6  ;;  %v1058_v27 = vsel %vm250_vm4, %v1055_v34, %v1057_v46  ;;  %v1008_v40 = vsel %vm112_vm1, %v1005_v6, %v1007_v11  ;;  %v1060_v60 = vsel %vm250_vm4, %v1057_v46, %v1059_v49 }
 0x4b0   :  { %1011 = vrot.lane.b32.xlu1 %v1004_v5, %s3370_s18  ;;  %v1085_v16 = vsel %vm280_vm5, %v1082_v4, %v1084_v54  ;;  %v1086_v42 = vrot.slane %v996_v14, 4 }
 0x4b1   :  { %1091 = vrot.lane.b32.xlu0 %v1083_v19, %s3374_s5 }
 0x4b2   :  { %v1088_v58 = vsel %vm280_vm5, %v1086_v42, %v3595_v33  ;;  %v1087_v2 = vsel %vm280_vm5, %v1084_v54, %v1086_v42  ;;  %v982_v42 = vmul.f32 %v4010_v7, %v3624_v10 }
 0x4b4   :  { %1064 = vrot.lane.b32.xlu1 %v1056_v35, %s3375_s28 }
 0x4b5   :  { %1041 = vrot.lane.b32.xlu0 %v1034_v39, %s3371_s0  ;;  %v981_v39 = vmul.f32 %v4012_v25, %v3618_v3 }
 0x4b8   :  { %1017 = vrot.lane.b32.xlu1 %v1007_v11, %s3370_s18 }
 0x4b9   :  { %1013 = vrot.lane.b32.xlu0 %v1006_v37, %s3370_s18 }
 0x4bc   :  { %1039 = vrot.lane.b32.xlu1 %v1032_v48, %s3371_s0 }
 0x4bd   :  { %1066 = vrot.lane.b32.xlu0 %v1058_v27, %s3375_s28 }
 0x4c0   :  { %1070 = vrot.lane.b32.xlu1 %v1061_v47, %s3375_s28 }
 0x4c1   :  { %1093 = vrot.lane.b32.xlu0 %v1085_v16, %s3374_s5 }
 0x4c4   :  { %1015 = vrot.lane.b32.xlu1 %v1008_v40, %s3370_s18 }
 0x4c5   :  { %1068 = vrot.lane.b32.xlu0 %v1060_v60, %s3375_s28 }
 0x4c8   :  { %1097 = vrot.lane.b32.xlu1 %v1088_v58, %s3374_s5 }
 0x4c9   :  { %1095 = vrot.lane.b32.xlu0 %v1087_v2, %s3374_s5 }
 0x516   :  { %v1036_v4 = vpop.permute.xlu1 %1035 }
 0x517   :  { %v1038_v5 = vpop.permute.xlu0 %1037 }
 0x51a   :  { %v1090_v19 = vpop.permute.xlu1 %1089 }
 0x51b   :  { %v1063_v23 = vpop.permute.xlu0 %1062 }
 0x51e   :  { %v1044_v24 = vpop.permute.xlu1 %1043 }
 0x51f   :  { %v1010_v34 = vpop.permute.xlu0 %1009 }
 0x520   :  { %v1104_v9 = vsel %vm311_vm7, %v3613_v62, %v1010_v34  ;;  %v984_v34 = vmul.f32 %v4029_v50, %v3630_v20 }
 0x521   :  { %v1109_v35 = vsel %vm323_vm9, %v1104_v9, %v1036_v4 }
 0x522   :  { %v1012_v6 = vpop.permute.xlu1 %1011  ;;  %v1114_v41 = vsel %vm583_vm11, %v1109_v35, %v1063_v23 }
 0x523   :  { %v1105_v11 = vsel %vm311_vm7, %v981_v39, %v1012_v6  ;;  %v1092_v45 = vpop.permute.xlu0 %1091  ;;  %v1119_v22 = vsel %vm589_vm12, %v1114_v41, %v1090_v19  ;;  %v983_v39 = vmul.f32 %v4038_v12, %v3639_v8 }
 0x524   :  { %v1110_v46 = vsel %vm323_vm9, %v1105_v11, %v1038_v5  ;;  %v1129_v47 = vrot.slane %v1119_v22, 6 }
 0x526   :  { %v1065_v37 = vpop.permute.xlu1 %1064 }
 0x527   :  { %v1115_v48 = vsel %vm583_vm11, %v1110_v46, %v1065_v37  ;;  %v1042_v49 = vpop.permute.xlu0 %1041 }
 0x528   :  { %v1120_v27 = vsel %vm589_vm12, %v1115_v48, %v1092_v45 }
 0x529   :  { %v1130_v54 = vrot.slane %v1120_v27, 6 }
 0x52a   :  { %v1018_v14 = vpop.permute.xlu1 %1017 }
 0x52b   :  { %v1014_v16 = vpop.permute.xlu0 %1013  ;;  %v1131_v40 = vsel %vm172_vm3, %v1129_v47, %v1130_v54  ;;  %v1108_v6 = vsel %vm311_vm7, %v984_v34, %v1018_v14 }
 0x52c   :  { %3167 = vmatprep.mubr.msk.f32.mxu1 %vm615_vm13, %v1131_v40  ;;  %v1106_v58 = vsel %vm311_vm7, %v982_v42, %v1014_v16  ;;  %v1113_v22 = vsel %vm323_vm9, %v1108_v6, %v1044_v24 }
 0x52e   :  { %v1040_v60 = vpop.permute.xlu1 %1039 }
 0x52f   :  { %v1067_v2 = vpop.permute.xlu0 %1066  ;;  %v1111_v4 = vsel %vm323_vm9, %v1106_v58, %v1040_v60 }
 0x530   :  { %v1116_v19 = vsel %vm583_vm11, %v1111_v4, %v1067_v2 }
 0x532   :  { %v1071_v5 = vpop.permute.xlu1 %1070 }
 0x533   :  { %v1094_v23 = vpop.permute.xlu0 %1093  ;;  %v1118_v48 = vsel %vm583_vm11, %v1113_v22, %v1071_v5 }
 0x534   :  { %v1121_v9 = vsel %vm589_vm12, %v1116_v19, %v1094_v23 }
 0x535   :  { %v1132_v35 = vrot.slane %v1121_v9, 6 }
 0x536   :  { %v1016_v41 = vpop.permute.xlu1 %1015 }
 0x537   :  { %v1133_v11 = vsel %vm172_vm3, %v1130_v54, %v1132_v35  ;;  %v1107_v45 = vsel %vm311_vm7, %v983_v39, %v1016_v41  ;;  %v1069_v37 = vpop.permute.xlu0 %1068 }
 0x538   :  { %v1112_v46 = vsel %vm323_vm9, %v1107_v45, %v1042_v49  ;;  %3168 = vmatmul.mubr.msk.f32.vlgmr.msra.gmra.mxu1 %vm615_vm13, %v1133_v11 }
 0x539   :  { %3190 = vmatpush3.msra.mxu1 %v3701_v36  ;;  %v1117_v47 = vsel %vm583_vm11, %v1112_v46, %v1069_v37 }
 0x53a   :  { %v1098_v27 = vpop.permute.xlu1 %1097  ;;  %3191 = vmatprep.subr.mxu1 %v3717_v53 }
 0x53b   :  { %v1123_v54 = vsel %vm589_vm12, %v1118_v48, %v1098_v27  ;;  %v1096_v14 = vpop.permute.xlu0 %1095  ;;  %3192 = vmatpush3.msra.mxu1 %v3717_v53 }
 0x53c   :  { %v1136_v16 = vrot.slane %v1123_v54, 6  ;;  %v1122_v49 = vsel %vm589_vm12, %v1117_v47, %v1096_v14  ;;  %3193 = vmatprep.subr.mxu1 %v3722_v56 }
 0x53d   :  { %v1134_v24 = vrot.slane %v1122_v49, 6  ;;  %3194 = vmatpush3.msra.mxu1 %v3722_v56 }
 0x53e   :  { %3195 = vmatprep.subr.mxu1 %v3739_v0 }
 0x53f   :  { %v1135_v40 = vsel %vm172_vm3, %v1132_v35, %v1134_v24  ;;  %v1137_v42 = vsel %vm172_vm3, %v1134_v24, %v1136_v16  ;;  %3196 = vmatpush3.msra.mxu1 %v3739_v0 }
 0x540   :  { %3170 = vmatprep.mubr.msk.f32.mxu1 %vm615_vm13, %v1135_v40  ;;  %3197 = vmatprep.subr.mxu1 %v3747_v51 }
 0x541   :  { %3171 = vmatmul.mubr.msk.f32.gmra.mxu1 %vm615_vm13, %v1137_v42 }
 0x542   :  { %3198 = vmatpush3.msra.mxu1 %v3747_v51 }
 0x543   :  { %3221 = vmatprep.subr.mxu1 %v3701_v36 }
 0x5f8   :  { %v3169_v53 = vpop.f32.mrf.mxu1 }
 0x5f9   :  { %v1218_v56 = vadd.f32 %v3169_v53, %v3820_v32 }
 0x5fa   :  { %v1212_v60 = vpop.f32.mrf.mxu1 }
 0x5fb   :  { %v4136_v58 = vmax.f32 %v1218_v56, 0.0  ;;  %v1213_v2 = vadd.f32 %v3820_v32, %v1212_v60 }
 0x5fd   :  { %v4139_v4 = vmax.f32 %v1213_v2, 0.0  ;;  %v1283_v5 = vrot.slane %v4136_v58, 2  ;;  %v1240_v46 = vmul.f32 %v4136_v58, %v3507_v31  ;;  %v1248_v22 = vmul.f32 %v4136_v58, %v3557_v1 }
 0x5fe   :  { %v1244_v47 = vmul.f32 %v4136_v58, %v3529_v43 }
 0x5ff   :  { %v1282_v0 = vrot.slane %v4139_v4, 2  ;;  %v1247_v19 = vmul.f32 %v4139_v4, %v3499_v28  ;;  %v1243_v36 = vmul.f32 %v4139_v4, %v3516_v38  ;;  %v1239_v34 = vmul.f32 %v4139_v4, %v3504_v30 }
 0x600   :  { %v1257_v27 = vrot.slane %v1240_v46, 1  ;;  %v1336_v54 = vrot.slane %v1248_v22, 4  ;;  %v1309_v40 = vrot.slane %v1244_v47, 3 }
 0x601   :  { %v3172_v51 = vpop.f32.mrf.mxu1  ;;  %1289 = vrot.lane.b32.xlu1 %v1282_v0, %s3371_s0  ;;  %v1284_v23 = vsel %vm82_vm0, %v1282_v0, %v1283_v5  ;;  %v1335_v39 = vrot.slane %v1247_v19, 4  ;;  %v1308_v41 = vrot.slane %v1243_v36, 3  ;;  %v1255_v45 = vrot.slane %v1239_v34, 1 }
 0x602   :  { %v1228_v9 = vadd.f32 %v3172_v51, %v3820_v32  ;;  %1291 = vrot.lane.b32.xlu0 %v1284_v23, %s3371_s0 }
 0x603   :  { %v1222_v35 = vpop.f32.mrf.mxu1  ;;  %v1258_v14 = vsel %vm112_vm1, %v1255_v45, %v1257_v27  ;;  %v1337_v16 = vsel %vm280_vm5, %v1335_v39, %v1336_v54  ;;  %v1310_v53 = vsel %vm250_vm4, %v1308_v41, %v1309_v40 }
 0x604   :  { %v4153_v6 = vmax.f32 %v1228_v9, 0.0  ;;  %v1223_v11 = vadd.f32 %v3820_v32, %v1222_v35  ;;  %v1256_v32 = vsel %vm112_vm1, %v3544_v57, %v1255_v45 }
 0x605   :  { %1343 = vrot.lane.b32.xlu1 %v1335_v39, %s3374_s5 }
 0x606   :  { %1316 = vrot.lane.b32.xlu0 %v1308_v41, %s3375_s28  ;;  %v1287_v37 = vrot.slane %v4153_v6, 2  ;;  %v4163_v48 = vmax.f32 %v1223_v11, 0.0  ;;  %v1242_v42 = vmul.f32 %v4153_v6, %v3501_v29  ;;  %v1246_v19 = vmul.f32 %v4153_v6, %v3548_v61 }
 0x607   :  { %v1250_v11 = vmul.f32 %v4153_v6, %v3579_v18 }
 0x608   :  { %v1285_v49 = vrot.slane %v4163_v48, 2  ;;  %v1241_v24 = vmul.f32 %v4163_v48, %v3533_v44  ;;  %v1245_v2 = vmul.f32 %v4163_v48, %v3541_v55  ;;  %v1261_v0 = vrot.slane %v1242_v42, 1 }
 0x609   :  { %1297 = vrot.lane.b32.xlu1 %v1287_v37, %s3371_s0  ;;  %v1249_v23 = vmul.f32 %v4163_v48, %v3576_v17  ;;  %v1313_v9 = vrot.slane %v1246_v19, 3  ;;  %v1235_v42 = vmul.f32 %v4139_v4, %v3618_v3 }
 0x60a   :  { %1263 = vrot.lane.b32.xlu0 %v1256_v32, %s3370_s18  ;;  %v1288_v56 = vsel %vm82_vm0, %v1285_v49, %v1287_v37  ;;  %v1259_v60 = vrot.slane %v1241_v24, 1  ;;  %v1311_v51 = vrot.slane %v1245_v2, 3  ;;  %v1286_v34 = vsel %vm82_vm0, %v1283_v5, %v1285_v49 }
 0x60b   :  { %v1338_v39 = vrot.slane %v1249_v23, 4  ;;  %v1315_v41 = vsel %vm250_vm4, %v1313_v9, %v3586_v21  ;;  %v1340_v37 = vrot.slane %v1250_v11, 4  ;;  %v1236_v11 = vmul.f32 %v4136_v58, %v3624_v10 }
 0x60c   :  { %v1260_v36 = vsel %vm112_vm1, %v1257_v27, %v1259_v60  ;;  %v1312_v35 = vsel %vm250_vm4, %v1309_v40, %v1311_v51  ;;  %v1262_v5 = vsel %vm112_vm1, %v1259_v60, %v1261_v0  ;;  %v1314_v46 = vsel %vm250_vm4, %v1311_v51, %v1313_v9 }
 0x60d   :  { %1265 = vrot.lane.b32.xlu1 %v1258_v14, %s3370_s18  ;;  %v1339_v45 = vsel %vm280_vm5, %v1336_v54, %v1338_v39  ;;  %v1342_v22 = vsel %vm280_vm5, %v1340_v37, %v3595_v33  ;;  %v1341_v32 = vsel %vm280_vm5, %v1338_v39, %v1340_v37 }
 0x60e   :  { %1345 = vrot.lane.b32.xlu0 %v1337_v16, %s3374_s5 }
 0x611   :  { %1318 = vrot.lane.b32.xlu1 %v1310_v53, %s3375_s28 }
 0x612   :  { %1295 = vrot.lane.b32.xlu0 %v1288_v56, %s3371_s0 }
 0x615   :  { %1271 = vrot.lane.b32.xlu1 %v1261_v0, %s3370_s18 }
 0x616   :  { %1267 = vrot.lane.b32.xlu0 %v1260_v36, %s3370_s18 }
 0x619   :  { %1293 = vrot.lane.b32.xlu1 %v1286_v34, %s3371_s0 }
 0x61a   :  { %1320 = vrot.lane.b32.xlu0 %v1312_v35, %s3375_s28 }
 0x61d   :  { %1324 = vrot.lane.b32.xlu1 %v1315_v41, %s3375_s28 }
 0x61e   :  { %1347 = vrot.lane.b32.xlu0 %v1339_v45, %s3374_s5 }
 0x621   :  { %1269 = vrot.lane.b32.xlu1 %v1262_v5, %s3370_s18 }
 0x622   :  { %1322 = vrot.lane.b32.xlu0 %v1314_v46, %s3375_s28 }
 0x625   :  { %1351 = vrot.lane.b32.xlu1 %v1342_v22, %s3374_s5 }
 0x626   :  { %1349 = vrot.lane.b32.xlu0 %v1341_v32, %s3374_s5 }
 0x673   :  { %v1290_v27 = vpop.permute.xlu1 %1289 }
 0x674   :  { %v1292_v47 = vpop.permute.xlu0 %1291 }
 0x677   :  { %v1344_v54 = vpop.permute.xlu1 %1343 }
 0x678   :  { %v1317_v14 = vpop.permute.xlu0 %1316 }
 0x67b   :  { %v1298_v16 = vpop.permute.xlu1 %1297 }
 0x67c   :  { %v1264_v49 = vpop.permute.xlu0 %1263 }
 0x67d   :  { %v1358_v24 = vsel %vm311_vm7, %v3613_v62, %v1264_v49  ;;  %v1237_v49 = vmul.f32 %v4163_v48, %v3639_v8 }
 0x67e   :  { %v1363_v40 = vsel %vm323_vm9, %v1358_v24, %v1290_v27 }
 0x67f   :  { %v1266_v53 = vpop.permute.xlu1 %1265  ;;  %v1368_v56 = vsel %vm583_vm11, %v1363_v40, %v1317_v14 }
 0x680   :  { %v1359_v60 = vsel %vm311_vm7, %v1235_v42, %v1266_v53  ;;  %v1346_v2 = vpop.permute.xlu0 %1345  ;;  %v1373_v36 = vsel %vm589_vm12, %v1368_v56, %v1344_v54 }
 0x681   :  { %v1364_v19 = vsel %vm323_vm9, %v1359_v60, %v1292_v47  ;;  %v1383_v35 = vrot.slane %v1373_v36, 6  ;;  %v1238_v47 = vmul.f32 %v4153_v6, %v3630_v20 }
 0x683   :  { %v1319_v0 = vpop.permute.xlu1 %1318 }
 0x684   :  { %v1369_v51 = vsel %vm583_vm11, %v1364_v19, %v1319_v0  ;;  %v1296_v23 = vpop.permute.xlu0 %1295 }
 0x685   :  { %v1374_v34 = vsel %vm589_vm12, %v1369_v51, %v1346_v2 }
 0x686   :  { %v1384_v9 = vrot.slane %v1374_v34, 6 }
 0x687   :  { %v1272_v39 = vpop.permute.xlu1 %1271 }
 0x688   :  { %v1268_v4 = vpop.permute.xlu0 %1267  ;;  %v1385_v41 = vsel %vm172_vm3, %v1383_v35, %v1384_v9  ;;  %v1362_v58 = vsel %vm311_vm7, %v1238_v47, %v1272_v39 }
 0x689   :  { %3183 = vmatprep.mubr.msk.f32.mxu0 %vm615_vm13, %v1385_v41  ;;  %v1360_v5 = vsel %vm311_vm7, %v1236_v11, %v1268_v4  ;;  %v1367_v6 = vsel %vm323_vm9, %v1362_v58, %v1298_v16 }
 0x68b   :  { %v1294_v45 = vpop.permute.xlu1 %1293 }
 0x68c   :  { %v1321_v37 = vpop.permute.xlu0 %1320  ;;  %v1365_v46 = vsel %vm323_vm9, %v1360_v5, %v1294_v45 }
 0x68d   :  { %v1370_v32 = vsel %vm583_vm11, %v1365_v46, %v1321_v37 }
 0x68f   :  { %v1325_v22 = vpop.permute.xlu1 %1324 }
 0x690   :  { %v1348_v27 = vpop.permute.xlu0 %1347  ;;  %v1372_v60 = vsel %vm583_vm11, %v1367_v6, %v1325_v22 }
 0x691   :  { %v1375_v54 = vsel %vm589_vm12, %v1370_v32, %v1348_v27 }
 0x692   :  { %v1386_v14 = vrot.slane %v1375_v54, 6 }
 0x693   :  { %v1270_v24 = vpop.permute.xlu1 %1269 }
 0x694   :  { %v1361_v40 = vsel %vm311_vm7, %v1237_v49, %v1270_v24  ;;  %v1323_v42 = vpop.permute.xlu0 %1322  ;;  %v1387_v53 = vsel %vm172_vm3, %v1384_v9, %v1386_v14 }
 0x695   :  { %v1366_v56 = vsel %vm323_vm9, %v1361_v40, %v1296_v23  ;;  %3184 = vmatmul.mubr.msk.f32.vlgmr.msra.gmra.mxu0 %vm615_vm13, %v1387_v53 }
 0x696   :  { %3206 = vmatpush3.msra.mxu0 %v3862_v13  ;;  %v1371_v48 = vsel %vm583_vm11, %v1366_v56, %v1323_v42 }
 0x697   :  { %v1352_v2 = vpop.permute.xlu1 %1351  ;;  %3207 = vmatprep.subr.mxu0 %v3881_v63 }
 0x698   :  { %v1377_v0 = vsel %vm589_vm12, %v1372_v60, %v1352_v2  ;;  %v1350_v19 = vpop.permute.xlu0 %1349  ;;  %3208 = vmatpush3.msra.mxu0 %v3881_v63 }
 0x699   :  { %v1390_v36 = vrot.slane %v1377_v0, 6  ;;  %v1376_v51 = vsel %vm589_vm12, %v1371_v48, %v1350_v19  ;;  %3209 = vmatprep.subr.mxu0 %v3886_v52 }
 0x69a   :  { %v1388_v16 = vrot.slane %v1376_v51, 6  ;;  %3210 = vmatpush3.msra.mxu0 %v3886_v52 }
 0x69b   :  { %3211 = vmatprep.subr.mxu0 %v3907_v15 }
 0x69c   :  { %v1389_v23 = vsel %vm172_vm3, %v1386_v14, %v1388_v16  ;;  %v1391_v34 = vsel %vm172_vm3, %v1388_v16, %v1390_v36  ;;  %3212 = vmatpush3.msra.mxu0 %v3907_v15 }
 0x69d   :  { %3186 = vmatprep.mubr.msk.f32.mxu0 %vm615_vm13, %v1389_v23  ;;  %3213 = vmatprep.subr.mxu0 %v3916_v26 }
 0x69e   :  { %3187 = vmatmul.mubr.msk.f32.gmra.mxu0 %vm615_vm13, %v1391_v34 }
 0x69f   :  { %3214 = vmatpush3.msra.mxu0 %v3916_v26 }
 0x6a0   :  { %3237 = vmatprep.subr.mxu0 %v3862_v13 }
 0x755   :  { %v3185_v63 = vpop.f32.mrf.mxu0 }
 0x756   :  { %v1472_v52 = vadd.f32 %v3185_v63, %v4004_v59 }
 0x757   :  { %v1466_v9 = vpop.f32.mrf.mxu0 }
 0x758   :  { %v1486_v35 = vadd.f32 %v1472_v52, %v4010_v7  ;;  %v1467_v39 = vadd.f32 %v4004_v59, %v1466_v9 }
 0x75a   :  { %v1490_v4 = vmax.f32 %v1486_v35, 0.0  ;;  %v1485_v15 = vadd.f32 %v1467_v39, %v4012_v25 }
 0x75c   :  { %v4264_v41 = vmax.f32 %v1490_v4, 0.0  ;;  %v1489_v11 = vmax.f32 %v1485_v15, 0.0 }
 0x75e   :  { %v4266_v45 = vmax.f32 %v1489_v11, 0.0  ;;  %v3188_v5 = vpop.f32.mrf.mxu0  ;;  %v1545_v46 = vrot.slane %v4264_v41, 2  ;;  %v1502_v42 = vmul.f32 %v4264_v41, %v3507_v31  ;;  %v1506_v60 = vmul.f32 %v4264_v41, %v3529_v43 }
 0x75f   :  { %v1482_v26 = vadd.f32 %v3188_v5, %v4004_v59 }
 0x760   :  { %v1476_v13 = vpop.f32.mrf.mxu0  ;;  %v1544_v37 = vrot.slane %v4266_v45, 2  ;;  %v1509_v7 = vmul.f32 %v4266_v45, %v3499_v28  ;;  %v1505_v32 = vmul.f32 %v4266_v45, %v3516_v38  ;;  %v1501_v47 = vmul.f32 %v4266_v45, %v3504_v30 }
 0x761   :  { %v1488_v22 = vadd.f32 %v1482_v26, %v4029_v50  ;;  %v1477_v25 = vadd.f32 %v4004_v59, %v1476_v13  ;;  %v1519_v6 = vrot.slane %v1502_v42, 1  ;;  %v1571_v51 = vrot.slane %v1506_v60, 3 }
 0x762   :  { %1551 = vrot.lane.b32.xlu1 %v1544_v37, %s3371_s0  ;;  %v1546_v27 = vsel %vm82_vm0, %v1544_v37, %v1545_v46  ;;  %v1597_v49 = vrot.slane %v1509_v7, 4  ;;  %v1570_v50 = vrot.slane %v1505_v32, 3  ;;  %v1517_v24 = vrot.slane %v1501_v47, 1 }
 0x763   :  { %v1492_v54 = vmax.f32 %v1488_v22, 0.0  ;;  %v1487_v14 = vadd.f32 %v1477_v25, %v4038_v12  ;;  %1553 = vrot.lane.b32.xlu0 %v1546_v27, %s3371_s0  ;;  %v1510_v12 = vmul.f32 %v4264_v41, %v3557_v1 }
 0x764   :  { %v1518_v56 = vsel %vm112_vm1, %v3544_v57, %v1517_v24  ;;  %v1520_v48 = vsel %vm112_vm1, %v1517_v24, %v1519_v6  ;;  %v1572_v23 = vsel %vm250_vm4, %v1570_v50, %v1571_v51 }
 0x765   :  { %v4283_v58 = vmax.f32 %v1492_v54, 0.0  ;;  %v1491_v59 = vmax.f32 %v1487_v14, 0.0  ;;  %v1598_v2 = vrot.slane %v1510_v12, 4  ;;  %v1497_v12 = vmul.f32 %v4266_v45, %v3618_v3 }
 0x766   :  { %1605 = vrot.lane.b32.xlu1 %v1597_v49, %s3374_s5 }
 0x767   :  { %1578 = vrot.lane.b32.xlu0 %v1570_v50, %s3375_s28  ;;  %v1549_v40 = vrot.slane %v4283_v58, 2  ;;  %v4292_v53 = vmax.f32 %v1491_v59, 0.0  ;;  %v1599_v0 = vsel %vm280_vm5, %v1597_v49, %v1598_v2  ;;  %v1504_v16 = vmul.f32 %v4283_v58, %v3501_v29 }
 0x768   :  { %v1508_v35 = vmul.f32 %v4283_v58, %v3548_v61  ;;  %v1512_v7 = vmul.f32 %v4283_v58, %v3579_v18 }
 0x769   :  { %v1547_v19 = vrot.slane %v4292_v53, 2  ;;  %v1503_v36 = vmul.f32 %v4292_v53, %v3533_v44  ;;  %v1507_v52 = vmul.f32 %v4292_v53, %v3541_v55  ;;  %v1523_v9 = vrot.slane %v1504_v16, 1 }
 0x76a   :  { %1559 = vrot.lane.b32.xlu1 %v1549_v40, %s3371_s0  ;;  %v1511_v15 = vmul.f32 %v4292_v53, %v3576_v17  ;;  %v1575_v5 = vrot.slane %v1508_v35, 3  ;;  %v1602_v25 = vrot.slane %v1512_v7, 4  ;;  %v1498_v35 = vmul.f32 %v4264_v41, %v3624_v10 }
 0x76b   :  { %1525 = vrot.lane.b32.xlu0 %v1518_v56, %s3370_s18  ;;  %v1550_v34 = vsel %vm82_vm0, %v1547_v19, %v1549_v40  ;;  %v1521_v63 = vrot.slane %v1503_v36, 1  ;;  %v1573_v4 = vrot.slane %v1507_v52, 3  ;;  %v1548_v11 = vsel %vm82_vm0, %v1545_v46, %v1547_v19 }
 0x76c   :  { %v1600_v13 = vrot.slane %v1511_v15, 4  ;;  %v1577_v37 = vsel %vm250_vm4, %v1575_v5, %v3586_v21  ;;  %v1604_v27 = vsel %vm280_vm5, %v1602_v25, %v3595_v33 }
 0x76d   :  { %v1522_v39 = vsel %vm112_vm1, %v1519_v6, %v1521_v63  ;;  %v1574_v26 = vsel %vm250_vm4, %v1571_v51, %v1573_v4  ;;  %v1524_v46 = vsel %vm112_vm1, %v1521_v63, %v1523_v9  ;;  %v1576_v32 = vsel %vm250_vm4, %v1573_v4, %v1575_v5 }
 0x76e   :  { %1527 = vrot.lane.b32.xlu1 %v1520_v48, %s3370_s18  ;;  %v1601_v22 = vsel %vm280_vm5, %v1598_v2, %v1600_v13  ;;  %v1603_v47 = vsel %vm280_vm5, %v1600_v13, %v1602_v25 }
 0x76f   :  { %1607 = vrot.lane.b32.xlu0 %v1599_v0, %s3374_s5 }
 0x772   :  { %1580 = vrot.lane.b32.xlu1 %v1572_v23, %s3375_s28 }
 0x773   :  { %1557 = vrot.lane.b32.xlu0 %v1550_v34, %s3371_s0 }
 0x776   :  { %1533 = vrot.lane.b32.xlu1 %v1523_v9, %s3370_s18 }
 0x777   :  { %1529 = vrot.lane.b32.xlu0 %v1522_v39, %s3370_s18 }
 0x77a   :  { %1555 = vrot.lane.b32.xlu1 %v1548_v11, %s3371_s0 }
 0x77b   :  { %1582 = vrot.lane.b32.xlu0 %v1574_v26, %s3375_s28 }
 0x77e   :  { %1586 = vrot.lane.b32.xlu1 %v1577_v37, %s3375_s28  ;;  %v1500_v37 = vmul.f32 %v4283_v58, %v3630_v20 }
 0x77f   :  { %1609 = vrot.lane.b32.xlu0 %v1601_v22, %s3374_s5 }
 0x782   :  { %1531 = vrot.lane.b32.xlu1 %v1524_v46, %s3370_s18  ;;  %v1499_v46 = vmul.f32 %v4292_v53, %v3639_v8 }
 0x783   :  { %1584 = vrot.lane.b32.xlu0 %v1576_v32, %s3375_s28 }
 0x786   :  { %1613 = vrot.lane.b32.xlu1 %v1604_v27, %s3374_s5 }
 0x787   :  { %1611 = vrot.lane.b32.xlu0 %v1603_v47, %s3374_s5 }
 0x7d4   :  { %v1552_v54 = vpop.permute.xlu1 %1551 }
 0x7d5   :  { %v1554_v14 = vpop.permute.xlu0 %1553 }
 0x7d8   :  { %v1606_v49 = vpop.permute.xlu1 %1605 }
 0x7d9   :  { %v1579_v50 = vpop.permute.xlu0 %1578 }
 0x7dc   :  { %v1560_v59 = vpop.permute.xlu1 %1559 }
 0x7dd   :  { %v1526_v24 = vpop.permute.xlu0 %1525 }
 0x7de   :  { %v1620_v40 = vsel %vm311_vm7, %v3613_v62, %v1526_v24 }
 0x7df   :  { %v1625_v42 = vsel %vm323_vm9, %v1620_v40, %v1552_v54 }
 0x7e0   :  { %v1528_v56 = vpop.permute.xlu1 %1527  ;;  %v1630_v6 = vsel %vm583_vm11, %v1625_v42, %v1579_v50  ;;  %v3332_v50 = vld [vmem:[%s5074_s6 + $0x20] sm:$0xff]  ;;  %v3333_v42 = vld [vmem:[%s5074_s6 + $0x18] sm:$0xff] }
 0x7e1   :  { %v1621_v60 = vsel %vm311_vm7, %v1497_v12, %v1528_v56  ;;  %v1608_v2 = vpop.permute.xlu0 %1607  ;;  %v1635_v19 = vsel %vm589_vm12, %v1630_v6, %v1606_v49 }
 0x7e2   :  { %v1626_v0 = vsel %vm323_vm9, %v1621_v60, %v1554_v14  ;;  %v1645_v34 = vrot.slane %v1635_v19, 6 }
 0x7e4   :  { %v1581_v48 = vpop.permute.xlu1 %1580 }
 0x7e5   :  { %v1631_v36 = vsel %vm583_vm11, %v1626_v0, %v1581_v48  ;;  %v1558_v51 = vpop.permute.xlu0 %1557  ;;  %v3335_v0 = vld [vmem:[%s5074_s6 + $0x8] sm:$0xff] }
 0x7e6   :  { %v1636_v16 = vsel %vm589_vm12, %v1631_v36, %v1608_v2  ;;  %v3334_v2 = vld [vmem:[%s5074_s6 + $0x10] sm:$0xff] }
 0x7e7   :  { %v1646_v23 = vrot.slane %v1636_v16, 6 }
 0x7e8   :  { %v1534_v63 = vpop.permute.xlu1 %1533 }
 0x7e9   :  { %v1530_v52 = vpop.permute.xlu0 %1529  ;;  %v1647_v9 = vsel %vm172_vm3, %v1645_v34, %v1646_v23  ;;  %v1624_v25 = vsel %vm311_vm7, %v1500_v37, %v1534_v63 }
 0x7ea   :  { %3199 = vmatprep.mubr.msk.f32.mxu1 %vm615_vm13, %v1647_v9  ;;  %v1622_v4 = vsel %vm311_vm7, %v1498_v35, %v1530_v52  ;;  %v1629_v49 = vsel %vm323_vm9, %v1624_v25, %v1560_v59 }
 0x7ec   :  { %v1556_v39 = vpop.permute.xlu1 %1555 }
 0x7ed   :  { %v1583_v15 = vpop.permute.xlu0 %1582  ;;  %v1627_v11 = vsel %vm323_vm9, %v1622_v4, %v1556_v39 }
 0x7ee   :  { %v1632_v26 = vsel %vm583_vm11, %v1627_v11, %v1583_v15 }
 0x7f0   :  { %v1587_v5 = vpop.permute.xlu1 %1586 }
 0x7f1   :  { %v1610_v13 = vpop.permute.xlu0 %1609  ;;  %v1634_v24 = vsel %vm583_vm11, %v1629_v49, %v1587_v5 }
 0x7f2   :  { %v1637_v7 = vsel %vm589_vm12, %v1632_v26, %v1610_v13 }
 0x7f3   :  { %v1648_v22 = vrot.slane %v1637_v7, 6 }
 0x7f4   :  { %v1532_v32 = vpop.permute.xlu1 %1531 }
 0x7f5   :  { %v1649_v27 = vsel %vm172_vm3, %v1646_v23, %v1648_v22  ;;  %v1623_v47 = vsel %vm311_vm7, %v1499_v46, %v1532_v32  ;;  %v1585_v54 = vpop.permute.xlu0 %1584  ;;  %v4397_v23 = vld [vmem:[%s5075_s7] ss:$0 sm:$0xff] }
 0x7f6   :  { %v1628_v14 = vsel %vm323_vm9, %v1623_v47, %v1558_v51  ;;  %3200 = vmatmul.mubr.msk.f32.vlgmr.msra.gmra.mxu1 %vm615_vm13, %v1649_v27  ;;  %v3336_v51 = vld [vmem:[%s5074_s6] sm:$0xff] }
 0x7f7   :  { %3222 = vmatpush3.msra.mxu1 %v3332_v50  ;;  %v1633_v12 = vsel %vm583_vm11, %v1628_v14, %v1585_v54 }
 0x7f8   :  { %v1614_v40 = vpop.permute.xlu1 %1613  ;;  %3223 = vmatprep.subr.mxu1 %v3333_v42 }
 0x7f9   :  { %v1639_v56 = vsel %vm589_vm12, %v1634_v24, %v1614_v40  ;;  %v1612_v6 = vpop.permute.xlu0 %1611  ;;  %3224 = vmatpush3.msra.mxu1 %v3333_v42 }
 0x7fa   :  { %v1652_v59 = vrot.slane %v1639_v56, 6  ;;  %v1638_v60 = vsel %vm589_vm12, %v1633_v12, %v1612_v6  ;;  %3225 = vmatprep.subr.mxu1 %v3334_v2 }
 0x7fb   :  { %v1650_v48 = vrot.slane %v1638_v60, 6  ;;  %3226 = vmatpush3.msra.mxu1 %v3334_v2 }
 0x7fc   :  { %3227 = vmatprep.subr.mxu1 %v3335_v0 }
 0x7fd   :  { %v1651_v19 = vsel %vm172_vm3, %v1648_v22, %v1650_v48  ;;  %v1653_v36 = vsel %vm172_vm3, %v1650_v48, %v1652_v59  ;;  %3228 = vmatpush3.msra.mxu1 %v3335_v0 }
 0x7fe   :  { %3202 = vmatprep.mubr.msk.f32.mxu1 %vm615_vm13, %v1651_v19  ;;  %3229 = vmatprep.subr.mxu1 %v3336_v51 }
 0x7ff   :  { %3203 = vmatmul.mubr.msk.f32.gmra.mxu1 %vm615_vm13, %v1653_v36 }
 0x800   :  { %3230 = vmatpush3.msra.mxu1 %v3336_v51 }
 0x8b6   :  { %v3201_v16 = vpop.f32.mrf.mxu1 }
 0x8b7   :  { %v1734_v34 = vadd.f32 %v4397_v23, %v3201_v16 }
 0x8b8   :  { %v1728_v63 = vpop.f32.mrf.mxu1 }
 0x8b9   :  { %v4400_v52 = vmax.f32 %v1734_v34, 0.0  ;;  %v1729_v9 = vadd.f32 %v4397_v23, %v1728_v63 }
 0x8bb   :  { %v4403_v35 = vmax.f32 %v1729_v9, 0.0  ;;  %v1799_v4 = vrot.slane %v4400_v52, 2  ;;  %v1756_v54 = vmul.f32 %v4400_v52, %v3507_v31  ;;  %v1764_v14 = vmul.f32 %v4400_v52, %v3557_v1 }
 0x8bc   :  { %v1760_v40 = vmul.f32 %v4400_v52, %v3529_v43 }
 0x8bd   :  { %v1798_v39 = vrot.slane %v4403_v35, 2  ;;  %v1763_v15 = vmul.f32 %v4403_v35, %v3499_v28  ;;  %v1759_v11 = vmul.f32 %v4403_v35, %v3516_v38  ;;  %v1755_v13 = vmul.f32 %v4403_v35, %v3504_v30 }
 0x8be   :  { %v1773_v24 = vrot.slane %v1756_v54, 1  ;;  %v1852_v42 = vrot.slane %v1764_v14, 4  ;;  %v1825_v60 = vrot.slane %v1760_v40, 3 }
 0x8bf   :  { %v3204_v5 = vpop.f32.mrf.mxu1  ;;  %1805 = vrot.lane.b32.xlu1 %v1798_v39, %s3371_s0  ;;  %v1800_v26 = vsel %vm82_vm0, %v1798_v39, %v1799_v4  ;;  %v1851_v22 = vrot.slane %v1763_v15, 4  ;;  %v1824_v25 = vrot.slane %v1759_v11, 3  ;;  %v1771_v27 = vrot.slane %v1755_v13, 1 }
 0x8c0   :  { %v1744_v37 = vadd.f32 %v4397_v23, %v3204_v5  ;;  %1807 = vrot.lane.b32.xlu0 %v1800_v26, %s3371_s0 }
 0x8c1   :  { %v1738_v7 = vpop.f32.mrf.mxu1  ;;  %v1772_v50 = vsel %vm112_vm1, %v3544_v57, %v1771_v27  ;;  %v1774_v12 = vsel %vm112_vm1, %v1771_v27, %v1773_v24  ;;  %v1853_v56 = vsel %vm280_vm5, %v1851_v22, %v1852_v42  ;;  %v1826_v48 = vsel %vm250_vm4, %v1824_v25, %v1825_v60 }
 0x8c2   :  { %v4417_v46 = vmax.f32 %v1744_v37, 0.0  ;;  %v1739_v32 = vadd.f32 %v4397_v23, %v1738_v7 }
 0x8c3   :  { %1859 = vrot.lane.b32.xlu1 %v1851_v22, %s3374_s5 }
 0x8c4   :  { %1832 = vrot.lane.b32.xlu0 %v1824_v25, %s3375_s28  ;;  %v1803_v47 = vrot.slane %v4417_v46, 2  ;;  %v4427_v49 = vmax.f32 %v1739_v32, 0.0  ;;  %v1758_v2 = vmul.f32 %v4417_v46, %v3501_v29  ;;  %v1762_v16 = vmul.f32 %v4417_v46, %v3548_v61 }
 0x8c5   :  { %v1766_v13 = vmul.f32 %v4417_v46, %v3579_v18 }
 0x8c6   :  { %v1801_v6 = vrot.slane %v4427_v49, 2  ;;  %v1757_v59 = vmul.f32 %v4427_v49, %v3533_v44  ;;  %v1761_v36 = vmul.f32 %v4427_v49, %v3541_v55  ;;  %v1777_v51 = vrot.slane %v1758_v2, 1 }
 0x8c7   :  { %1813 = vrot.lane.b32.xlu1 %v1803_v47, %s3371_s0  ;;  %v1765_v9 = vmul.f32 %v4427_v49, %v3576_v17  ;;  %v1829_v15 = vrot.slane %v1762_v16, 3  ;;  %v1856_v7 = vrot.slane %v1766_v13, 4 }
 0x8c8   :  { %1779 = vrot.lane.b32.xlu0 %v1772_v50, %s3370_s18  ;;  %v1804_v0 = vsel %vm82_vm0, %v1801_v6, %v1803_v47  ;;  %v1775_v19 = vrot.slane %v1757_v59, 1  ;;  %v1827_v63 = vrot.slane %v1761_v36, 3  ;;  %v1802_v39 = vsel %vm82_vm0, %v1799_v4, %v1801_v6 }
 0x8c9   :  { %v1854_v5 = vrot.slane %v1765_v9, 4  ;;  %v1831_v26 = vsel %vm250_vm4, %v1829_v15, %v3586_v21  ;;  %v1858_v25 = vsel %vm280_vm5, %v1856_v7, %v3595_v33 }
 0x8ca   :  { %v1776_v34 = vsel %vm112_vm1, %v1773_v24, %v1775_v19  ;;  %v1828_v11 = vsel %vm250_vm4, %v1825_v60, %v1827_v63  ;;  %v1778_v4 = vsel %vm112_vm1, %v1775_v19, %v1777_v51  ;;  %v1830_v22 = vsel %vm250_vm4, %v1827_v63, %v1829_v15 }
 0x8cb   :  { %1781 = vrot.lane.b32.xlu1 %v1774_v12, %s3370_s18  ;;  %v1855_v37 = vsel %vm280_vm5, %v1852_v42, %v1854_v5  ;;  %v1857_v32 = vsel %vm280_vm5, %v1854_v5, %v1856_v7  ;;  %v1751_v12 = vmul.f32 %v4403_v35, %v3618_v3  ;;  %v1754_v7 = vmul.f32 %v4417_v46, %v3630_v20 }
 0x8cc   :  { %1861 = vrot.lane.b32.xlu0 %v1853_v56, %s3374_s5 }
 0x8cf   :  { %1834 = vrot.lane.b32.xlu1 %v1826_v48, %s3375_s28 }
 0x8d0   :  { %1811 = vrot.lane.b32.xlu0 %v1804_v0, %s3371_s0 }
 0x8d3   :  { %1787 = vrot.lane.b32.xlu1 %v1777_v51, %s3370_s18 }
 0x8d4   :  { %1783 = vrot.lane.b32.xlu0 %v1776_v34, %s3370_s18 }
 0x8d7   :  { %1809 = vrot.lane.b32.xlu1 %v1802_v39, %s3371_s0  ;;  %v1752_v39 = vmul.f32 %v4400_v52, %v3624_v10 }
 0x8d8   :  { %1836 = vrot.lane.b32.xlu0 %v1828_v11, %s3375_s28 }
 0x8db   :  { %1840 = vrot.lane.b32.xlu1 %v1831_v26, %s3375_s28 }
 0x8dc   :  { %1863 = vrot.lane.b32.xlu0 %v1855_v37, %s3374_s5 }
 0x8df   :  { %1785 = vrot.lane.b32.xlu1 %v1778_v4, %s3370_s18 }
 0x8e0   :  { %1838 = vrot.lane.b32.xlu0 %v1830_v22, %s3375_s28 }
 0x8e3   :  { %1867 = vrot.lane.b32.xlu1 %v1858_v25, %s3374_s5 }
 0x8e4   :  { %1865 = vrot.lane.b32.xlu0 %v1857_v32, %s3374_s5  ;;  %v1753_v32 = vmul.f32 %v4427_v49, %v3639_v8 }
 0x931   :  { %v1806_v27 = vpop.permute.xlu1 %1805 }
 0x932   :  { %v1808_v47 = vpop.permute.xlu0 %1807 }
 0x935   :  { %v1860_v54 = vpop.permute.xlu1 %1859 }
 0x936   :  { %v1833_v14 = vpop.permute.xlu0 %1832 }
 0x939   :  { %v1814_v50 = vpop.permute.xlu1 %1813 }
 0x93a   :  { %v1780_v24 = vpop.permute.xlu0 %1779 }
 0x93b   :  { %v1874_v40 = vsel %vm311_vm7, %v3613_v62, %v1780_v24 }
 0x93c   :  { %v1879_v42 = vsel %vm323_vm9, %v1874_v40, %v1806_v27  ;;  %v3338_v40 = vld [vmem:[%s5076_s8 + $0x20] sm:$0xff] }
 0x93d   :  { %v1782_v56 = vpop.permute.xlu1 %1781  ;;  %v1884_v6 = vsel %vm583_vm11, %v1879_v42, %v1833_v14 }
 0x93e   :  { %v1875_v59 = vsel %vm311_vm7, %v1751_v12, %v1782_v56  ;;  %v1862_v60 = vpop.permute.xlu0 %1861  ;;  %v1889_v0 = vsel %vm589_vm12, %v1884_v6, %v1860_v54  ;;  %v3339_v12 = vld [vmem:[%s5076_s8 + $0x18] sm:$0xff] }
 0x93f   :  { %v1880_v48 = vsel %vm323_vm9, %v1875_v59, %v1808_v47  ;;  %v1899_v34 = vrot.slane %v1889_v0, 6  ;;  %v3341_v0 = vld [vmem:[%s5076_s8 + $0x8] sm:$0xff] }
 0x941   :  { %v1835_v2 = vpop.permute.xlu1 %1834 }
 0x942   :  { %v1885_v19 = vsel %vm583_vm11, %v1880_v48, %v1835_v2  ;;  %v1812_v36 = vpop.permute.xlu0 %1811  ;;  %v3340_v2 = vld [vmem:[%s5076_s8 + $0x10] sm:$0xff] }
 0x943   :  { %v1890_v51 = vsel %vm589_vm12, %v1885_v19, %v1862_v60 }
 0x944   :  { %v1900_v16 = vrot.slane %v1890_v51, 6  ;;  %v3342_v51 = vld [vmem:[%s5076_s8] sm:$0xff]  ;;  %s3376_s8 = smov 104  }
 0x945   :  { %v1788_v63 = vpop.permute.xlu1 %1787 }
 0x946   :  { %v1784_v35 = vpop.permute.xlu0 %1783  ;;  %v1901_v9 = vsel %vm172_vm3, %v1899_v34, %v1900_v16  ;;  %v1878_v52 = vsel %vm311_vm7, %v1754_v7, %v1788_v63  ;;  %v4532_v34 = vld [vmem:[%s5077_s9] ss:$0 sm:$0xff]  ;;  %s3377_s9 = smov 40  }
 0x947   :  { %3215 = vmatprep.mubr.msk.f32.mxu0 %vm615_vm13, %v1901_v9  ;;  %v1876_v11 = vsel %vm311_vm7, %v1752_v39, %v1784_v35  ;;  %v1883_v46 = vsel %vm323_vm9, %v1878_v52, %v1814_v50 }
 0x949   :  { %v1810_v15 = vpop.permute.xlu1 %1809 }
 0x94a   :  { %v1837_v5 = vpop.permute.xlu0 %1836  ;;  %v1881_v26 = vsel %vm323_vm9, %v1876_v11, %v1810_v15 }
 0x94b   :  { %v1886_v37 = vsel %vm583_vm11, %v1881_v26, %v1837_v5 }
 0x94d   :  { %v1841_v13 = vpop.permute.xlu1 %1840 }
 0x94e   :  { %v1864_v4 = vpop.permute.xlu0 %1863  ;;  %v1888_v49 = vsel %vm583_vm11, %v1883_v46, %v1841_v13 }
 0x94f   :  { %v1891_v22 = vsel %vm589_vm12, %v1886_v37, %v1864_v4 }
 0x950   :  { %v1902_v25 = vrot.slane %v1891_v22, 6 }
 0x951   :  { %v1786_v27 = vpop.permute.xlu1 %1785 }
 0x952   :  { %v1903_v47 = vsel %vm172_vm3, %v1900_v16, %v1902_v25  ;;  %v1877_v54 = vsel %vm311_vm7, %v1753_v32, %v1786_v27  ;;  %v1839_v14 = vpop.permute.xlu0 %1838 }
 0x953   :  { %v1882_v24 = vsel %vm323_vm9, %v1877_v54, %v1812_v36  ;;  %3216 = vmatmul.mubr.msk.f32.vlgmr.msra.gmra.mxu0 %vm615_vm13, %v1903_v47 }
 0x954   :  { %3238 = vmatpush3.msra.mxu0 %v3338_v40  ;;  %v1887_v56 = vsel %vm583_vm11, %v1882_v24, %v1839_v14 }
 0x955   :  { %v1868_v42 = vpop.permute.xlu1 %1867  ;;  %3239 = vmatprep.subr.mxu0 %v3339_v12 }
 0x956   :  { %v1893_v6 = vsel %vm589_vm12, %v1888_v49, %v1868_v42  ;;  %v1866_v59 = vpop.permute.xlu0 %1865  ;;  %3240 = vmatpush3.msra.mxu0 %v3339_v12 }
 0x957   :  { %v1906_v50 = vrot.slane %v1893_v6, 6  ;;  %v1892_v60 = vsel %vm589_vm12, %v1887_v56, %v1866_v59  ;;  %3241 = vmatprep.subr.mxu0 %v3340_v2 }
 0x958   :  { %v1904_v48 = vrot.slane %v1892_v60, 6  ;;  %3242 = vmatpush3.msra.mxu0 %v3340_v2 }
 0x959   :  { %3243 = vmatprep.subr.mxu0 %v3341_v0 }
 0x95a   :  { %v1905_v19 = vsel %vm172_vm3, %v1902_v25, %v1904_v48  ;;  %v1907_v36 = vsel %vm172_vm3, %v1904_v48, %v1906_v50  ;;  %3244 = vmatpush3.msra.mxu0 %v3341_v0 }
 0x95b   :  { %3218 = vmatprep.mubr.msk.f32.mxu0 %vm615_vm13, %v1905_v19  ;;  %3245 = vmatprep.subr.mxu0 %v3342_v51 }
 0x95c   :  { %3219 = vmatmul.mubr.msk.f32.gmra.mxu0 %vm615_vm13, %v1907_v36 }
 0x95d   :  { %3246 = vmatpush3.msra.mxu0 %v3342_v51 }
 0xa13   :  { %v3217_v16 = vpop.f32.mrf.mxu0 }
 0xa14   :  { %v1988_v63 = vadd.f32 %v4532_v34, %v3217_v16 }
 0xa15   :  { %v1982_v35 = vpop.f32.mrf.mxu0 }
 0xa16   :  { %v2002_v9 = vadd.f32 %v1988_v63, %v4264_v41  ;;  %v1983_v39 = vadd.f32 %v4532_v34, %v1982_v35 }
 0xa18   :  { %v2006_v15 = vmax.f32 %v2002_v9, 0.0  ;;  %v2001_v11 = vadd.f32 %v1983_v39, %v4266_v45 }
 0xa1a   :  { %v4538_v5 = vmax.f32 %v2006_v15, 0.0  ;;  %v2005_v26 = vmax.f32 %v2001_v11, 0.0 }
 0xa1c   :  { %v4540_v13 = vmax.f32 %v2005_v26, 0.0  ;;  %v3220_v37 = vpop.f32.mrf.mxu0  ;;  %v2061_v25 = vrot.slane %v4538_v5, 2  ;;  %v2018_v12 = vmul.f32 %v4538_v5, %v3507_v31  ;;  %v2022_v50 = vmul.f32 %v4538_v5, %v3529_v43 }
 0xa1d   :  { %v1998_v4 = vadd.f32 %v4532_v34, %v3220_v37 }
 0xa1e   :  { %v1992_v7 = vpop.f32.mrf.mxu0  ;;  %v2060_v22 = vrot.slane %v4540_v13, 2  ;;  %v2025_v41 = vmul.f32 %v4540_v13, %v3499_v28  ;;  %v2021_v52 = vmul.f32 %v4540_v13, %v3516_v38  ;;  %v2017_v47 = vmul.f32 %v4540_v13, %v3504_v30 }
 0xa1f   :  { %v2004_v32 = vadd.f32 %v1998_v4, %v4283_v58  ;;  %v1993_v45 = vadd.f32 %v4532_v34, %v1992_v7  ;;  %v2035_v59 = vrot.slane %v2018_v12, 1  ;;  %v2087_v36 = vrot.slane %v2022_v50, 3 }
 0xa20   :  { %2067 = vrot.lane.b32.xlu1 %v2060_v22, %s3371_s0  ;;  %v2062_v27 = vsel %vm82_vm0, %v2060_v22, %v2061_v25  ;;  %v2113_v24 = vrot.slane %v2025_v41, 4  ;;  %v2086_v58 = vrot.slane %v2021_v52, 3  ;;  %v2033_v49 = vrot.slane %v2017_v47, 1 }
 0xa21   :  { %v2008_v54 = vmax.f32 %v2004_v32, 0.0  ;;  %v2003_v14 = vadd.f32 %v1993_v45, %v4292_v53  ;;  %2069 = vrot.lane.b32.xlu0 %v2062_v27, %s3371_s0  ;;  %v2026_v53 = vmul.f32 %v4538_v5, %v3557_v1 }
 0xa22   :  { %v2034_v6 = vsel %vm112_vm1, %v3544_v57, %v2033_v49  ;;  %v2036_v2 = vsel %vm112_vm1, %v2033_v49, %v2035_v59  ;;  %v2088_v16 = vsel %vm250_vm4, %v2086_v58, %v2087_v36 }
 0xa23   :  { %v4557_v46 = vmax.f32 %v2008_v54, 0.0  ;;  %v2007_v40 = vmax.f32 %v2003_v14, 0.0  ;;  %v2114_v60 = vrot.slane %v2026_v53, 4 }
 0xa24   :  { %2121 = vrot.lane.b32.xlu1 %v2113_v24, %s3374_s5 }
 0xa25   :  { %2094 = vrot.lane.b32.xlu0 %v2086_v58, %s3375_s28  ;;  %v2065_v42 = vrot.slane %v4557_v46, 2  ;;  %v4566_v56 = vmax.f32 %v2007_v40, 0.0  ;;  %v2115_v48 = vsel %vm280_vm5, %v2113_v24, %v2114_v60  ;;  %v2020_v51 = vmul.f32 %v4557_v46, %v3501_v29 }
 0xa26   :  { %v2024_v15 = vmul.f32 %v4557_v46, %v3548_v61  ;;  %v2028_v45 = vmul.f32 %v4557_v46, %v3579_v18 }
 0xa27   :  { %v2063_v0 = vrot.slane %v4566_v56, 2  ;;  %v2019_v19 = vmul.f32 %v4566_v56, %v3533_v44  ;;  %v2023_v9 = vmul.f32 %v4566_v56, %v3541_v55  ;;  %v2039_v39 = vrot.slane %v2020_v51, 1 }
 0xa28   :  { %2075 = vrot.lane.b32.xlu1 %v2065_v42, %s3371_s0  ;;  %v2027_v37 = vmul.f32 %v4566_v56, %v3576_v17  ;;  %v2091_v7 = vrot.slane %v2024_v15, 3  ;;  %v2118_v27 = vrot.slane %v2028_v45, 4 }
 0xa29   :  { %2041 = vrot.lane.b32.xlu0 %v2034_v6, %s3370_s18  ;;  %v2066_v63 = vsel %vm82_vm0, %v2063_v0, %v2065_v42  ;;  %v2037_v35 = vrot.slane %v2019_v19, 1  ;;  %v2089_v26 = vrot.slane %v2023_v9, 3  ;;  %v2064_v4 = vsel %vm82_vm0, %v2061_v25, %v2063_v0 }
 0xa2a   :  { %v2116_v41 = vrot.slane %v2027_v37, 4  ;;  %v2093_v32 = vsel %vm250_vm4, %v2091_v7, %v3586_v21  ;;  %v2120_v54 = vsel %vm280_vm5, %v2118_v27, %v3595_v33 }
 0xa2b   :  { %v2038_v11 = vsel %vm112_vm1, %v2035_v59, %v2037_v35  ;;  %v2090_v22 = vsel %vm250_vm4, %v2087_v36, %v2089_v26  ;;  %v2040_v25 = vsel %vm112_vm1, %v2037_v35, %v2039_v39  ;;  %v2092_v47 = vsel %vm250_vm4, %v2089_v26, %v2091_v7 }
 0xa2c   :  { %2043 = vrot.lane.b32.xlu1 %v2036_v2, %s3370_s18  ;;  %v2117_v52 = vsel %vm280_vm5, %v2114_v60, %v2116_v41  ;;  %v2119_v14 = vsel %vm280_vm5, %v2116_v41, %v2118_v27  ;;  %v2013_v59 = vmul.f32 %v4540_v13, %v3618_v3  ;;  %v2014_v26 = vmul.f32 %v4538_v5, %v3624_v10 }
 0xa2d   :  { %2123 = vrot.lane.b32.xlu0 %v2115_v48, %s3374_s5 }
 0xa30   :  { %2096 = vrot.lane.b32.xlu1 %v2088_v16, %s3375_s28 }
 0xa31   :  { %2073 = vrot.lane.b32.xlu0 %v2066_v63, %s3371_s0 }
 0xa34   :  { %2049 = vrot.lane.b32.xlu1 %v2039_v39, %s3370_s18 }
 0xa35   :  { %2045 = vrot.lane.b32.xlu0 %v2038_v11, %s3370_s18 }
 0xa38   :  { %2071 = vrot.lane.b32.xlu1 %v2064_v4, %s3371_s0 }
 0xa39   :  { %2098 = vrot.lane.b32.xlu0 %v2090_v22, %s3375_s28 }
 0xa3c   :  { %2102 = vrot.lane.b32.xlu1 %v2093_v32, %s3375_s28 }
 0xa3d   :  { %2125 = vrot.lane.b32.xlu0 %v2117_v52, %s3374_s5  ;;  %v2016_v52 = vmul.f32 %v4557_v46, %v3630_v20 }
 0xa40   :  { %2047 = vrot.lane.b32.xlu1 %v2040_v25, %s3370_s18 }
 0xa41   :  { %2100 = vrot.lane.b32.xlu0 %v2092_v47, %s3375_s28  ;;  %v2015_v47 = vmul.f32 %v4566_v56, %v3639_v8 }
 0xa44   :  { %2129 = vrot.lane.b32.xlu1 %v2120_v54, %s3374_s5 }
 0xa45   :  { %2127 = vrot.lane.b32.xlu0 %v2119_v14, %s3374_s5 }
 0xa92   :  { %v2068_v24 = vpop.permute.xlu1 %2067 }
 0xa93   :  { %v2070_v58 = vpop.permute.xlu0 %2069 }
 0xa96   :  { %v2122_v40 = vpop.permute.xlu1 %2121 }
 0xa97   :  { %v2095_v49 = vpop.permute.xlu0 %2094 }
 0xa9a   :  { %v2076_v42 = vpop.permute.xlu1 %2075 }
 0xa9b   :  { %v2042_v12 = vpop.permute.xlu0 %2041 }
 0xa9c   :  { %v2136_v53 = vsel %vm311_vm7, %v3613_v62, %v2042_v12 }
 0xa9d   :  { %v2141_v6 = vsel %vm323_vm9, %v2136_v53, %v2068_v24 }
 0xa9e   :  { %v2044_v50 = vpop.permute.xlu1 %2043  ;;  %v2146_v60 = vsel %vm583_vm11, %v2141_v6, %v2095_v49 }
 0xa9f   :  { %v2137_v2 = vsel %vm311_vm7, %v2013_v59, %v2044_v50  ;;  %v2124_v48 = vpop.permute.xlu0 %2123  ;;  %v2151_v36 = vsel %vm589_vm12, %v2146_v60, %v2122_v40 }
 0xaa0   :  { %v2142_v19 = vsel %vm323_vm9, %v2137_v2, %v2070_v58  ;;  %v2161_v9 = vrot.slane %v2151_v36, 6 }
 0xaa2   :  { %v2097_v0 = vpop.permute.xlu1 %2096 }
 0xaa3   :  { %v2147_v51 = vsel %vm583_vm11, %v2142_v19, %v2097_v0  ;;  %v2074_v16 = vpop.permute.xlu0 %2073 }
 0xaa4   :  { %v2152_v63 = vsel %vm589_vm12, %v2147_v51, %v2124_v48 }
 0xaa5   :  { %v2162_v35 = vrot.slane %v2152_v63, 6 }
 0xaa6   :  { %v2050_v39 = vpop.permute.xlu1 %2049 }
 0xaa7   :  { %v2046_v15 = vpop.permute.xlu0 %2045  ;;  %v2163_v11 = vsel %vm172_vm3, %v2161_v9, %v2162_v35  ;;  %v2140_v54 = vsel %vm311_vm7, %v2016_v52, %v2050_v39 }
 0xaa8   :  { %3231 = vmatprep.mubr.msk.f32.mxu1 %vm615_vm13, %v2163_v11  ;;  %v2138_v4 = vsel %vm311_vm7, %v2014_v26, %v2046_v15  ;;  %v2145_v12 = vsel %vm323_vm9, %v2140_v54, %v2076_v42 }
 0xaaa   :  { %v2072_v37 = vpop.permute.xlu1 %2071 }
 0xaab   :  { %v2099_v7 = vpop.permute.xlu0 %2098  ;;  %v2143_v22 = vsel %vm323_vm9, %v2138_v4, %v2072_v37 }
 0xaac   :  { %v2148_v32 = vsel %vm583_vm11, %v2143_v22, %v2099_v7 }
 0xaae   :  { %v2103_v41 = vpop.permute.xlu1 %2102 }
 0xaaf   :  { %v2126_v45 = vpop.permute.xlu0 %2125  ;;  %v2150_v53 = vsel %vm583_vm11, %v2145_v12, %v2103_v41 }
 0xab0   :  { %v2153_v25 = vsel %vm589_vm12, %v2148_v32, %v2126_v45 }
 0xab1   :  { %v2164_v27 = vrot.slane %v2153_v25, 6 }
 0xab2   :  { %v2048_v14 = vpop.permute.xlu1 %2047 }
 0xab3   :  { %v2165_v24 = vsel %vm172_vm3, %v2162_v35, %v2164_v27  ;;  %v2139_v58 = vsel %vm311_vm7, %v2015_v47, %v2048_v14  ;;  %v2101_v40 = vpop.permute.xlu0 %2100 }
 0xab4   :  { %v2144_v49 = vsel %vm323_vm9, %v2139_v58, %v2074_v16  ;;  %3232 = vmatmul.mubr.msk.f32.vlgmr.msra.gmra.mxu1 %vm615_vm13, %v2165_v24 }
 0xab5   :  { %v2149_v59 = vsel %vm583_vm11, %v2144_v49, %v2101_v40 }
 0xab6   :  { %v2130_v6 = vpop.permute.xlu1 %2129 }
 0xab7   :  { %v2155_v50 = vsel %vm589_vm12, %v2150_v53, %v2130_v6  ;;  %v2128_v60 = vpop.permute.xlu0 %2127 }
 0xab8   :  { %v2168_v2 = vrot.slane %v2155_v50, 6  ;;  %v2154_v48 = vsel %vm589_vm12, %v2149_v59, %v2128_v60 }
 0xab9   :  { %v2166_v0 = vrot.slane %v2154_v48, 6 }
 0xabb   :  { %v2167_v19 = vsel %vm172_vm3, %v2164_v27, %v2166_v0  ;;  %v2169_v36 = vsel %vm172_vm3, %v2166_v0, %v2168_v2 }
 0xabc   :  { %3234 = vmatprep.mubr.msk.f32.mxu1 %vm615_vm13, %v2167_v19 }
 0xabd   :  { %3235 = vmatmul.mubr.msk.f32.gmra.mxu1 %vm615_vm13, %v2169_v36 }
 0xb74   :  { %v3233_v42 = vpop.f32.mrf.mxu1 }
 0xb75   :  { %v2250_v51 = vadd.f32 %v4397_v23, %v3233_v42 }
 0xb76   :  { %v2244_v16 = vpop.f32.mrf.mxu1 }
 0xb77   :  { %v4654_v63 = vmax.f32 %v2250_v51, 0.0  ;;  %v2245_v35 = vadd.f32 %v4397_v23, %v2244_v16 }
 0xb79   :  { %v4657_v9 = vmax.f32 %v2245_v35, 0.0  ;;  %v2315_v15 = vrot.slane %v4654_v63, 2  ;;  %v2280_v27 = vmul.f32 %v4654_v63, %v3557_v1  ;;  %v2276_v14 = vmul.f32 %v4654_v63, %v3529_v43 }
 0xb7b   :  { %v2314_v39 = vrot.slane %v4657_v9, 2  ;;  %v2279_v11 = vmul.f32 %v4657_v9, %v3499_v28  ;;  %v2275_v26 = vmul.f32 %v4657_v9, %v3516_v38  ;;  %v2271_v7 = vmul.f32 %v4657_v9, %v3504_v30 }
 0xb7c   :  { %v2272_v30 = vmul.f32 %v4654_v63, %v3507_v31  ;;  %v2368_v24 = vrot.slane %v2280_v27, 4 }
 0xb7d   :  { %v3236_v37 = vpop.f32.mrf.mxu1  ;;  %2321 = vrot.lane.b32.xlu1 %v2314_v39, %s3371_s0  ;;  %v2316_v4 = vsel %vm82_vm0, %v2314_v39, %v2315_v15  ;;  %v2367_v32 = vrot.slane %v2279_v11, 4  ;;  %v2340_v28 = vrot.slane %v2275_v26, 3  ;;  %v2287_v38 = vrot.slane %v2271_v7, 1 }
 0xb7e   :  { %v2260_v22 = vadd.f32 %v4397_v23, %v3236_v37  ;;  %2323 = vrot.lane.b32.xlu0 %v2316_v4, %s3371_s0  ;;  %v2289_v54 = vrot.slane %v2272_v30, 1 }
 0xb7f   :  { %v2254_v41 = vpop.f32.mrf.mxu1  ;;  %v2369_v31 = vsel %vm280_vm5, %v2367_v32, %v2368_v24 }
 0xb80   :  { %v4671_v45 = vmax.f32 %v2260_v22, 0.0  ;;  %v2255_v52 = vadd.f32 %v4397_v23, %v2254_v41  ;;  %v2288_v23 = vsel %vm112_vm1, %v3544_v57, %v2287_v38  ;;  %v2290_v58 = vsel %vm112_vm1, %v2287_v38, %v2289_v54 }
 0xb81   :  { %2375 = vrot.lane.b32.xlu1 %v2367_v32, %s3374_s5  ;;  %v2341_v57 = vrot.slane %v2276_v14, 3  ;;  %v2268_v14 = vmul.f32 %v4654_v63, %v3624_v10 }
 0xb82   :  { %2348 = vrot.lane.b32.xlu0 %v2340_v28, %s3375_s28  ;;  %v2319_v25 = vrot.slane %v4671_v45, 2  ;;  %v4681_v47 = vmax.f32 %v2255_v52, 0.0  ;;  %v2274_v49 = vmul.f32 %v4671_v45, %v3501_v29  ;;  %v2282_v19 = vmul.f32 %v4671_v45, %v3579_v18 }
 0xb83   :  { %v2342_v43 = vsel %vm250_vm4, %v2340_v28, %v2341_v57 }
 0xb84   :  { %v2317_v1 = vrot.slane %v4681_v47, 2  ;;  %v2273_v40 = vmul.f32 %v4681_v47, %v3533_v44  ;;  %v2277_v6 = vmul.f32 %v4681_v47, %v3541_v55  ;;  %v2293_v59 = vrot.slane %v2274_v49, 1 }
 0xb85   :  { %2329 = vrot.lane.b32.xlu1 %v2319_v25, %s3371_s0  ;;  %v2278_v44 = vmul.f32 %v4671_v45, %v3548_v61  ;;  %v2281_v60 = vmul.f32 %v4681_v47, %v3576_v17  ;;  %v2372_v42 = vrot.slane %v2282_v19, 4 }
 0xb86   :  { %2295 = vrot.lane.b32.xlu0 %v2288_v23, %s3370_s18  ;;  %v2320_v12 = vsel %vm82_vm0, %v2317_v1, %v2319_v25  ;;  %v2291_v53 = vrot.slane %v2273_v40, 1  ;;  %v2343_v50 = vrot.slane %v2277_v6, 3  ;;  %v2318_v2 = vsel %vm82_vm0, %v2315_v15, %v2317_v1 }
 0xb87   :  { %v2345_v48 = vrot.slane %v2278_v44, 3  ;;  %v2370_v0 = vrot.slane %v2281_v60, 4  ;;  %v2269_v6 = vmul.f32 %v4681_v47, %v3639_v8  ;;  %vm2734_vm0 = vcmask 457728  }
 0xb88   :  { %v2292_v29 = vsel %vm112_vm1, %v2289_v54, %v2291_v53  ;;  %v2344_v55 = vsel %vm250_vm4, %v2341_v57, %v2343_v50  ;;  %v2294_v36 = vsel %vm112_vm1, %v2291_v53, %v2293_v59  ;;  %vm2739_vm1 = vcmask 523264  }
 0xb89   :  { %2297 = vrot.lane.b32.xlu1 %v2290_v58, %s3370_s18  ;;  %v2347_v61 = vsel %vm250_vm4, %v2345_v48, %v3586_v21  ;;  %v2371_v17 = vsel %vm280_vm5, %v2368_v24, %v2370_v0  ;;  %v2346_v51 = vsel %vm250_vm4, %v2343_v50, %v2345_v48  ;;  %v2374_v21 = vsel %vm280_vm5, %v2372_v42, %v3595_v33 }
 0xb8a   :  { %2377 = vrot.lane.b32.xlu0 %v2369_v31, %s3374_s5  ;;  %v2373_v18 = vsel %vm280_vm5, %v2370_v0, %v2372_v42  ;;  %v2267_v33 = vmul.f32 %v4657_v9, %v3618_v3  ;;  %vm2754_vm4 = vcmask 719872   ;;  %vm2759_vm5 = vcmask 785408  }
 0xb8d   :  { %2350 = vrot.lane.b32.xlu1 %v2342_v43, %s3375_s28  ;;  %v2270_v43 = vmul.f32 %v4671_v45, %v3630_v20 }
 0xb8e   :  { %2327 = vrot.lane.b32.xlu0 %v2320_v12, %s3371_s0 }
 0xb91   :  { %2303 = vrot.lane.b32.xlu1 %v2293_v59, %s3370_s18 }
 0xb92   :  { %2299 = vrot.lane.b32.xlu0 %v2292_v29, %s3370_s18 }
 0xb95   :  { %2325 = vrot.lane.b32.xlu1 %v2318_v2, %s3371_s0 }
 0xb96   :  { %2352 = vrot.lane.b32.xlu0 %v2344_v55, %s3375_s28 }
 0xb99   :  { %2356 = vrot.lane.b32.xlu1 %v2347_v61, %s3375_s28 }
 0xb9a   :  { %2379 = vrot.lane.b32.xlu0 %v2371_v17, %s3374_s5 }
 0xb9d   :  { %2301 = vrot.lane.b32.xlu1 %v2294_v36, %s3370_s18 }
 0xb9e   :  { %2354 = vrot.lane.b32.xlu0 %v2346_v51, %s3375_s28 }
 0xba1   :  { %2383 = vrot.lane.b32.xlu1 %v2374_v21, %s3374_s5 }
 0xba2   :  { %2381 = vrot.lane.b32.xlu0 %v2373_v18, %s3374_s5 }
 0xbef   :  { %v2322_v16 = vpop.permute.xlu1 %2321 }
 0xbf0   :  { %v2324_v35 = vpop.permute.xlu0 %2323 }
 0xbf3   :  { %v2376_v39 = vpop.permute.xlu1 %2375 }
 0xbf4   :  { %v2349_v15 = vpop.permute.xlu0 %2348 }
 0xbf7   :  { %v2330_v11 = vpop.permute.xlu1 %2329 }
 0xbf8   :  { %v2296_v26 = vpop.permute.xlu0 %2295 }
 0xbf9   :  { %v2390_v37 = vsel %vm311_vm7, %v3613_v62, %v2296_v26 }
 0xbfa   :  { %v2395_v4 = vsel %vm323_vm9, %v2390_v37, %v2322_v16 }
 0xbfb   :  { %v2298_v7 = vpop.permute.xlu1 %2297  ;;  %v2400_v22 = vsel %vm583_vm11, %v2395_v4, %v2349_v15  ;;  %v2875_v4 = vld [vmem:[%s5078_s10 + $0x70] sm:$0xff] }
 0xbfc   :  { %v2391_v41 = vsel %vm311_vm7, %v2267_v33, %v2298_v7  ;;  %v2378_v32 = vpop.permute.xlu0 %2377  ;;  %v2405_v38 = vsel %vm589_vm12, %v2400_v22, %v2376_v39  ;;  %v2874_v33 = vld [vmem:[%s5078_s10 + $0x68] sm:$0xff] }
 0xbfd   :  { %v2396_v52 = vsel %vm323_vm9, %v2391_v41, %v2324_v35  ;;  %v2415_v23 = vrot.slane %v2405_v38, 6  ;;  %v2873_v41 = vld [vmem:[%s5078_s10 + $0x60] sm:$0xff] }
 0xbff   :  { %v2351_v28 = vpop.permute.xlu1 %2350 }
 0xc00   :  { %v2401_v25 = vsel %vm583_vm11, %v2396_v52, %v2351_v28  ;;  %v2328_v30 = vpop.permute.xlu0 %2327  ;;  %v2872_v52 = vld [vmem:[%s5078_s10 + $0x58] sm:$0xff] }
 0xc01   :  { %v2406_v62 = vsel %vm589_vm12, %v2401_v25, %v2378_v32 }
 0xc02   :  { %v2416_v27 = vrot.slane %v2406_v62, 6 }
 0xc03   :  { %v2304_v54 = vpop.permute.xlu1 %2303 }
 0xc04   :  { %v2300_v3 = vpop.permute.xlu0 %2299  ;;  %v2417_v9 = vsel %vm172_vm3, %v2415_v23, %v2416_v27  ;;  %v2394_v10 = vsel %vm311_vm7, %v2270_v43, %v2304_v54 }
 0xc05   :  { %3247 = vmatprep.mubr.msk.f32.mxu0 %vm615_vm13, %v2417_v9  ;;  %v2392_v58 = vsel %vm311_vm7, %v2268_v14, %v2300_v3  ;;  %v2399_v20 = vsel %vm323_vm9, %v2394_v10, %v2330_v11  ;;  %v2869_v3 = vld [vmem:[%s5078_s10 + $0x40] sm:$0xff]  ;;  %v2868_v14 = vld [vmem:[%s5078_s10 + $0x38] sm:$0xff] }
 0xc07   :  { %v2326_v24 = vpop.permute.xlu1 %2325 }
 0xc08   :  { %v2353_v31 = vpop.permute.xlu0 %2352  ;;  %v2397_v1 = vsel %vm323_vm9, %v2392_v58, %v2326_v24 }
 0xc09   :  { %v2402_v57 = vsel %vm583_vm11, %v2397_v1, %v2353_v31  ;;  %v2867_v1 = vld [vmem:[%s5078_s10 + $0x30] sm:$0xff] }
 0xc0b   :  { %v2357_v40 = vpop.permute.xlu1 %2356 }
 0xc0c   :  { %v2380_v49 = vpop.permute.xlu0 %2379  ;;  %v2404_v45 = vsel %vm583_vm11, %v2399_v20, %v2357_v40 }
 0xc0d   :  { %v2407_v12 = vsel %vm589_vm12, %v2402_v57, %v2380_v49  ;;  %v2866_v49 = vld [vmem:[%s5078_s10 + $0x28] sm:$0xff] }
 0xc0e   :  { %v2418_v53 = vrot.slane %v2407_v12, 6 }
 0xc0f   :  { %v2302_v63 = vpop.permute.xlu1 %2301 }
 0xc10   :  { %v2419_v59 = vsel %vm172_vm3, %v2416_v27, %v2418_v53  ;;  %v2393_v44 = vsel %vm311_vm7, %v2269_v6, %v2302_v63  ;;  %v2355_v29 = vpop.permute.xlu0 %2354  ;;  %v2870_v27 = vld [vmem:[%s5078_s10 + $0x48] sm:$0xff]  ;;  %v2864_v63 = vld [vmem:[%s5078_s10 + $0x18] sm:$0xff] }
 0xc11   :  { %v2398_v50 = vsel %vm323_vm9, %v2393_v44, %v2328_v30  ;;  %3248 = vmatmul.mubr.msk.f32.vlgmr.msra.gmra.mxu0 %vm615_vm13, %v2419_v59  ;;  %v2871_v30 = vld [vmem:[%s5078_s10 + $0x50] sm:$0xff] }
 0xc12   :  { %v2403_v2 = vsel %vm583_vm11, %v2398_v50, %v2355_v29  ;;  %v2863_v29 = vld [vmem:[%s5078_s10 + $0x10] sm:$0xff] }
 0xc13   :  { %v2384_v60 = vpop.permute.xlu1 %2383 }
 0xc14   :  { %v2409_v8 = vsel %vm589_vm12, %v2404_v45, %v2384_v60  ;;  %v2382_v47 = vpop.permute.xlu0 %2381  ;;  %v2862_v45 = vld [vmem:[%s5078_s10 + $0x8] sm:$0xff] }
 0xc15   :  { %v2422_v48 = vrot.slane %v2409_v8, 6  ;;  %v2408_v55 = vsel %vm589_vm12, %v2403_v2, %v2382_v47 }
 0xc16   :  { %v2420_v0 = vrot.slane %v2408_v55, 6 }
 0xc18   :  { %v2421_v61 = vsel %vm172_vm3, %v2418_v53, %v2420_v0  ;;  %v2423_v19 = vsel %vm172_vm3, %v2420_v0, %v2422_v48  ;;  %v2865_v53 = vld [vmem:[%s5078_s10 + $0x20] sm:$0xff]  ;;  %vm2749_vm3 = vcmask 654336  }
 0xc19   :  { %3250 = vmatprep.mubr.msk.f32.mxu0 %vm615_vm13, %v2421_v61 }
 0xc1a   :  { %3251 = vmatmul.mubr.msk.f32.gmra.mxu0 %vm615_vm13, %v2423_v19 }
 0xcd1   :  { %v3249_v17 = vpop.f32.mrf.mxu0 }
 0xcd2   :  { %v2504_v36 = vadd.f32 %v4532_v34, %v3249_v17 }
 0xcd3   :  { %v2498_v42 = vpop.f32.mrf.mxu0 }
 0xcd4   :  { %v2518_v51 = vadd.f32 %v2504_v36, %v4538_v5  ;;  %v2499_v18 = vadd.f32 %v4532_v34, %v2498_v42 }
 0xcd6   :  { %v4770_v21 = vmax.f32 %v2518_v51, 0.0  ;;  %v2517_v16 = vadd.f32 %v2499_v18, %v4540_v13 }
 0xcd8   :  { %2543 = vrot.lane.b32.xlu1 %v4770_v21, %s3371_s0  ;;  %2531 = vrot.lane.b32.xlu0 %v4770_v21, %s3370_s18  ;;  %v4782_v5 = vmax.f32 %v2517_v16, 0.0 }
 0xcda   :  { %v3252_v13 = vpop.f32.mrf.mxu0 }
 0xcdb   :  { %v2514_v35 = vadd.f32 %v4532_v34, %v3252_v13 }
 0xcdc   :  { %2555 = vrot.lane.b32.xlu1 %v4770_v21, %s3375_s28  ;;  %2675 = vrot.lane.b32.xlu0 %v4770_v21, %s3376_s8  ;;  %v2508_v11 = vpop.f32.mrf.mxu0 }
 0xcdd   :  { %v2520_v39 = vadd.f32 %v2514_v35, %v4557_v46  ;;  %v2509_v26 = vadd.f32 %v4532_v34, %v2508_v11  ;;  %v3385_v34 = vmov 0.0  }
 0xcde   :  { %3253 = vmatprep.subr.mxu1 %v3385_v34  ;;  %3264 = vmatprep.subr.mxu0 %v3385_v34 }
 0xcdf   :  { %v4826_v15 = vmax.f32 %v2520_v39, 0.0  ;;  %v2519_v46 = vadd.f32 %v2509_v26, %v4566_v56  ;;  %v2876_v56 = vld [vmem:[%s5078_s10 + $0x78] sm:$0xff]  ;;  %3261 = vmatprep.mubr.msk.f32.mxu1 %vm3388_vm14, %v3385_v34  ;;  %3296 = vmatprep.mubr.msk.f32.mxu0 %vm3388_vm14, %v3385_v34 }
 0xce0   :  { %2567 = vrot.lane.b32.xlu1 %v4770_v21, %s3374_s5  ;;  %2529 = vrot.lane.b32.xlu0 %v4782_v5, %s3370_s18 }
 0xce1   :  { %v4842_v37 = vmax.f32 %v2519_v46, 0.0  ;;  %3265 = vmatpush3.msra.mxu0 %v2876_v56 }
 0xce2   :  { %3266 = vmatprep.subr.mxu0 %v3385_v34 }
 0xce3   :  { %3267 = vmatpush3.msra.mxu0 %v2875_v4 }
 0xce4   :  { %2579 = vrot.lane.b32.xlu1 %v4770_v21, %s3377_s9  ;;  %2541 = vrot.lane.b32.xlu0 %v4782_v5, %s3371_s0 }
 0xce5   :  { %3268 = vmatprep.subr.mxu0 %v3385_v34 }
 0xce6   :  { %3269 = vmatpush3.msra.mxu0 %v2874_v33 }
 0xce7   :  { %3270 = vmatprep.subr.mxu0 %v3385_v34 }
 0xce8   :  { %2591 = vrot.lane.b32.xlu1 %v4770_v21, %s3378_s21  ;;  %2553 = vrot.lane.b32.xlu0 %v4782_v5, %s3375_s28 }
 0xce9   :  { %3271 = vmatpush3.msra.mxu0 %v2873_v41 }
 0xcea   :  { %3272 = vmatprep.subr.mxu0 %v3385_v34 }
 0xceb   :  { %3273 = vmatpush3.msra.mxu0 %v2872_v52 }
 0xcec   :  { %2603 = vrot.lane.b32.xlu1 %v4770_v21, %s3379_s22  ;;  %2565 = vrot.lane.b32.xlu0 %v4782_v5, %s3374_s5 }
 0xced   :  { %3274 = vmatprep.subr.mxu0 %v3385_v34 }
 0xcee   :  { %3275 = vmatpush3.msra.mxu0 %v2871_v30 }
 0xcef   :  { %3276 = vmatprep.subr.mxu0 %v3385_v34 }
 0xcf0   :  { %2615 = vrot.lane.b32.xlu1 %v4770_v21, %s3380_s23  ;;  %2577 = vrot.lane.b32.xlu0 %v4782_v5, %s3377_s9 }
 0xcf1   :  { %3277 = vmatpush3.msra.mxu0 %v2870_v27 }
 0xcf2   :  { %3278 = vmatprep.subr.mxu0 %v3385_v34 }
 0xcf3   :  { %3279 = vmatpush3.msra.mxu0 %v2869_v3 }
 0xcf4   :  { %2627 = vrot.lane.b32.xlu1 %v4770_v21, %s3381_s24  ;;  %2589 = vrot.lane.b32.xlu0 %v4782_v5, %s3378_s21 }
 0xcf5   :  { %3280 = vmatprep.subr.mxu0 %v3385_v34 }
 0xcf6   :  { %3281 = vmatpush3.msra.mxu0 %v2868_v14 }
 0xcf7   :  { %3282 = vmatprep.subr.mxu0 %v3385_v34 }
 0xcf8   :  { %2639 = vrot.lane.b32.xlu1 %v4770_v21, %s3382_s25  ;;  %2601 = vrot.lane.b32.xlu0 %v4782_v5, %s3379_s22 }
 0xcf9   :  { %3283 = vmatpush3.msra.mxu0 %v2867_v1 }
 0xcfa   :  { %3284 = vmatprep.subr.mxu0 %v3385_v34 }
 0xcfb   :  { %3285 = vmatpush3.msra.mxu0 %v2866_v49 }
 0xcfc   :  { %2651 = vrot.lane.b32.xlu1 %v4770_v21, %s3383_s26  ;;  %2613 = vrot.lane.b32.xlu0 %v4782_v5, %s3380_s23 }
 0xcfd   :  { %3286 = vmatprep.subr.mxu0 %v3385_v34 }
 0xcfe   :  { %3287 = vmatpush3.msra.mxu0 %v2865_v53 }
 0xcff   :  { %3288 = vmatprep.subr.mxu0 %v3385_v34 }
 0xd00   :  { %2663 = vrot.lane.b32.xlu1 %v4770_v21, %s3384_s4  ;;  %2625 = vrot.lane.b32.xlu0 %v4782_v5, %s3381_s24 }
 0xd01   :  { %3289 = vmatpush3.msra.mxu0 %v2864_v63 }
 0xd02   :  { %3290 = vmatprep.subr.mxu0 %v3385_v34 }
 0xd03   :  { %3291 = vmatpush3.msra.mxu0 %v2863_v29 }
 0xd04   :  { %2649 = vrot.lane.b32.xlu1 %v4782_v5, %s3383_s26  ;;  %2637 = vrot.lane.b32.xlu0 %v4782_v5, %s3382_s25 }
 0xd05   :  { %3292 = vmatprep.subr.mxu0 %v3385_v34 }
 0xd06   :  { %3293 = vmatpush3.msra.mxu0 %v2862_v45 }
 0xd07   :  { %3294 = vmatprep.subr.mxu0 %v3385_v34 }
 0xd08   :  { %2547 = vrot.lane.b32.xlu1 %v4826_v15, %s3371_s0  ;;  %2661 = vrot.lane.b32.xlu0 %v4782_v5, %s3384_s4 }
 0xd0c   :  { %2559 = vrot.lane.b32.xlu1 %v4826_v15, %s3375_s28  ;;  %2535 = vrot.lane.b32.xlu0 %v4826_v15, %s3370_s18 }
 0xd10   :  { %2571 = vrot.lane.b32.xlu1 %v4826_v15, %s3374_s5  ;;  %2583 = vrot.lane.b32.xlu0 %v4826_v15, %s3377_s9 }
 0xd14   :  { %2595 = vrot.lane.b32.xlu1 %v4826_v15, %s3378_s21  ;;  %2533 = vrot.lane.b32.xlu0 %v4842_v37, %s3370_s18  ;;  %s3386_s18 = smov 112  }
 0xd18   :  { %2607 = vrot.lane.b32.xlu1 %v4826_v15, %s3379_s22  ;;  %2545 = vrot.lane.b32.xlu0 %v4842_v37, %s3371_s0  ;;  %s3387_s0 = smov 120  }
 0xd1c   :  { %2619 = vrot.lane.b32.xlu1 %v4826_v15, %s3380_s23  ;;  %2673 = vrot.lane.b32.xlu0 %v4782_v5, %s3376_s8 }
 0xd20   :  { %2631 = vrot.lane.b32.xlu1 %v4826_v15, %s3381_s24  ;;  %2569 = vrot.lane.b32.xlu0 %v4842_v37, %s3374_s5 }
 0xd24   :  { %2643 = vrot.lane.b32.xlu1 %v4826_v15, %s3382_s25  ;;  %2581 = vrot.lane.b32.xlu0 %v4842_v37, %s3377_s9 }
 0xd28   :  { %2655 = vrot.lane.b32.xlu1 %v4826_v15, %s3383_s26  ;;  %2593 = vrot.lane.b32.xlu0 %v4842_v37, %s3378_s21  ;;  %s3389_s21 = smov [#allocation2]  }
 0xd2c   :  { %2667 = vrot.lane.b32.xlu1 %v4826_v15, %s3384_s4  ;;  %2605 = vrot.lane.b32.xlu0 %v4842_v37, %s3379_s22  ;;  %s2962_s22 = sshll.u32 %s3389_s21, 4  ;;  %s2963_s22 = int_to_ptr.vmem [resolvable:$true] %s2962_s22 }
 0xd2d   :  { %p3349_p1 = scmp.lt.s32.totalorder %s2963_s22, %s2963_s22 }
 0xd30   :  { %2679 = vrot.lane.b32.xlu1 %v4826_v15, %s3376_s8  ;;  %2617 = vrot.lane.b32.xlu0 %v4842_v37, %s3380_s23 }
 0xd34   :  { %2691 = vrot.lane.b32.xlu1 %v4826_v15, %s3386_s18  ;;  %2629 = vrot.lane.b32.xlu0 %v4842_v37, %s3381_s24 }
 0xd38   :  { %2703 = vrot.lane.b32.xlu1 %v4826_v15, %s3387_s0  ;;  %2641 = vrot.lane.b32.xlu0 %v4842_v37, %s3382_s25 }
 0xd3c   :  { %2557 = vrot.lane.b32.xlu1 %v4842_v37, %s3375_s28  ;;  %2653 = vrot.lane.b32.xlu0 %v4842_v37, %s3383_s26 }
 0xd40   :  { %2687 = vrot.lane.b32.xlu1 %v4770_v21, %s3386_s18  ;;  %2665 = vrot.lane.b32.xlu0 %v4842_v37, %s3384_s4 }
 0xd44   :  { %2699 = vrot.lane.b32.xlu1 %v4770_v21, %s3387_s0  ;;  %2677 = vrot.lane.b32.xlu0 %v4842_v37, %s3376_s8 }
 0xd48   :  { %2701 = vrot.lane.b32.xlu1 %v4842_v37, %s3387_s0  ;;  %2689 = vrot.lane.b32.xlu0 %v4842_v37, %s3386_s18 }
 0xd4a   :  { %v2544_v7 = vpop.permute.xlu1 %2543  ;;  %v2532_v22 = vpop.permute.xlu0 %2531 }
 0xd4b   :  { %v2710_v32 = vsel %vm311_vm7, %v4770_v21, %v2532_v22 }
 0xd4c   :  { %2697 = vrot.lane.b32.xlu1 %v4782_v5, %s3387_s0  ;;  %2685 = vrot.lane.b32.xlu0 %v4782_v5, %s3386_s18  ;;  %v2714_v28 = vsel %vm323_vm9, %v2710_v32, %v2544_v7 }
 0xd4e   :  { %v2556_v38 = vpop.permute.xlu1 %2555  ;;  %v4925_v25 = vpop.permute.xlu0 %2675 }
 0xd4f   :  { %v2718_v62 = vsel %vm583_vm11, %v2714_v28, %v2556_v38 }
 0xd52   :  { %v2568_v23 = vpop.permute.xlu1 %2567  ;;  %v2530_v54 = vpop.permute.xlu0 %2529 }
 0xd53   :  { %v2722_v9 = vsel %vm589_vm12, %v2718_v62, %v2568_v23  ;;  %v2709_v24 = vsel %vm311_vm7, %v4782_v5, %v2530_v54 }
 0xd56   :  { %v2580_v58 = vpop.permute.xlu1 %2579  ;;  %v2542_v31 = vpop.permute.xlu0 %2541 }
 0xd57   :  { %v2726_v40 = vsel %vm615_vm13, %v2722_v9, %v2580_v58  ;;  %v2713_v57 = vsel %vm323_vm9, %v2709_v24, %v2542_v31 }
 0xd5a   :  { %v2592_v43 = vpop.permute.xlu1 %2591  ;;  %v2554_v12 = vpop.permute.xlu0 %2553 }
 0xd5b   :  { %v2731_v6 = vsel %vm2729_vm15, %v2726_v40, %v2592_v43  ;;  %v2717_v10 = vsel %vm583_vm11, %v2713_v57, %v2554_v12 }
 0xd5e   :  { %v2604_v59 = vpop.permute.xlu1 %2603  ;;  %v2566_v44 = vpop.permute.xlu0 %2565 }
 0xd5f   :  { %v2736_v50 = vsel %vm2734_vm0, %v2731_v6, %v2604_v59  ;;  %v2721_v20 = vsel %vm589_vm12, %v2717_v10, %v2566_v44 }
 0xd62   :  { %v2616_v60 = vpop.permute.xlu1 %2615  ;;  %v2578_v2 = vpop.permute.xlu0 %2577 }
 0xd63   :  { %v2741_v8 = vsel %vm2739_vm1, %v2736_v50, %v2616_v60  ;;  %v2725_v47 = vsel %vm615_vm13, %v2721_v20, %v2578_v2  ;;  %v2782_v2 = vld [vmem:[%s5070_s2 + $0x18] sm:$0xff] }
 0xd66   :  { %v2628_v48 = vpop.permute.xlu1 %2627  ;;  %v2590_v55 = vpop.permute.xlu0 %2589 }
 0xd67   :  { %v2746_v0 = vsel %vm2744_vm2, %v2741_v8, %v2628_v48  ;;  %v2730_v61 = vsel %vm2729_vm15, %v2725_v47, %v2590_v55 }
 0xd6a   :  { %v2640_v19 = vpop.permute.xlu1 %2639  ;;  %v2602_v17 = vpop.permute.xlu0 %2601 }
 0xd6b   :  { %v2751_v36 = vsel %vm2749_vm3, %v2746_v0, %v2640_v19  ;;  %v2735_v42 = vsel %vm2734_vm0, %v2730_v61, %v2602_v17 }
 0xd6e   :  { %v2652_v51 = vpop.permute.xlu1 %2651  ;;  %v2614_v21 = vpop.permute.xlu0 %2613 }
 0xd6f   :  { %v2756_v18 = vsel %vm2754_vm4, %v2751_v36, %v2652_v51  ;;  %v2740_v16 = vsel %vm2739_vm1, %v2735_v42, %v2614_v21 }
 0xd72   :  { %v2664_v5 = vpop.permute.xlu1 %2663  ;;  %v2626_v13 = vpop.permute.xlu0 %2625 }
 0xd73   :  { %v2761_v35 = vsel %vm2759_vm5, %v2756_v18, %v2664_v5  ;;  %v2745_v39 = vsel %vm2744_vm2, %v2740_v16, %v2626_v13 }
 0xd74   :  { %v4991_v11 = vsel %vm2764_vm6, %v2761_v35, %v4925_v25 }
 0xd76   :  { %v2650_v26 = vpop.permute.xlu1 %2649  ;;  %v2638_v46 = vpop.permute.xlu0 %2637 }
 0xd77   :  { %v2750_v56 = vsel %vm2749_vm3, %v2745_v39, %v2638_v46 }
 0xd78   :  { %v2755_v4 = vsel %vm2754_vm4, %v2750_v56, %v2650_v26 }
 0xd7a   :  { %v2548_v33 = vpop.permute.xlu1 %2547  ;;  %v2662_v7 = vpop.permute.xlu0 %2661 }
 0xd7b   :  { %v4996_v22 = vsel %vm2759_vm5, %v2755_v4, %v2662_v7 }
 0xd7e   :  { %v2560_v41 = vpop.permute.xlu1 %2559  ;;  %v2536_v32 = vpop.permute.xlu0 %2535 }
 0xd7f   :  { %v2712_v9 = vsel %vm311_vm7, %v4826_v15, %v2536_v32 }
 0xd80   :  { %v2716_v58 = vsel %vm323_vm9, %v2712_v9, %v2548_v33 }
 0xd81   :  { %v2720_v40 = vsel %vm583_vm11, %v2716_v58, %v2560_v41  ;;  %v2781_v41 = vld [vmem:[%s5070_s2 + $0x10] sm:$0xff] }
 0xd82   :  { %v2572_v28 = vpop.permute.xlu1 %2571  ;;  %v2584_v52 = vpop.permute.xlu0 %2583 }
 0xd83   :  { %v2724_v57 = vsel %vm589_vm12, %v2720_v40, %v2572_v28  ;;  %v3011_v40 = vld [vmem:[%s5079_s11] ss:$0 sm:$0xff] }
 0xd84   :  { %v2728_v12 = vsel %vm615_vm13, %v2724_v57, %v2584_v52 }
 0xd86   :  { %v2596_v38 = vpop.permute.xlu1 %2595  ;;  %v2534_v30 = vpop.permute.xlu0 %2533 }
 0xd87   :  { %v2733_v53 = vsel %vm2729_vm15, %v2728_v12, %v2596_v38  ;;  %v2711_v61 = vsel %vm311_vm7, %v4842_v37, %v2534_v30  ;;  %v2780_v38 = vld [vmem:[%s5070_s2 + $0x8] sm:$0xff]  ;;  %vm2954_vm7 = vcmask 107520  }
 0xd8a   :  { %v2608_v62 = vpop.permute.xlu1 %2607  ;;  %v2546_v25 = vpop.permute.xlu0 %2545 }
 0xd8b   :  { %v2738_v15 = vsel %vm2734_vm0, %v2733_v53, %v2608_v62  ;;  %v2715_v19 = vsel %vm323_vm9, %v2711_v61, %v2546_v25 }
 0xd8e   :  { %v2620_v27 = vpop.permute.xlu1 %2619  ;;  %v4998_v23 = vpop.permute.xlu0 %2673 }
 0xd8f   :  { %v2743_v63 = vsel %vm2739_vm1, %v2738_v15, %v2620_v27  ;;  %v2765_v27 = vsel %vm2764_vm6, %v4996_v22, %v4998_v23  ;;  %v2787_v22 = vld [vmem:[%s5071_s3] sm:$0x3]  ;;  %s3344_s3 = scalar_lea.vmem %s2963_s22, 32 }
 0xd90   :  { %v2861_v23 = vld [vmem:[%s5078_s10] sm:$0xff]  ;;  %p3345_p0 = scmp.ne.s32.totalorder %s2963_s22, %s3344_s3  ;;  %p3350_p2 = scmp.lt.s32.totalorder %s3344_s3, %s3344_s3 }
 0xd91   :  { %3295 = vmatpush3.msra.mxu0 %v2861_v23 }
 0xd92   :  { %v2632_v54 = vpop.permute.xlu1 %2631  ;;  %v2570_v3 = vpop.permute.xlu0 %2569  ;;  %p3351_p3 = por %p3350_p2, %p3349_p1 }
 0xd93   :  { %v2748_v59 = vsel %vm2744_vm2, %v2743_v63, %v2632_v54 }
 0xd94   :  { %p3352_p4 = pnand %p3351_p3, %p3345_p0 }
 0xd96   :  { %v2644_v14 = vpop.permute.xlu1 %2643  ;;  %v2582_v24 = vpop.permute.xlu0 %2581 }
 0xd97   :  { %v2753_v44 = vsel %vm2749_vm3, %v2748_v59, %v2644_v14 }
 0xd9a   :  { %v2656_v31 = vpop.permute.xlu1 %2655  ;;  %v2594_v1 = vpop.permute.xlu0 %2593 }
 0xd9b   :  { %v2758_v20 = vsel %vm2754_vm4, %v2753_v44, %v2656_v31 }
 0xd9e   :  { %v2668_v49 = vpop.permute.xlu1 %2667  ;;  %v2606_v43 = vpop.permute.xlu0 %2605 }
 0xd9f   :  { %v2763_v45 = vsel %vm2759_vm5, %v2758_v20, %v2668_v49 }
 0xda2   :  { %v2680_v6 = vpop.permute.xlu1 %2679  ;;  %v2618_v10 = vpop.permute.xlu0 %2617 }
 0xda3   :  { %v2768_v60 = vsel %vm2764_vm6, %v2763_v45, %v2680_v6 }
 0xda6   :  { %v2692_v29 = vpop.permute.xlu1 %2691  ;;  %v2630_v50 = vpop.permute.xlu0 %2629 }
 0xda7   :  { %v2773_v8 = vsel %vm2769_vm8, %v2768_v60, %v2692_v29 }
 0xdaa   :  { %v2704_v47 = vpop.permute.xlu1 %2703  ;;  %v2642_v48 = vpop.permute.xlu0 %2641 }
 0xdab   :  { %v2778_v55 = vsel %vm2774_vm10, %v2773_v8, %v2704_v47 }
 0xdac   :  { %v2786_v0 = vmul.f32 %v2782_v2, %v2778_v55 }
 0xdae   :  { %v2558_v17 = vpop.permute.xlu1 %2557  ;;  %3254 = vmatpush3.msra.mxu1 %v2786_v0  ;;  %v2654_v36 = vpop.permute.xlu0 %2653 }
 0xdaf   :  { %v2719_v42 = vsel %vm583_vm11, %v2715_v19, %v2558_v17  ;;  %3255 = vmatprep.subr.mxu1 %v3385_v34 }
 0xdb0   :  { %v2723_v51 = vsel %vm589_vm12, %v2719_v42, %v2570_v3 }
 0xdb1   :  { %v2727_v21 = vsel %vm615_vm13, %v2723_v51, %v2582_v24 }
 0xdb2   :  { %v2732_v18 = vsel %vm2729_vm15, %v2727_v21, %v2594_v1  ;;  %v2688_v16 = vpop.permute.xlu1 %2687  ;;  %v2666_v5 = vpop.permute.xlu0 %2665 }
 0xdb3   :  { %v2737_v13 = vsel %vm2734_vm0, %v2732_v18, %v2606_v43  ;;  %v2771_v28 = vsel %vm2769_vm8, %v4991_v11, %v2688_v16  ;;  %v2779_v11 = vld [vmem:[%s5070_s2] sm:$0xff] }
 0xdb4   :  { %v2742_v37 = vsel %vm2739_vm1, %v2737_v13, %v2618_v10 }
 0xdb5   :  { %v2747_v35 = vsel %vm2744_vm2, %v2742_v37, %v2630_v50 }
 0xdb6   :  { %v2752_v39 = vsel %vm2749_vm3, %v2747_v35, %v2642_v48  ;;  %v2700_v26 = vpop.permute.xlu1 %2699  ;;  %v2678_v46 = vpop.permute.xlu0 %2677 }
 0xdb7   :  { %v2757_v56 = vsel %vm2754_vm4, %v2752_v39, %v2654_v36  ;;  %v2776_v30 = vsel %vm2774_vm10, %v2771_v28, %v2700_v26 }
 0xdb8   :  { %v2762_v4 = vsel %vm2759_vm5, %v2757_v56, %v2666_v5  ;;  %v2784_v9 = vmul.f32 %v2780_v38, %v2776_v30 }
 0xdb9   :  { %v2767_v33 = vsel %vm2764_vm6, %v2762_v4, %v2678_v46 }
 0xdba   :  { %v2702_v7 = vpop.permute.xlu1 %2701  ;;  %v2690_v32 = vpop.permute.xlu0 %2689 }
 0xdbb   :  { %v2772_v52 = vsel %vm2769_vm8, %v2767_v33, %v2690_v32 }
 0xdbc   :  { %v2777_v62 = vsel %vm2774_vm10, %v2772_v52, %v2702_v7 }
 0xdbd   :  { %v2785_v25 = vmul.f32 %v2781_v41, %v2777_v62 }
 0xdbe   :  { %v2698_v54 = vpop.permute.xlu1 %2697  ;;  %v2686_v3 = vpop.permute.xlu0 %2685 }
 0xdbf   :  { %v2770_v14 = vsel %vm2769_vm8, %v2765_v27, %v2686_v3  ;;  %3256 = vmatpush3.msra.mxu1 %v2785_v25 }
 0xdc0   :  { %v2775_v24 = vsel %vm2774_vm10, %v2770_v14, %v2698_v54  ;;  %3257 = vmatprep.subr.mxu1 %v3385_v34 }
 0xdc1   :  { %v2783_v58 = vmul.f32 %v2779_v11, %v2775_v24  ;;  %3258 = vmatpush3.msra.mxu1 %v2784_v9 }
 0xdc2   :  { %3259 = vmatprep.subr.mxu1 %v3385_v34 }
 0xdc3   :  { %3260 = vmatpush3.msra.mxu1 %v2783_v58 }
 0xdc4   :  { %3262 = vmatmul.mubr.msk.f32.vlgmr.msra.gmra.mxu1 %vm589_vm12, %v2787_v22 }
 0xe84   :  { %v2857_v31 = vpop.f32.mrf.mxu1 }
 0xe85   :  { %3297 = vmatmul.mubr.f32.vlgmr.msra.gmra.mxu0 %v2857_v31 }
 0xe86   :  { %v3263_v1 = vpop.f32.mrf.mxu1 }
 0xf45   :  { %v2950_v57 = vpop.f32.mrf.mxu0 }
 0xf46   :  { %v2951_v34 = vadd.f32 %v3011_v40, %v2950_v57 }
 0xf47   :  { %v3298_v49 = vpop.f32.mrf.mxu0 }
 0xf48   :  { %2955 = vst.msk [vmem:[#allocation2] sm:$0x3] %vm2954_vm7, %v2951_v34 }
 0xf49   :  { %3355 = shalt.err (!%p3352_p4)
}
 0xf4a   :  { %2965 = dma.vmem_to_hbm [thread:$0]  %s2963_s22, 32, %s5080_s12, [#allocation3]  }
 0xf4b   :  { %3364 = dma.done.wait [#allocation3], 32  }
 0xf4c   :  { %3365 = vsyncadd [#allocation3], 4294967264 }
 0xf4d   :  { %2969 = vsyncpa [#allocation3], 1 }

</bundles_post_ra>
